<compile_context>
chip_gen: v6e
topology: v6e:2x2x1
jax: 0.10.0
libtpu: 0.0.40
codegen_flags: <defaults>
</compile_context>

<pallas_src>
import functools

import jax
import jax.numpy as jnp
import numpy as np
from jax.experimental import pallas as pl
from jax.experimental.pallas import tpu as pltpu

EPS = 1e-5
LANE = 128

_CPARAMS = pltpu.CompilerParams(
    dimension_semantics=("parallel",),         # shard batch grid steps across TCs
    vmem_limit_bytes=32 * 1024 * 1024,
)


def _ceil_to(x, m):
    return ((x + m - 1) // m) * m


# ----------------------------- in-kernel helpers -----------------------------

def _bn_relu_pad_conv3x3(xp, affine, w_flat):
    """Fused BN-affine + ReLU + halo re-zero + 3x3 conv as one im2col matmul.

    xp:     (H+2, W+2, C) f32, spatially zero-padded by 1 (wrapper side).
    affine: (2, C) f32, rows = [scale, shift]; padded channels carry 0/0.
    w_flat: (9*C, Cout) bf16, K ordered (ky, kx, cin).
    Returns (h, center): h = conv output (H*W, Cout) f32; center = BN-ReLU'd
    interior (H*W, C) bf16 (tap ky=1,kx=1) reused by the 1x1 shortcut conv.
    """
    Hp, Wp, C = xp.shape
    H, W = Hp - 2, Wp - 2
    scale = affine[0:1, :].reshape(1, 1, C)
    shift = affine[1:2, :].reshape(1, 1, C)
    pre = jnp.maximum(xp * scale + shift, 0.0)
    # The BN shift would leak into the zero halo -> re-zero it with a mask.
    r = jax.lax.broadcasted_iota(jnp.int32, (Hp, Wp, C), 0)
    c = jax.lax.broadcasted_iota(jnp.int32, (Hp, Wp, C), 1)
    inside = (r >= 1) & (r <= H) & (c >= 1) & (c <= W)
    pre = jnp.where(inside, pre, 0.0)
    # im2col: 3 W-shifts + leading-dim H slices, one lane-aligned concat,
    # then a single MXU matmul with K = 9*C (bf16 operands, f32 accumulate).
    cols = [pre[:, kx:kx + W, :] for kx in range(3)]             # (Hp, W, C)
    parts = [cols[kx][ky:ky + H].reshape(H * W, C)
             for ky in range(3) for kx in range(3)]
    patch = jnp.concatenate(parts, axis=1).astype(jnp.bfloat16)  # (H*W, 9*C)
    h = jnp.dot(patch, w_flat, preferred_element_type=jnp.float32)
    center = parts[4].astype(jnp.bfloat16)                       # ky=1, kx=1
    return h, center


def _channel_sums(h):
    """Per-channel [sum; sum of squares] of h (rows = pixels) -> (2, C) f32."""
    return jnp.concatenate(
        [jnp.sum(h, axis=0, keepdims=True),
         jnp.sum(h * h, axis=0, keepdims=True)], axis=0)


# --------------------------------- kernels -----------------------------------

def _stage1_kernel_sc(xp_ref, a1_ref, w1_ref, ws_ref, h1_ref, sc_ref, st_ref):
    _, H, W, PP = h1_ref.shape
    COP = sc_ref.shape[3]
    h, center = _bn_relu_pad_conv3x3(xp_ref[0].astype(jnp.float32),
                                     a1_ref[...], w1_ref[...])
    sc = jnp.dot(center, ws_ref[...], preferred_element_type=jnp.float32)
    h1_ref[0] = h.reshape(H, W, PP)
    sc_ref[0] = sc.reshape(H, W, COP)
    st_ref[0] = _channel_sums(h)            # fused BN2 statistics (per image)


def _stage1_kernel_id(xp_ref, a1_ref, w1_ref, h1_ref, st_ref):
    _, H, W, PP = h1_ref.shape
    h, _ = _bn_relu_pad_conv3x3(xp_ref[0].astype(jnp.float32),
                                a1_ref[...], w1_ref[...])
    h1_ref[0] = h.reshape(H, W, PP)
    st_ref[0] = _channel_sums(h)


def _stage2_kernel(h1p_ref, a2_ref, w2_ref, h2_ref, st_ref):
    _, H, W, PP = h2_ref.shape
    h, _ = _bn_relu_pad_conv3x3(h1p_ref[0], a2_ref[...], w2_ref[...])
    h2_ref[0] = h.reshape(H, W, PP)
    st_ref[0] = _channel_sums(h)            # fused BN3 statistics (per image)


def _stage3_kernel(h2_ref, sc_ref, a3_ref, w3_ref, out_ref):
    _, H, W, COP = out_ref.shape
    PP = h2_ref.shape[3]
    aff = a3_ref[...]
    scale = aff[0:1, :].reshape(1, 1, PP)
    shift = aff[1:2, :].reshape(1, 1, PP)
    act = jnp.maximum(h2_ref[0] * scale + shift, 0.0)
    act = act.reshape(H * W, PP).astype(jnp.bfloat16)
    y = jnp.dot(act, w3_ref[...], preferred_element_type=jnp.float32)
    out_ref[0] = y.reshape(H, W, COP) + sc_ref[0]


# ------------------------------ spec helpers ----------------------------------

def _resident_spec(shape):
    nd = len(shape)
    return pl.BlockSpec(shape, lambda i, _nd=nd: (0,) * _nd)


def _per_image_spec(shape):
    nd = len(shape)
    return pl.BlockSpec((1,) + tuple(shape[1:]),
                        lambda i, _nd=nd: (i,) + (0,) * (_nd - 1))


# ------------------------------ parameter prep --------------------------------

def _pad_last(a, target):
    if a.shape[-1] == target:
        return a
    widths = [(0, 0)] * (a.ndim - 1) + [(0, target - a.shape[-1])]
    return jnp.pad(a, widths)


def _prep_conv3x3_w(w_hwio, cin_p, cout_p):
    kh, kw, cin, cout = w_hwio.shape
    w = jnp.pad(w_hwio, ((0, 0), (0, 0), (0, cin_p - cin), (0, cout_p - cout)))
    return w.reshape(kh * kw * cin_p, cout_p).astype(jnp.bfloat16)


def _prep_1x1_w(w, cin_p, cout_p):
    cin, cout = w.shape
    return jnp.pad(w, ((0, cin_p - cin), (0, cout_p - cout))).astype(jnp.bfloat16)


def _affine_from_stats(gamma_p, beta_p, mean, var):
    scale = gamma_p * jax.lax.rsqrt(jnp.maximum(var, 0.0) + EPS)
    shift = beta_p - mean * scale
    return jnp.stack([scale, shift], axis=0).astype(jnp.float32)


def _affine_from_sums(st, count, gamma_p, beta_p):
    s = jnp.sum(st, axis=0)                 # reduce per-image partial sums
    mean = s[0] / count
    var = s[1] / count - mean * mean        # one-pass E[x^2] - E[x]^2, f32
    return _affine_from_stats(gamma_p, beta_p, mean, var)


# --------------------------------- wrapper -------------------------------------

def bottleneck_pallas(x_nhwc, params, in_planes, planes, stride, expansion=4):
    """x_nhwc: (N, H, W, Cin) f32.  Returns (N, H, W, planes*expansion) f32."""
    assert stride == 1, "only stride=1 implemented"
    N, H, W, Cin = x_nhwc.shape
    assert Cin == in_planes
    Cout = planes * expansion
    has_shortcut = (stride != 1) or (in_planes != Cout)

    CP = _ceil_to(Cin, LANE)                # lane-dense channel padding
    PP = _ceil_to(planes, LANE)
    COP = _ceil_to(Cout, LANE)
    count = N * H * W                       # elements per channel for BN stats

    g1 = jnp.pad(params["g1"].reshape(-1), (0, CP - Cin))
    b1 = jnp.pad(params["b1"].reshape(-1), (0, CP - Cin))
    g2 = jnp.pad(params["g2"].reshape(-1), (0, PP - planes))
    b2 = jnp.pad(params["b2"].reshape(-1), (0, PP - planes))
    g3 = jnp.pad(params["g3"].reshape(-1), (0, PP - planes))
    b3 = jnp.pad(params["b3"].reshape(-1), (0, PP - planes))
    w1 = _prep_conv3x3_w(params["w1"], CP, PP)
    w2 = _prep_conv3x3_w(params["w2"], PP, PP)
    w3 = _prep_1x1_w(params["w3"], PP, COP)

    # Lane-dense, spatially zero-padded input (HBM side, done once).
    xcp = _pad_last(x_nhwc.astype(jnp.float32), CP)               # (N,H,W,CP)
    xp = jnp.pad(xcp, ((0, 0), (1, 1), (1, 1), (0, 0)))           # (N,H+2,W+2,CP)

    # BN1 statistics: GLOBAL batch stats of x (tiny per-channel JAX pre-pass;
    # must not be computed per tile).
    mean1 = jnp.mean(xcp, axis=(0, 1, 2))
    var1 = jnp.mean(xcp * xcp, axis=(0, 1, 2)) - mean1 * mean1
    a1 = _affine_from_stats(g1, b1, mean1, var1)                  # (2, CP)

    st_shape = jax.ShapeDtypeStruct((N, 2, PP), jnp.float32)
    h1_shape = jax.ShapeDtypeStruct((N, H, W, PP), jnp.float32)

    # ---- stage 1: pre = relu(BN1(x)); h1 = conv3x3(pre); sc = conv1x1_s(pre) ----
    if has_shortcut:
        ws = _prep_1x1_w(params["ws"], CP, COP)
        h1, sc, st1 = pl.pallas_call(
            _stage1_kernel_sc,
            out_shape=(h1_shape,
                       jax.ShapeDtypeStruct((N, H, W, COP), jnp.float32),
                       st_shape),
            grid=(N,),
            in_specs=[_per_image_spec(xp.shape), _resident_spec(a1.shape),
                      _resident_spec(w1.shape), _resident_spec(ws.shape)],
            out_specs=(_per_image_spec((N, H, W, PP)),
                       _per_image_spec((N, H, W, COP)),
                       _per_image_spec((N, 2, PP))),
            compiler_params=_CPARAMS,
        )(xp, a1, w1, ws)
    else:
        assert Cin == Cout
        h1, st1 = pl.pallas_call(
            _stage1_kernel_id,
            out_shape=(h1_shape, st_shape),
            grid=(N,),
            in_specs=[_per_image_spec(xp.shape), _resident_spec(a1.shape),
                      _resident_spec(w1.shape)],
            out_specs=(_per_image_spec((N, H, W, PP)),
                       _per_image_spec((N, 2, PP))),
            compiler_params=_CPARAMS,
        )(xp, a1, w1)
        sc = _pad_last(x_nhwc.astype(jnp.float32), COP)           # identity shortcut

    # ---- stage 2: h2 = conv3x3(relu(BN2(h1))) --------------------------------
    a2 = _affine_from_sums(st1, count, g2, b2)
    h1p = jnp.pad(h1, ((0, 0), (1, 1), (1, 1), (0, 0)))
    h2, st2 = pl.pallas_call(
        _stage2_kernel,
        out_shape=(jax.ShapeDtypeStruct((N, H, W, PP), jnp.float32), st_shape),
        grid=(N,),
        in_specs=[_per_image_spec(h1p.shape), _resident_spec(a2.shape),
                  _resident_spec(w2.shape)],
        out_specs=(_per_image_spec((N, H, W, PP)),
                   _per_image_spec((N, 2, PP))),
        compiler_params=_CPARAMS,
    )(h1p, a2, w2)

    # ---- stage 3: out = conv1x1(relu(BN3(h2))) + shortcut ---------------------
    a3 = _affine_from_sums(st2, count, g3, b3)
    out = pl.pallas_call(
        _stage3_kernel,
        out_shape=jax.ShapeDtypeStruct((N, H, W, COP), jnp.float32),
        grid=(N,),
        in_specs=[_per_image_spec(h2.shape), _per_image_spec(sc.shape),
                  _resident_spec(a3.shape), _resident_spec(w3.shape)],
        out_specs=_per_image_spec((N, H, W, COP)),
        compiler_params=_CPARAMS,
    )(h2, sc, a3, w3)

    return out[..., :Cout]


# ------------------------------ pure-JAX reference ----------------------------

def _ref_bn_relu(x, g, b):
    m = jnp.mean(x, axis=(0, 1, 2), keepdims=True)
    v = jnp.mean((x - m) ** 2, axis=(0, 1, 2), keepdims=True)
    y = (x - m) / jnp.sqrt(v + EPS) * g.reshape(1, 1, 1, -1) + b.reshape(1, 1, 1, -1)
    return jax.nn.relu(y)


def _ref_conv3x3(x, w_hwio):
    return jax.lax.conv_general_dilated(
        x, w_hwio, (1, 1), "SAME",
        dimension_numbers=("NHWC", "HWIO", "NHWC"),
        precision=jax.lax.Precision.HIGHEST)


def _ref_conv1x1(x, w):
    return jnp.einsum("nhwc,cd->nhwd", x, w, precision=jax.lax.Precision.HIGHEST)


def bottleneck_reference(x_nhwc, raw):
    pre = _ref_bn_relu(x_nhwc, raw["g1"], raw["b1"])
    sc = _ref_conv1x1(pre, raw["ws"]) if "ws" in raw else x_nhwc
    h = _ref_conv3x3(pre, raw["w1"])
    h = _ref_conv3x3(_ref_bn_relu(h, raw["g2"], raw["b2"]), raw["w2"])
    h = _ref_conv1x1(_ref_bn_relu(h, raw["g3"], raw["b3"]), raw["w3"])
    return h + sc


# ----------------------------------- main --------------------------------------

if __name__ == "__main__":
    N, Cin, H, W = 2, 4, 16, 16
    planes, expansion, stride = 4, 4, 1
    Cout = planes * expansion

    key = jax.random.PRNGKey(0)
    ks = jax.random.split(key, 11)

    x_nchw = jax.random.normal(ks[0], (N, Cin, H, W), jnp.float32)

    raw = {
        "g1": 1.0 + 0.1 * jax.random.normal(ks[1], (Cin,), jnp.float32),
        "b1": 0.1 * jax.random.normal(ks[2], (Cin,), jnp.float32),
        "g2": 1.0 + 0.1 * jax.random.normal(ks[3], (planes,), jnp.float32),
        "b2": 0.1 * jax.random.normal(ks[4], (planes,), jnp.float32),
        "g3": 1.0 + 0.1 * jax.random.normal(ks[5], (planes,), jnp.float32),
        "b3": 0.1 * jax.random.normal(ks[6], (planes,), jnp.float32),
        "w1": 0.2 * jax.random.normal(ks[7], (3, 3, Cin, planes), jnp.float32),
        "w2": 0.2 * jax.random.normal(ks[8], (3, 3, planes, planes), jnp.float32),
        "w3": 0.2 * jax.random.normal(ks[9], (planes, Cout), jnp.float32),
        "ws": 0.2 * jax.random.normal(ks[10], (Cin, Cout), jnp.float32),
    }

    # layout: NCHW (PyTorch) -> NHWC (kernel)
    x_nhwc = jnp.transpose(x_nchw, (0, 2, 3, 1))

    fwd = jax.jit(functools.partial(bottleneck_pallas, in_planes=Cin,
                                    planes=planes, stride=stride,
                                    expansion=expansion))
    out_nhwc = fwd(x_nhwc, raw)
    jax.block_until_ready(out_nhwc)

    ref_nhwc = bottleneck_reference(x_nhwc, raw)
    np.testing.assert_allclose(np.asarray(out_nhwc), np.asarray(ref_nhwc),
                               rtol=2e-2, atol=2e-2)

    out_nchw = jnp.transpose(out_nhwc, (0, 3, 1, 2))   # back to PyTorch layout
    jax.block_until_ready(out_nchw)

    print("KERNEL_OK")
</pallas_src>

<mosaic_0001>
module attributes {stable_mosaic.version = 11 : i64} {
  func.func @_stage1_kernel_sc(%arg0: i32, %arg1: memref<1x18x18x128xf32, #tpu.memory_space<vmem>>, %arg2: memref<2x128xf32, #tpu.memory_space<vmem>>, %arg3: memref<1152x128xbf16, #tpu.memory_space<vmem>>, %arg4: memref<128x128xbf16, #tpu.memory_space<vmem>>, %arg5: memref<1x16x16x128xf32, #tpu.memory_space<vmem>>, %arg6: memref<1x16x16x128xf32, #tpu.memory_space<vmem>>, %arg7: memref<1x2x128xf32, #tpu.memory_space<vmem>>) attributes {dimension_semantics = [#tpu.dimension_semantics<parallel>], iteration_bounds = array<i64: 2>, scalar_prefetch = 0 : i64, scratch_operands = 0 : i64, tpu.core_type = #tpu.core_type<tc>, window_params = [{transform_indices = @transform_0, window_bounds = array<i64: 1, 18, 18, 128>}, {pipeline_mode = #tpu.pipeline_mode<synchronous>, transform_indices = @transform_1, window_bounds = array<i64: 2, 128>}, {pipeline_mode = #tpu.pipeline_mode<synchronous>, transform_indices = @transform_2, window_bounds = array<i64: 1152, 128>}, {pipeline_mode = #tpu.pipeline_mode<synchronous>, transform_indices = @transform_3, window_bounds = array<i64: 128, 128>}, {transform_indices = @transform_4, window_bounds = array<i64: 1, 16, 16, 128>}, {transform_indices = @transform_5, window_bounds = array<i64: 1, 16, 16, 128>}, {transform_indices = @transform_6, window_bounds = array<i64: 1, 2, 128>}]} {
    %c0 = arith.constant 0 : index
    %c0_0 = arith.constant 0 : index
    %c0_1 = arith.constant 0 : index
    %c0_2 = arith.constant 0 : index
    %0 = vector.load %arg1[%c0, %c0_0, %c0_1, %c0_2] : memref<1x18x18x128xf32, #tpu.memory_space<vmem>>, vector<1x18x18x128xf32>
    %1 = vector.shape_cast %0 : vector<1x18x18x128xf32> to vector<18x18x128xf32>
    %c0_3 = arith.constant 0 : index
    %c0_4 = arith.constant 0 : index
    %2 = vector.load %arg2[%c0_3, %c0_4] : memref<2x128xf32, #tpu.memory_space<vmem>>, vector<2x128xf32>
    %c0_5 = arith.constant 0 : index
    %c0_6 = arith.constant 0 : index
    %3 = vector.load %arg3[%c0_5, %c0_6] : memref<1152x128xbf16, #tpu.memory_space<vmem>>, vector<1152x128xbf16>
    %4 = vector.extract_strided_slice %2 {offsets = [0, 0], sizes = [1, 128], strides = [1, 1]} : vector<2x128xf32> to vector<1x128xf32>
    %5 = vector.shape_cast %4 : vector<1x128xf32> to vector<1x1x128xf32>
    %6 = vector.extract_strided_slice %2 {offsets = [1, 0], sizes = [1, 128], strides = [1, 1]} : vector<2x128xf32> to vector<1x128xf32>
    %7 = vector.shape_cast %6 : vector<1x128xf32> to vector<1x1x128xf32>
    %8 = vector.broadcast %5 : vector<1x1x128xf32> to vector<18x18x128xf32>
    %9 = arith.mulf %1, %8 : vector<18x18x128xf32>
    %10 = vector.broadcast %7 : vector<1x1x128xf32> to vector<18x18x128xf32>
    %11 = arith.addf %9, %10 : vector<18x18x128xf32>
    %cst = arith.constant 0.000000e+00 : f32
    %12 = vector.broadcast %cst : f32 to vector<18x18x128xf32>
    %13 = arith.maximumf %11, %12 : vector<18x18x128xf32>
    %14 = tpu.iota {dimensions = array<i32: 0>} : vector<18x18x128xi32>
    %15 = tpu.iota {dimensions = array<i32: 1>} : vector<18x18x128xi32>
    %c1_i32 = arith.constant 1 : i32
    %16 = vector.broadcast %c1_i32 : i32 to vector<18x18x128xi32>
    %17 = arith.cmpi sge, %14, %16 : vector<18x18x128xi32>
    %c16_i32 = arith.constant 16 : i32
    %18 = vector.broadcast %c16_i32 : i32 to vector<18x18x128xi32>
    %19 = arith.cmpi sle, %14, %18 : vector<18x18x128xi32>
    %20 = arith.andi %17, %19 : vector<18x18x128xi1>
    %c1_i32_7 = arith.constant 1 : i32
    %21 = vector.broadcast %c1_i32_7 : i32 to vector<18x18x128xi32>
    %22 = arith.cmpi sge, %15, %21 : vector<18x18x128xi32>
    %23 = arith.andi %20, %22 : vector<18x18x128xi1>
    %c16_i32_8 = arith.constant 16 : i32
    %24 = vector.broadcast %c16_i32_8 : i32 to vector<18x18x128xi32>
    %25 = arith.cmpi sle, %15, %24 : vector<18x18x128xi32>
    %26 = arith.andi %23, %25 : vector<18x18x128xi1>
    %cst_9 = arith.constant 0.000000e+00 : f32
    %27 = vector.broadcast %cst_9 : f32 to vector<18x18x128xf32>
    %28 = arith.select %26, %13, %27 : vector<18x18x128xi1>, vector<18x18x128xf32>
    %29 = vector.extract_strided_slice %28 {offsets = [0, 0, 0], sizes = [18, 16, 128], strides = [1, 1, 1]} : vector<18x18x128xf32> to vector<18x16x128xf32>
    %30 = vector.extract_strided_slice %28 {offsets = [0, 1, 0], sizes = [18, 16, 128], strides = [1, 1, 1]} : vector<18x18x128xf32> to vector<18x16x128xf32>
    %31 = vector.extract_strided_slice %28 {offsets = [0, 2, 0], sizes = [18, 16, 128], strides = [1, 1, 1]} : vector<18x18x128xf32> to vector<18x16x128xf32>
    %32 = vector.extract_strided_slice %29 {offsets = [0, 0, 0], sizes = [16, 16, 128], strides = [1, 1, 1]} : vector<18x16x128xf32> to vector<16x16x128xf32>
    %33 = vector.shape_cast %32 : vector<16x16x128xf32> to vector<256x128xf32>
    %34 = vector.extract_strided_slice %30 {offsets = [0, 0, 0], sizes = [16, 16, 128], strides = [1, 1, 1]} : vector<18x16x128xf32> to vector<16x16x128xf32>
    %35 = vector.shape_cast %34 : vector<16x16x128xf32> to vector<256x128xf32>
    %36 = vector.extract_strided_slice %31 {offsets = [0, 0, 0], sizes = [16, 16, 128], strides = [1, 1, 1]} : vector<18x16x128xf32> to vector<16x16x128xf32>
    %37 = vector.shape_cast %36 : vector<16x16x128xf32> to vector<256x128xf32>
    %38 = vector.extract_strided_slice %29 {offsets = [1, 0, 0], sizes = [16, 16, 128], strides = [1, 1, 1]} : vector<18x16x128xf32> to vector<16x16x128xf32>
    %39 = vector.shape_cast %38 : vector<16x16x128xf32> to vector<256x128xf32>
    %40 = vector.extract_strided_slice %30 {offsets = [1, 0, 0], sizes = [16, 16, 128], strides = [1, 1, 1]} : vector<18x16x128xf32> to vector<16x16x128xf32>
    %41 = vector.shape_cast %40 : vector<16x16x128xf32> to vector<256x128xf32>
    %42 = vector.extract_strided_slice %31 {offsets = [1, 0, 0], sizes = [16, 16, 128], strides = [1, 1, 1]} : vector<18x16x128xf32> to vector<16x16x128xf32>
    %43 = vector.shape_cast %42 : vector<16x16x128xf32> to vector<256x128xf32>
    %44 = vector.extract_strided_slice %29 {offsets = [2, 0, 0], sizes = [16, 16, 128], strides = [1, 1, 1]} : vector<18x16x128xf32> to vector<16x16x128xf32>
    %45 = vector.shape_cast %44 : vector<16x16x128xf32> to vector<256x128xf32>
    %46 = vector.extract_strided_slice %30 {offsets = [2, 0, 0], sizes = [16, 16, 128], strides = [1, 1, 1]} : vector<18x16x128xf32> to vector<16x16x128xf32>
    %47 = vector.shape_cast %46 : vector<16x16x128xf32> to vector<256x128xf32>
    %48 = vector.extract_strided_slice %31 {offsets = [2, 0, 0], sizes = [16, 16, 128], strides = [1, 1, 1]} : vector<18x16x128xf32> to vector<16x16x128xf32>
    %49 = vector.shape_cast %48 : vector<16x16x128xf32> to vector<256x128xf32>
    %50 = tpu.concatenate %33, %35, %37, %39, %41, %43, %45, %47, %49 in 1 : vector<256x128xf32>, vector<256x128xf32>, vector<256x128xf32>, vector<256x128xf32>, vector<256x128xf32>, vector<256x128xf32>, vector<256x128xf32>, vector<256x128xf32>, vector<256x128xf32> -> vector<256x1152xf32>
    %51 = arith.truncf %50 : vector<256x1152xf32> to vector<256x1152xbf16>
    %cst_10 = arith.constant dense<0.000000e+00> : vector<256x128xf32>
    %52 = tpu.matmul %51, %3, %cst_10 {dimension_numbers = #tpu.dot_dimension_numbers<[1], [0], [0], [1], [0, 0, 1, 1], [], []>} : vector<256x1152xbf16>, vector<1152x128xbf16>, vector<256x128xf32> -> vector<256x128xf32>
    %53 = arith.truncf %41 : vector<256x128xf32> to vector<256x128xbf16>
    %c0_11 = arith.constant 0 : index
    %c0_12 = arith.constant 0 : index
    %54 = vector.load %arg4[%c0_11, %c0_12] : memref<128x128xbf16, #tpu.memory_space<vmem>>, vector<128x128xbf16>
    %cst_13 = arith.constant dense<0.000000e+00> : vector<256x128xf32>
    %55 = tpu.matmul %53, %54, %cst_13 {dimension_numbers = #tpu.dot_dimension_numbers<[1], [0], [0], [1], [0, 0, 1, 1], [], []>} : vector<256x128xbf16>, vector<128x128xbf16>, vector<256x128xf32> -> vector<256x128xf32>
    %56 = vector.shape_cast %52 : vector<256x128xf32> to vector<16x16x128xf32>
    %c0_14 = arith.constant 0 : index
    %c0_15 = arith.constant 0 : index
    %c0_16 = arith.constant 0 : index
    %c0_17 = arith.constant 0 : index
    %57 = vector.load %arg5[%c0_14, %c0_15, %c0_16, %c0_17] : memref<1x16x16x128xf32, #tpu.memory_space<vmem>>, vector<1x16x16x128xf32>
    %58 = vector.shape_cast %57 : vector<1x16x16x128xf32> to vector<16x16x128xf32>
    %59 = vector.shape_cast %56 : vector<16x16x128xf32> to vector<1x16x16x128xf32>
    tpu.vector_store %arg5[%c0_14, %c0_15, %c0_16, %c0_17], %59 {strides = array<i32>} : memref<1x16x16x128xf32, #tpu.memory_space<vmem>>, vector<1x16x16x128xf32>,
    %60 = vector.shape_cast %55 : vector<256x128xf32> to vector<16x16x128xf32>
    %c0_18 = arith.constant 0 : index
    %c0_19 = arith.constant 0 : index
    %c0_20 = arith.constant 0 : index
    %c0_21 = arith.constant 0 : index
    %61 = vector.load %arg6[%c0_18, %c0_19, %c0_20, %c0_21] : memref<1x16x16x128xf32, #tpu.memory_space<vmem>>, vector<1x16x16x128xf32>
    %62 = vector.shape_cast %61 : vector<1x16x16x128xf32> to vector<16x16x128xf32>
    %63 = vector.shape_cast %60 : vector<16x16x128xf32> to vector<1x16x16x128xf32>
    tpu.vector_store %arg6[%c0_18, %c0_19, %c0_20, %c0_21], %63 {strides = array<i32>} : memref<1x16x16x128xf32, #tpu.memory_space<vmem>>, vector<1x16x16x128xf32>,
    %cst_22 = arith.constant dense<0.000000e+00> : vector<128xf32>
    %64 = vector.multi_reduction <add>, %52, %cst_22 [0] : vector<256x128xf32> to vector<128xf32>
    %65 = vector.shape_cast %64 : vector<128xf32> to vector<1x128xf32>
    %66 = arith.mulf %52, %52 : vector<256x128xf32>
    %cst_23 = arith.constant dense<0.000000e+00> : vector<128xf32>
    %67 = vector.multi_reduction <add>, %66, %cst_23 [0] : vector<256x128xf32> to vector<128xf32>
    %68 = vector.shape_cast %67 : vector<128xf32> to vector<1x128xf32>
    %69 = tpu.concatenate %65, %68 in 0 : vector<1x128xf32>, vector<1x128xf32> -> vector<2x128xf32>
    %c0_24 = arith.constant 0 : index
    %c0_25 = arith.constant 0 : index
    %c0_26 = arith.constant 0 : index
    %70 = vector.load %arg7[%c0_24, %c0_25, %c0_26] : memref<1x2x128xf32, #tpu.memory_space<vmem>>, vector<1x2x128xf32>
    %71 = vector.shape_cast %70 : vector<1x2x128xf32> to vector<2x128xf32>
    %72 = vector.shape_cast %69 : vector<2x128xf32> to vector<1x2x128xf32>
    tpu.vector_store %arg7[%c0_24, %c0_25, %c0_26], %72 {strides = array<i32>} : memref<1x2x128xf32, #tpu.memory_space<vmem>>, vector<1x2x128xf32>,
    return
  }
  func.func @transform_0(%arg0: i32) -> (i32, i32, i32, i32) {
    %c0_i32 = arith.constant 0 : i32
    %c0_i32_0 = arith.constant 0 : i32
    %c0_i32_1 = arith.constant 0 : i32
    %c0_i32_2 = arith.constant 0 : i32
    return %arg0, %c0_i32, %c0_i32_0, %c0_i32_1 : i32, i32, i32, i32
  }
  func.func @transform_1(%arg0: i32) -> (i32, i32) {
    %c0_i32 = arith.constant 0 : i32
    %c0_i32_0 = arith.constant 0 : i32
    %c0_i32_1 = arith.constant 0 : i32
    return %c0_i32, %c0_i32_0 : i32, i32
  }
  func.func @transform_2(%arg0: i32) -> (i32, i32) {
    %c0_i32 = arith.constant 0 : i32
    %c0_i32_0 = arith.constant 0 : i32
    %c0_i32_1 = arith.constant 0 : i32
    return %c0_i32, %c0_i32_0 : i32, i32
  }
  func.func @transform_3(%arg0: i32) -> (i32, i32) {
    %c0_i32 = arith.constant 0 : i32
    %c0_i32_0 = arith.constant 0 : i32
    %c0_i32_1 = arith.constant 0 : i32
    return %c0_i32, %c0_i32_0 : i32, i32
  }
  func.func @transform_4(%arg0: i32) -> (i32, i32, i32, i32) {
    %c0_i32 = arith.constant 0 : i32
    %c0_i32_0 = arith.constant 0 : i32
    %c0_i32_1 = arith.constant 0 : i32
    %c0_i32_2 = arith.constant 0 : i32
    return %arg0, %c0_i32, %c0_i32_0, %c0_i32_1 : i32, i32, i32, i32
  }
  func.func @transform_5(%arg0: i32) -> (i32, i32, i32, i32) {
    %c0_i32 = arith.constant 0 : i32
    %c0_i32_0 = arith.constant 0 : i32
    %c0_i32_1 = arith.constant 0 : i32
    %c0_i32_2 = arith.constant 0 : i32
    return %arg0, %c0_i32, %c0_i32_0, %c0_i32_1 : i32, i32, i32, i32
  }
  func.func @transform_6(%arg0: i32) -> (i32, i32, i32) {
    %c0_i32 = arith.constant 0 : i32
    %c0_i32_0 = arith.constant 0 : i32
    %c0_i32_1 = arith.constant 0 : i32
    return %arg0, %c0_i32, %c0_i32_0 : i32, i32, i32
  }
}

module attributes {stable_mosaic.version = 11 : i64} {
  func.func @_stage2_kernel(%arg0: i32, %arg1: memref<1x18x18x128xf32, #tpu.memory_space<vmem>>, %arg2: memref<2x128xf32, #tpu.memory_space<vmem>>, %arg3: memref<1152x128xbf16, #tpu.memory_space<vmem>>, %arg4: memref<1x16x16x128xf32, #tpu.memory_space<vmem>>, %arg5: memref<1x2x128xf32, #tpu.memory_space<vmem>>) attributes {dimension_semantics = [#tpu.dimension_semantics<parallel>], iteration_bounds = array<i64: 2>, scalar_prefetch = 0 : i64, scratch_operands = 0 : i64, tpu.core_type = #tpu.core_type<tc>, window_params = [{transform_indices = @transform_0, window_bounds = array<i64: 1, 18, 18, 128>}, {pipeline_mode = #tpu.pipeline_mode<synchronous>, transform_indices = @transform_1, window_bounds = array<i64: 2, 128>}, {pipeline_mode = #tpu.pipeline_mode<synchronous>, transform_indices = @transform_2, window_bounds = array<i64: 1152, 128>}, {transform_indices = @transform_3, window_bounds = array<i64: 1, 16, 16, 128>}, {transform_indices = @transform_4, window_bounds = array<i64: 1, 2, 128>}]} {
    %c0 = arith.constant 0 : index
    %c0_0 = arith.constant 0 : index
    %c0_1 = arith.constant 0 : index
    %c0_2 = arith.constant 0 : index
    %0 = vector.load %arg1[%c0, %c0_0, %c0_1, %c0_2] : memref<1x18x18x128xf32, #tpu.memory_space<vmem>>, vector<1x18x18x128xf32>
    %1 = vector.shape_cast %0 : vector<1x18x18x128xf32> to vector<18x18x128xf32>
    %c0_3 = arith.constant 0 : index
    %c0_4 = arith.constant 0 : index
    %2 = vector.load %arg2[%c0_3, %c0_4] : memref<2x128xf32, #tpu.memory_space<vmem>>, vector<2x128xf32>
    %c0_5 = arith.constant 0 : index
    %c0_6 = arith.constant 0 : index
    %3 = vector.load %arg3[%c0_5, %c0_6] : memref<1152x128xbf16, #tpu.memory_space<vmem>>, vector<1152x128xbf16>
    %4 = vector.extract_strided_slice %2 {offsets = [0, 0], sizes = [1, 128], strides = [1, 1]} : vector<2x128xf32> to vector<1x128xf32>
    %5 = vector.shape_cast %4 : vector<1x128xf32> to vector<1x1x128xf32>
    %6 = vector.extract_strided_slice %2 {offsets = [1, 0], sizes = [1, 128], strides = [1, 1]} : vector<2x128xf32> to vector<1x128xf32>
    %7 = vector.shape_cast %6 : vector<1x128xf32> to vector<1x1x128xf32>
    %8 = vector.broadcast %5 : vector<1x1x128xf32> to vector<18x18x128xf32>
    %9 = arith.mulf %1, %8 : vector<18x18x128xf32>
    %10 = vector.broadcast %7 : vector<1x1x128xf32> to vector<18x18x128xf32>
    %11 = arith.addf %9, %10 : vector<18x18x128xf32>
    %cst = arith.constant 0.000000e+00 : f32
    %12 = vector.broadcast %cst : f32 to vector<18x18x128xf32>
    %13 = arith.maximumf %11, %12 : vector<18x18x128xf32>
    %14 = tpu.iota {dimensions = array<i32: 0>} : vector<18x18x128xi32>
    %15 = tpu.iota {dimensions = array<i32: 1>} : vector<18x18x128xi32>
    %c1_i32 = arith.constant 1 : i32
    %16 = vector.broadcast %c1_i32 : i32 to vector<18x18x128xi32>
    %17 = arith.cmpi sge, %14, %16 : vector<18x18x128xi32>
    %c16_i32 = arith.constant 16 : i32
    %18 = vector.broadcast %c16_i32 : i32 to vector<18x18x128xi32>
    %19 = arith.cmpi sle, %14, %18 : vector<18x18x128xi32>
    %20 = arith.andi %17, %19 : vector<18x18x128xi1>
    %c1_i32_7 = arith.constant 1 : i32
    %21 = vector.broadcast %c1_i32_7 : i32 to vector<18x18x128xi32>
    %22 = arith.cmpi sge, %15, %21 : vector<18x18x128xi32>
    %23 = arith.andi %20, %22 : vector<18x18x128xi1>
    %c16_i32_8 = arith.constant 16 : i32
    %24 = vector.broadcast %c16_i32_8 : i32 to vector<18x18x128xi32>
    %25 = arith.cmpi sle, %15, %24 : vector<18x18x128xi32>
    %26 = arith.andi %23, %25 : vector<18x18x128xi1>
    %cst_9 = arith.constant 0.000000e+00 : f32
    %27 = vector.broadcast %cst_9 : f32 to vector<18x18x128xf32>
    %28 = arith.select %26, %13, %27 : vector<18x18x128xi1>, vector<18x18x128xf32>
    %29 = vector.extract_strided_slice %28 {offsets = [0, 0, 0], sizes = [18, 16, 128], strides = [1, 1, 1]} : vector<18x18x128xf32> to vector<18x16x128xf32>
    %30 = vector.extract_strided_slice %28 {offsets = [0, 1, 0], sizes = [18, 16, 128], strides = [1, 1, 1]} : vector<18x18x128xf32> to vector<18x16x128xf32>
    %31 = vector.extract_strided_slice %28 {offsets = [0, 2, 0], sizes = [18, 16, 128], strides = [1, 1, 1]} : vector<18x18x128xf32> to vector<18x16x128xf32>
    %32 = vector.extract_strided_slice %29 {offsets = [0, 0, 0], sizes = [16, 16, 128], strides = [1, 1, 1]} : vector<18x16x128xf32> to vector<16x16x128xf32>
    %33 = vector.shape_cast %32 : vector<16x16x128xf32> to vector<256x128xf32>
    %34 = vector.extract_strided_slice %30 {offsets = [0, 0, 0], sizes = [16, 16, 128], strides = [1, 1, 1]} : vector<18x16x128xf32> to vector<16x16x128xf32>
    %35 = vector.shape_cast %34 : vector<16x16x128xf32> to vector<256x128xf32>
    %36 = vector.extract_strided_slice %31 {offsets = [0, 0, 0], sizes = [16, 16, 128], strides = [1, 1, 1]} : vector<18x16x128xf32> to vector<16x16x128xf32>
    %37 = vector.shape_cast %36 : vector<16x16x128xf32> to vector<256x128xf32>
    %38 = vector.extract_strided_slice %29 {offsets = [1, 0, 0], sizes = [16, 16, 128], strides = [1, 1, 1]} : vector<18x16x128xf32> to vector<16x16x128xf32>
    %39 = vector.shape_cast %38 : vector<16x16x128xf32> to vector<256x128xf32>
    %40 = vector.extract_strided_slice %30 {offsets = [1, 0, 0], sizes = [16, 16, 128], strides = [1, 1, 1]} : vector<18x16x128xf32> to vector<16x16x128xf32>
    %41 = vector.shape_cast %40 : vector<16x16x128xf32> to vector<256x128xf32>
    %42 = vector.extract_strided_slice %31 {offsets = [1, 0, 0], sizes = [16, 16, 128], strides = [1, 1, 1]} : vector<18x16x128xf32> to vector<16x16x128xf32>
    %43 = vector.shape_cast %42 : vector<16x16x128xf32> to vector<256x128xf32>
    %44 = vector.extract_strided_slice %29 {offsets = [2, 0, 0], sizes = [16, 16, 128], strides = [1, 1, 1]} : vector<18x16x128xf32> to vector<16x16x128xf32>
    %45 = vector.shape_cast %44 : vector<16x16x128xf32> to vector<256x128xf32>
    %46 = vector.extract_strided_slice %30 {offsets = [2, 0, 0], sizes = [16, 16, 128], strides = [1, 1, 1]} : vector<18x16x128xf32> to vector<16x16x128xf32>
    %47 = vector.shape_cast %46 : vector<16x16x128xf32> to vector<256x128xf32>
    %48 = vector.extract_strided_slice %31 {offsets = [2, 0, 0], sizes = [16, 16, 128], strides = [1, 1, 1]} : vector<18x16x128xf32> to vector<16x16x128xf32>
    %49 = vector.shape_cast %48 : vector<16x16x128xf32> to vector<256x128xf32>
    %50 = tpu.concatenate %33, %35, %37, %39, %41, %43, %45, %47, %49 in 1 : vector<256x128xf32>, vector<256x128xf32>, vector<256x128xf32>, vector<256x128xf32>, vector<256x128xf32>, vector<256x128xf32>, vector<256x128xf32>, vector<256x128xf32>, vector<256x128xf32> -> vector<256x1152xf32>
    %51 = arith.truncf %50 : vector<256x1152xf32> to vector<256x1152xbf16>
    %cst_10 = arith.constant dense<0.000000e+00> : vector<256x128xf32>
    %52 = tpu.matmul %51, %3, %cst_10 {dimension_numbers = #tpu.dot_dimension_numbers<[1], [0], [0], [1], [0, 0, 1, 1], [], []>} : vector<256x1152xbf16>, vector<1152x128xbf16>, vector<256x128xf32> -> vector<256x128xf32>
    %53 = vector.shape_cast %52 : vector<256x128xf32> to vector<16x16x128xf32>
    %c0_11 = arith.constant 0 : index
    %c0_12 = arith.constant 0 : index
    %c0_13 = arith.constant 0 : index
    %c0_14 = arith.constant 0 : index
    %54 = vector.load %arg4[%c0_11, %c0_12, %c0_13, %c0_14] : memref<1x16x16x128xf32, #tpu.memory_space<vmem>>, vector<1x16x16x128xf32>
    %55 = vector.shape_cast %54 : vector<1x16x16x128xf32> to vector<16x16x128xf32>
    %56 = vector.shape_cast %53 : vector<16x16x128xf32> to vector<1x16x16x128xf32>
    tpu.vector_store %arg4[%c0_11, %c0_12, %c0_13, %c0_14], %56 {strides = array<i32>} : memref<1x16x16x128xf32, #tpu.memory_space<vmem>>, vector<1x16x16x128xf32>,
    %cst_15 = arith.constant dense<0.000000e+00> : vector<128xf32>
    %57 = vector.multi_reduction <add>, %52, %cst_15 [0] : vector<256x128xf32> to vector<128xf32>
    %58 = vector.shape_cast %57 : vector<128xf32> to vector<1x128xf32>
    %59 = arith.mulf %52, %52 : vector<256x128xf32>
    %cst_16 = arith.constant dense<0.000000e+00> : vector<128xf32>
    %60 = vector.multi_reduction <add>, %59, %cst_16 [0] : vector<256x128xf32> to vector<128xf32>
    %61 = vector.shape_cast %60 : vector<128xf32> to vector<1x128xf32>
    %62 = tpu.concatenate %58, %61 in 0 : vector<1x128xf32>, vector<1x128xf32> -> vector<2x128xf32>
    %c0_17 = arith.constant 0 : index
    %c0_18 = arith.constant 0 : index
    %c0_19 = arith.constant 0 : index
    %63 = vector.load %arg5[%c0_17, %c0_18, %c0_19] : memref<1x2x128xf32, #tpu.memory_space<vmem>>, vector<1x2x128xf32>
    %64 = vector.shape_cast %63 : vector<1x2x128xf32> to vector<2x128xf32>
    %65 = vector.shape_cast %62 : vector<2x128xf32> to vector<1x2x128xf32>
    tpu.vector_store %arg5[%c0_17, %c0_18, %c0_19], %65 {strides = array<i32>} : memref<1x2x128xf32, #tpu.memory_space<vmem>>, vector<1x2x128xf32>,
    return
  }
  func.func @transform_0(%arg0: i32) -> (i32, i32, i32, i32) {
    %c0_i32 = arith.constant 0 : i32
    %c0_i32_0 = arith.constant 0 : i32
    %c0_i32_1 = arith.constant 0 : i32
    %c0_i32_2 = arith.constant 0 : i32
    return %arg0, %c0_i32, %c0_i32_0, %c0_i32_1 : i32, i32, i32, i32
  }
  func.func @transform_1(%arg0: i32) -> (i32, i32) {
    %c0_i32 = arith.constant 0 : i32
    %c0_i32_0 = arith.constant 0 : i32
    %c0_i32_1 = arith.constant 0 : i32
    return %c0_i32, %c0_i32_0 : i32, i32
  }
  func.func @transform_2(%arg0: i32) -> (i32, i32) {
    %c0_i32 = arith.constant 0 : i32
    %c0_i32_0 = arith.constant 0 : i32
    %c0_i32_1 = arith.constant 0 : i32
    return %c0_i32, %c0_i32_0 : i32, i32
  }
  func.func @transform_3(%arg0: i32) -> (i32, i32, i32, i32) {
    %c0_i32 = arith.constant 0 : i32
    %c0_i32_0 = arith.constant 0 : i32
    %c0_i32_1 = arith.constant 0 : i32
    %c0_i32_2 = arith.constant 0 : i32
    return %arg0, %c0_i32, %c0_i32_0, %c0_i32_1 : i32, i32, i32, i32
  }
  func.func @transform_4(%arg0: i32) -> (i32, i32, i32) {
    %c0_i32 = arith.constant 0 : i32
    %c0_i32_0 = arith.constant 0 : i32
    %c0_i32_1 = arith.constant 0 : i32
    return %arg0, %c0_i32, %c0_i32_0 : i32, i32, i32
  }
}

module attributes {stable_mosaic.version = 11 : i64} {
  func.func @_stage3_kernel(%arg0: i32, %arg1: memref<1x16x16x128xf32, #tpu.memory_space<vmem>>, %arg2: memref<1x16x16x128xf32, #tpu.memory_space<vmem>>, %arg3: memref<2x128xf32, #tpu.memory_space<vmem>>, %arg4: memref<128x128xbf16, #tpu.memory_space<vmem>>, %arg5: memref<1x16x16x128xf32, #tpu.memory_space<vmem>>) attributes {dimension_semantics = [#tpu.dimension_semantics<parallel>], iteration_bounds = array<i64: 2>, scalar_prefetch = 0 : i64, scratch_operands = 0 : i64, tpu.core_type = #tpu.core_type<tc>, window_params = [{transform_indices = @transform_0, window_bounds = array<i64: 1, 16, 16, 128>}, {transform_indices = @transform_1, window_bounds = array<i64: 1, 16, 16, 128>}, {pipeline_mode = #tpu.pipeline_mode<synchronous>, transform_indices = @transform_2, window_bounds = array<i64: 2, 128>}, {pipeline_mode = #tpu.pipeline_mode<synchronous>, transform_indices = @transform_3, window_bounds = array<i64: 128, 128>}, {transform_indices = @transform_4, window_bounds = array<i64: 1, 16, 16, 128>}]} {
    %c0 = arith.constant 0 : index
    %c0_0 = arith.constant 0 : index
    %0 = vector.load %arg3[%c0, %c0_0] : memref<2x128xf32, #tpu.memory_space<vmem>>, vector<2x128xf32>
    %1 = vector.extract_strided_slice %0 {offsets = [0, 0], sizes = [1, 128], strides = [1, 1]} : vector<2x128xf32> to vector<1x128xf32>
    %2 = vector.shape_cast %1 : vector<1x128xf32> to vector<1x1x128xf32>
    %3 = vector.extract_strided_slice %0 {offsets = [1, 0], sizes = [1, 128], strides = [1, 1]} : vector<2x128xf32> to vector<1x128xf32>
    %4 = vector.shape_cast %3 : vector<1x128xf32> to vector<1x1x128xf32>
    %c0_1 = arith.constant 0 : index
    %c0_2 = arith.constant 0 : index
    %c0_3 = arith.constant 0 : index
    %c0_4 = arith.constant 0 : index
    %5 = vector.load %arg1[%c0_1, %c0_2, %c0_3, %c0_4] : memref<1x16x16x128xf32, #tpu.memory_space<vmem>>, vector<1x16x16x128xf32>
    %6 = vector.shape_cast %5 : vector<1x16x16x128xf32> to vector<16x16x128xf32>
    %7 = vector.broadcast %2 : vector<1x1x128xf32> to vector<16x16x128xf32>
    %8 = arith.mulf %6, %7 : vector<16x16x128xf32>
    %9 = vector.broadcast %4 : vector<1x1x128xf32> to vector<16x16x128xf32>
    %10 = arith.addf %8, %9 : vector<16x16x128xf32>
    %cst = arith.constant 0.000000e+00 : f32
    %11 = vector.broadcast %cst : f32 to vector<16x16x128xf32>
    %12 = arith.maximumf %10, %11 : vector<16x16x128xf32>
    %13 = vector.shape_cast %12 : vector<16x16x128xf32> to vector<256x128xf32>
    %14 = arith.truncf %13 : vector<256x128xf32> to vector<256x128xbf16>
    %c0_5 = arith.constant 0 : index
    %c0_6 = arith.constant 0 : index
    %15 = vector.load %arg4[%c0_5, %c0_6] : memref<128x128xbf16, #tpu.memory_space<vmem>>, vector<128x128xbf16>
    %cst_7 = arith.constant dense<0.000000e+00> : vector<256x128xf32>
    %16 = tpu.matmul %14, %15, %cst_7 {dimension_numbers = #tpu.dot_dimension_numbers<[1], [0], [0], [1], [0, 0, 1, 1], [], []>} : vector<256x128xbf16>, vector<128x128xbf16>, vector<256x128xf32> -> vector<256x128xf32>
    %17 = vector.shape_cast %16 : vector<256x128xf32> to vector<16x16x128xf32>
    %c0_8 = arith.constant 0 : index
    %c0_9 = arith.constant 0 : index
    %c0_10 = arith.constant 0 : index
    %c0_11 = arith.constant 0 : index
    %18 = vector.load %arg2[%c0_8, %c0_9, %c0_10, %c0_11] : memref<1x16x16x128xf32, #tpu.memory_space<vmem>>, vector<1x16x16x128xf32>
    %19 = vector.shape_cast %18 : vector<1x16x16x128xf32> to vector<16x16x128xf32>
    %20 = arith.addf %17, %19 : vector<16x16x128xf32>
    %c0_12 = arith.constant 0 : index
    %c0_13 = arith.constant 0 : index
    %c0_14 = arith.constant 0 : index
    %c0_15 = arith.constant 0 : index
    %21 = vector.load %arg5[%c0_12, %c0_13, %c0_14, %c0_15] : memref<1x16x16x128xf32, #tpu.memory_space<vmem>>, vector<1x16x16x128xf32>
    %22 = vector.shape_cast %21 : vector<1x16x16x128xf32> to vector<16x16x128xf32>
    %23 = vector.shape_cast %20 : vector<16x16x128xf32> to vector<1x16x16x128xf32>
    tpu.vector_store %arg5[%c0_12, %c0_13, %c0_14, %c0_15], %23 {strides = array<i32>} : memref<1x16x16x128xf32, #tpu.memory_space<vmem>>, vector<1x16x16x128xf32>,
    return
  }
  func.func @transform_0(%arg0: i32) -> (i32, i32, i32, i32) {
    %c0_i32 = arith.constant 0 : i32
    %c0_i32_0 = arith.constant 0 : i32
    %c0_i32_1 = arith.constant 0 : i32
    %c0_i32_2 = arith.constant 0 : i32
    return %arg0, %c0_i32, %c0_i32_0, %c0_i32_1 : i32, i32, i32, i32
  }
  func.func @transform_1(%arg0: i32) -> (i32, i32, i32, i32) {
    %c0_i32 = arith.constant 0 : i32
    %c0_i32_0 = arith.constant 0 : i32
    %c0_i32_1 = arith.constant 0 : i32
    %c0_i32_2 = arith.constant 0 : i32
    return %arg0, %c0_i32, %c0_i32_0, %c0_i32_1 : i32, i32, i32, i32
  }
  func.func @transform_2(%arg0: i32) -> (i32, i32) {
    %c0_i32 = arith.constant 0 : i32
    %c0_i32_0 = arith.constant 0 : i32
    %c0_i32_1 = arith.constant 0 : i32
    return %c0_i32, %c0_i32_0 : i32, i32
  }
  func.func @transform_3(%arg0: i32) -> (i32, i32) {
    %c0_i32 = arith.constant 0 : i32
    %c0_i32_0 = arith.constant 0 : i32
    %c0_i32_1 = arith.constant 0 : i32
    return %c0_i32, %c0_i32_0 : i32, i32
  }
  func.func @transform_4(%arg0: i32) -> (i32, i32, i32, i32) {
    %c0_i32 = arith.constant 0 : i32
    %c0_i32_0 = arith.constant 0 : i32
    %c0_i32_1 = arith.constant 0 : i32
    %c0_i32_2 = arith.constant 0 : i32
    return %arg0, %c0_i32, %c0_i32_0, %c0_i32_1 : i32, i32, i32, i32
  }
}

</mosaic_0001>

<bundles_post_ra>
// kernel: bottleneck_pallas.5
= control target key start
LH: loop header
LB: loop body
LE: loop exit
PB: predicated region body
PF: predicated region fallthrough
CT: control target
= control target key end

     0   :  { %9 = vsyncpa [#allocation3], 0  ;;  %s1345_s0 = inlined_call_operand.vmem [shape: f32[2,16,16,128], index: 0, kind: input, shape index: {}]   ;;  %s1346_s1 = inlined_call_operand.vmem [shape: f32[2,16,16,128], index: 1, kind: input, shape index: {}]   ;;  %s1347_s2 = inlined_call_operand.vmem [shape: f32[2,128], index: 2, kind: input, shape index: {}]   ;;  %s1348_s3 = inlined_call_operand.vmem [shape: bf16[128,128], index: 3, kind: input, shape index: {}]   ;;  %s1349_s4 = inlined_call_operand.hbm [shape: f32[2,16,16,128], index: 4, kind: output, shape index: {}]  }
   0x1   :  { %11 = vsyncpa [#allocation3 + $0x1], 0  ;;  %s1031_s15 = smov 0   ;;  %s1033_s16 = smov 0  }
   0x2   :  { %s1035_s17 = smov 0   ;;  %s1037_s18 = smov 0  }
   0x3 LB: > { %s1052_s19 = sadd.s32 4294967295, %s1001_s18   ;;  %s779_s20 = sadd.s32 4294967294, %s1001_s18   ;;  %s1001_s18 = sphi %s1037_s18, %s1355_s18   ;;  %s997_s17 = sphi %s1035_s17, %s1354_s17   ;;  %s993_s16 = sphi %s1033_s16, %s1353_s16   ;;  %s989_s15 = sphi %s1031_s15, %s1352_s15  }
   0x4   : > { %s1056_s21 = sadd.s32 1, %s1001_s18   ;;  %s118_s22 = sadd.s32 1, %s997_s17 }
   0x5   : > { %s115_s23 = ssub.s32 %s1001_s18, %s1056_s21  ;;  %p128_p0 = scmp.ne.s32.totalorder %s997_s17, %s993_s16 }
   0x6   : > { %p116_p1 = scmp.eq.s32.totalorder %s115_s23, 0  ;;  %p129_p2 = scmp.eq.s32.totalorder %s1052_s19, 1 }
   0x7   : > { %p134_p3 = scmp.ne.s32.totalorder %s993_s16, %s989_s15  ;;  %p135_p4 = scmp.eq.s32.totalorder %s779_s20, 1 }
   0x8   : > { %s1067_s24 = scalar_select %p116_p1, %s997_s17, %s118_s22  }
   0x9   : > { %p1069_p5 = por %p129_p2, %p128_p0  ;;  %p1073_p6 = por %p135_p4, %p134_p3 }
   0xa   : > { %p782_p7 = scmp.ge.s32.totalorder %s1001_s18, 1  ;;  %p175_p8 = scmp.lt.s32.totalorder %s1001_s18, 3 }
   0xc   : > { %p176_p9 = pnand %p782_p7, %p175_p8 }
   0xd   : > { %p206_p10 = scmp.lt.s32.totalorder (!%p176_p9), %s1052_s19, 1  ;;  %s203_s9 = sand.u32 (!%p176_p9), 1, %s993_s16  }
   0xe   : > { %179 = sbr.rel (%p176_p9) target bundleno = 291 (0x123), region = 36  ;;  %s783_s13 = sshll.u32 (!%p176_p9), %s203_s9, 8 }
   0xf   : > { %s1003_s28 = smov (!%p176_p9), [#allocation2]  }
  0x10   : > { %s945_s29 = sshll.u32 (!%p176_p9), %s1003_s28, 4  ;;  %s946_s29 = int_to_ptr.vmem [resolvable:$false] %s945_s29 }
  0x11   : > { %s947_s30 = scalar_lea.vmem (!%p176_p9), %s946_s29, 8192 }
  0x13   : > { %v933_v0 = vld [vmem:[%s1348_s3 + $0x38] sm:$0xff]   ;;  %v250_v1 = vlaneseq  ;;  %v934_v2 = vld [vmem:[%s1348_s3 + $0x30] sm:$0xff]   ;;  %s1087_s5 = scalar_select %p206_p10, %s1052_s19, 1  ;;  %v935_v4 = vld [vmem:[%s1348_s3 + $0x28] sm:$0xff]  }
  0x14   : > { %828 = vmatprep.subr.bf16.mxu0 %v933_v0  ;;  %876 = vmatprep.subr.bf16.mxu1 %v933_v0  ;;  %v936_v7 = vld [vmem:[%s1348_s3 + $0x20] sm:$0xff]   ;;  %v937_v18 = vld [vmem:[%s1348_s3 + $0x18] sm:$0xff]   ;;  %v938_v33 = vld [vmem:[%s1348_s3 + $0x10] sm:$0xff]  }
  0x15   : > { %829 = vmatpush3.bf16.msra.mxu0 %v933_v0  ;;  %884 = vmatpush3.bf16.msra.mxu1 %v933_v0  ;;  %v251_v3 = vshrl.u32 %v250_v1, 7  ;;  %s801_s8 = sshll.u32 %s1087_s5, 8  ;;  %v217_v8 = vld [vmem:[%s1347_s2] sm:$0x3]  ;;  %v939_v47 = vld [vmem:[%s1348_s3 + $0x8] sm:$0xff]   ;;  %s1234_s5 = scalar_lea.vmem [#allocation2], %s783_s13 }
  0x16   : > { %830 = vmatprep.subr.bf16.mxu0 %v934_v2  ;;  %877 = vmatprep.subr.bf16.mxu1 %v934_v2  ;;  %s1098_s11 = scalar_lea.vmem %s1345_s0, %s801_s8  ;;  %v940_v1 = vld [vmem:[%s1348_s3] sm:$0xff]   ;;  %s1224_s12 = scalar_lea.vmem %s1346_s1, %s801_s8 }
  0x17   : > { %v252_v5 = vsub.s32 0, %v251_v3  ;;  %v288_v6 = vsub.s32 1, %v251_v3  ;;  %v218_v9 = vld [vmem:[%s1098_s11] sm:$0xff]  ;;  %v219_v10 = vld [vmem:[%s1098_s11 + $0x8] sm:$0xff]  ;;  %v220_v23 = vld [vmem:[%s1098_s11 + $0x10] sm:$0xff]  ;;  %s803_s8 = sshll.u32 %s1052_s19, 12 }
  0x18   : > { %v234_v13 = vld [vmem:[%s1098_s11 + $0x80] sm:$0xff]  ;;  %v235_v14 = vld [vmem:[%s1098_s11 + $0x88] sm:$0xff]  ;;  %v221_v25 = vld [vmem:[%s1098_s11 + $0x18] sm:$0xff]  ;;  %s705_s14 = sshll.u32 %s1234_s5, 4  ;;  %s1295_s23 = scalar_lea.hbm %s1349_s4, %s803_s8  ;;  %s1297_s14 = int_to_ptr.vmem [resolvable:$true] %s705_s14 }
  0x19   : > { %831 = vmatpush3.bf16.msra.mxu0 %v934_v2  ;;  %885 = vmatpush3.bf16.msra.mxu1 %v934_v2  ;;  %v1108_v11 = vrot.slane %v217_v8, %v252_v5  ;;  %v1110_v12 = vrot.slane %v217_v8, %v288_v6  ;;  %v236_v26 = vld [vmem:[%s1098_s11 + $0x90] sm:$0xff]  ;;  %v237_v27 = vld [vmem:[%s1098_s11 + $0x98] sm:$0xff]  ;;  %v222_v31 = vld [vmem:[%s1098_s11 + $0x20] sm:$0xff]  ;;  %s1305_s19 = scalar_lea.sflag [#allocation3], %s203_s9  ;;  %s941_s27 = scalar_lea.vmem %s1297_s14, 4096 }
  0x1a   : > { %832 = vmatprep.subr.bf16.mxu0 %v935_v4  ;;  %878 = vmatprep.subr.bf16.mxu1 %v935_v4  ;;  %v223_v32 = vld [vmem:[%s1098_s11 + $0x28] sm:$0xff]  ;;  %v238_v36 = vld [vmem:[%s1098_s11 + $0xa0] sm:$0xff]  ;;  %v224_v49 = vld [vmem:[%s1098_s11 + $0x30] sm:$0xff]  ;;  %p942_p11 = scmp.ne.s32.totalorder %s1297_s14, %s941_s27  ;;  %p948_p0 = scmp.lt.s32.totalorder %s1297_s14, %s946_s29 }
  0x1b   : > { %v254_v15 = vmul.f32 %v1108_v11, %v218_v9  ;;  %v255_v16 = vmul.f32 %v1108_v11, %v219_v10  ;;  %v270_v17 = vmul.f32 %v1108_v11, %v234_v13  ;;  %v271_v19 = vmul.f32 %v1108_v11, %v235_v14  ;;  %v239_v37 = vld [vmem:[%s1098_s11 + $0xa8] sm:$0xff]  ;;  %v225_v53 = vld [vmem:[%s1098_s11 + $0x38] sm:$0xff]  ;;  %v240_v54 = vld [vmem:[%s1098_s11 + $0xb0] sm:$0xff]  ;;  %p949_p1 = scmp.lt.s32.totalorder %s947_s30, %s941_s27 }
  0x1c   : > { %v256_v35 = vmul.f32 %v1108_v11, %v220_v23  ;;  %v257_v39 = vmul.f32 %v1108_v11, %v221_v25  ;;  %v272_v40 = vmul.f32 %v1108_v11, %v236_v26  ;;  %v273_v41 = vmul.f32 %v1108_v11, %v237_v27  ;;  %v241_v55 = vld [vmem:[%s1098_s11 + $0xb8] sm:$0xff]  ;;  %v226_v58 = vld [vmem:[%s1098_s11 + $0x40] sm:$0xff]  ;;  %v227_v62 = vld [vmem:[%s1098_s11 + $0x48] sm:$0xff]  ;;  %p943_p12 = pnand %p942_p11, %p1069_p5 }
  0x1d   : > { %833 = vmatpush3.bf16.msra.mxu0 %v935_v4  ;;  %886 = vmatpush3.bf16.msra.mxu1 %v935_v4  ;;  %v290_v20 = vadd.f32 %v1110_v12, %v254_v15  ;;  %v291_v21 = vadd.f32 %v1110_v12, %v255_v16  ;;  %v306_v22 = vadd.f32 %v1110_v12, %v270_v17  ;;  %v242_v63 = vld [vmem:[%s1098_s11 + $0xc0] sm:$0xff]  ;;  %v243_v0 = vld [vmem:[%s1098_s11 + $0xc8] sm:$0xff]  ;;  %v228_v25 = vld [vmem:[%s1098_s11 + $0x50] sm:$0xff]  ;;  %p950_p2 = por %p949_p1, %p948_p0 }
  0x1e   : > { %834 = vmatprep.subr.bf16.mxu0 %v936_v7  ;;  %879 = vmatprep.subr.bf16.mxu1 %v936_v7  ;;  %v307_v24 = vadd.f32 %v1110_v12, %v271_v19  ;;  %v258_v43 = vmul.f32 %v1108_v11, %v222_v31  ;;  %v259_v44 = vmul.f32 %v1108_v11, %v223_v32  ;;  %v244_v31 = vld [vmem:[%s1098_s11 + $0xd0] sm:$0xff]  ;;  %v245_v32 = vld [vmem:[%s1098_s11 + $0xd8] sm:$0xff]  ;;  %p944_p13 = pneg %p943_p12 }
  0x1f   : > { %v322_v28 = vmax.f32 %v290_v20, 0.0  ;;  %v323_v29 = vmax.f32 %v291_v21, 0.0  ;;  %v338_v30 = vmax.f32 %v306_v22, 0.0  ;;  %v274_v45 = vmul.f32 %v1108_v11, %v238_v36  ;;  %v230_v36 = vld [vmem:[%s1098_s11 + $0x60] sm:$0xff] }
  0x20   : > { %v339_v34 = vmax.f32 %v307_v24, 0.0  ;;  %v275_v46 = vmul.f32 %v1108_v11, %v239_v37  ;;  %v292_v48 = vadd.f32 %v1110_v12, %v256_v35  ;;  %v293_v50 = vadd.f32 %v1110_v12, %v257_v39  ;;  %p951_p3 = pnand %p950_p2, %p944_p13 }
  0x21   : > { %835 = vmatpush3.bf16.msra.mxu0 %v936_v7  ;;  %887 = vmatpush3.bf16.msra.mxu1 %v936_v7  ;;  %v354_v38 = vpack.c.bf16 %v323_v29, %v322_v28  ;;  %v308_v51 = vadd.f32 %v1110_v12, %v272_v40  ;;  %v309_v52 = vadd.f32 %v1110_v12, %v273_v41  ;;  %v231_v41 = vld [vmem:[%s1098_s11 + $0x68] sm:$0xff] }
  0x22   : > { %836 = vmatprep.subr.bf16.mxu0 %v937_v18  ;;  %880 = vmatprep.subr.bf16.mxu1 %v937_v18  ;;  %v362_v42 = vpack.c.bf16 %v339_v34, %v338_v30  ;;  %v294_v56 = vadd.f32 %v1110_v12, %v258_v43  ;;  %v295_v57 = vadd.f32 %v1110_v12, %v259_v44  ;;  %v324_v2 = vmax.f32 %v292_v48, 0.0  ;;  %v229_v30 = vld [vmem:[%s1098_s11 + $0x58] sm:$0xff]  ;;  %v247_v43 = vld [vmem:[%s1098_s11 + $0xe8] sm:$0xff] }
  0x23   : > { %844 = vmatprep.mubr.bf16.mxu0 %v354_v38  ;;  %v310_v59 = vadd.f32 %v1110_v12, %v274_v45  ;;  %v311_v60 = vadd.f32 %v1110_v12, %v275_v46  ;;  %v260_v61 = vmul.f32 %v1108_v11, %v224_v49  ;;  %v261_v3 = vmul.f32 %v1108_v11, %v225_v53 }
  0x24   : > { %860 = vmatprep.mubr.bf16.mxu1 %v362_v42  ;;  %v276_v4 = vmul.f32 %v1108_v11, %v240_v54  ;;  %v277_v5 = vmul.f32 %v1108_v11, %v241_v55  ;;  %v325_v6 = vmax.f32 %v293_v50, 0.0  ;;  %v340_v7 = vmax.f32 %v308_v51, 0.0  ;;  %v246_v42 = vld [vmem:[%s1098_s11 + $0xe0] sm:$0xff] }
  0x25   : > { %837 = vmatpush3.bf16.msra.mxu0 %v937_v18  ;;  %888 = vmatpush3.bf16.msra.mxu1 %v937_v18  ;;  %v341_v8 = vmax.f32 %v309_v52, 0.0  ;;  %v262_v9 = vmul.f32 %v1108_v11, %v226_v58  ;;  %v326_v10 = vmax.f32 %v294_v56, 0.0  ;;  %v263_v13 = vmul.f32 %v1108_v11, %v227_v62 }
  0x26   : > { %838 = vmatprep.subr.bf16.mxu0 %v938_v33  ;;  %881 = vmatprep.subr.bf16.mxu1 %v938_v33  ;;  %v278_v14 = vmul.f32 %v1108_v11, %v242_v63  ;;  %v279_v15 = vmul.f32 %v1108_v11, %v243_v0  ;;  %v327_v16 = vmax.f32 %v295_v57, 0.0  ;;  %v342_v17 = vmax.f32 %v310_v59, 0.0  ;;  %v232_v63 = vld [vmem:[%s1098_s11 + $0x70] sm:$0xff] }
  0x27   : > { %v343_v18 = vmax.f32 %v311_v60, 0.0  ;;  %v296_v19 = vadd.f32 %v1110_v12, %v260_v61  ;;  %v297_v20 = vadd.f32 %v1110_v12, %v261_v3  ;;  %v312_v21 = vadd.f32 %v1110_v12, %v276_v4  ;;  %v233_v4 = vld [vmem:[%s1098_s11 + $0x78] sm:$0xff] }
  0x28   : > { %v313_v22 = vadd.f32 %v1110_v12, %v277_v5  ;;  %v355_v23 = vpack.c.bf16 %v325_v6, %v324_v2  ;;  %v298_v24 = vadd.f32 %v1110_v12, %v262_v9  ;;  %v363_v26 = vpack.c.bf16 %v341_v8, %v340_v7  ;;  %v248_v5 = vld [vmem:[%s1098_s11 + $0xf0] sm:$0xff]  ;;  %v249_v6 = vld [vmem:[%s1098_s11 + $0xf8] sm:$0xff] }
  0x29   : > { %839 = vmatpush3.bf16.msra.mxu0 %v938_v33  ;;  %889 = vmatpush3.bf16.msra.mxu1 %v938_v33  ;;  %v299_v27 = vadd.f32 %v1110_v12, %v263_v13  ;;  %v314_v28 = vadd.f32 %v1110_v12, %v278_v14  ;;  %v315_v29 = vadd.f32 %v1110_v12, %v279_v15  ;;  %v328_v35 = vmax.f32 %v296_v19, 0.0 }
  0x2a   : > { %840 = vmatprep.subr.bf16.mxu0 %v939_v47  ;;  %882 = vmatprep.subr.bf16.mxu1 %v939_v47  ;;  %v356_v33 = vpack.c.bf16 %v327_v16, %v326_v10  ;;  %v364_v34 = vpack.c.bf16 %v343_v18, %v342_v17  ;;  %v329_v37 = vmax.f32 %v297_v20, 0.0  ;;  %v344_v38 = vmax.f32 %v312_v21, 0.0 }
  0x2b   : > { %v345_v39 = vmax.f32 %v313_v22, 0.0  ;;  %v264_v40 = vmul.f32 %v1108_v11, %v228_v25  ;;  %v330_v44 = vmax.f32 %v298_v24, 0.0  ;;  %v265_v45 = vmul.f32 %v1108_v11, %v229_v30 }
  0x2c   : > { %v280_v46 = vmul.f32 %v1108_v11, %v244_v31  ;;  %v331_v48 = vmax.f32 %v299_v27, 0.0  ;;  %v346_v49 = vmax.f32 %v314_v28, 0.0  ;;  %v347_v50 = vmax.f32 %v315_v29, 0.0 }
  0x2d   : > { %841 = vmatpush3.bf16.msra.mxu0 %v939_v47  ;;  %890 = vmatpush3.bf16.msra.mxu1 %v939_v47  ;;  %v281_v47 = vmul.f32 %v1108_v11, %v245_v32  ;;  %v266_v51 = vmul.f32 %v1108_v11, %v230_v36  ;;  %v267_v52 = vmul.f32 %v1108_v11, %v231_v41 }
  0x2e   : > { %842 = vmatprep.subr.bf16.mxu0 %v940_v1  ;;  %883 = vmatprep.subr.bf16.mxu1 %v940_v1  ;;  %v282_v53 = vmul.f32 %v1108_v11, %v246_v42  ;;  %v283_v54 = vmul.f32 %v1108_v11, %v247_v43  ;;  %v300_v55 = vadd.f32 %v1110_v12, %v264_v40  ;;  %v598_v43 = vld [vmem:[%s1224_s12 + $0x18] sm:$0xff] }
  0x2f   : > { %v301_v56 = vadd.f32 %v1110_v12, %v265_v45  ;;  %v316_v57 = vadd.f32 %v1110_v12, %v280_v46  ;;  %v317_v58 = vadd.f32 %v1110_v12, %v281_v47  ;;  %v357_v59 = vpack.c.bf16 %v329_v37, %v328_v35  ;;  %v595_v37 = vld [vmem:[%s1224_s12] sm:$0xff] }
  0x30   : > { %v365_v60 = vpack.c.bf16 %v345_v39, %v344_v38  ;;  %v358_v61 = vpack.c.bf16 %v331_v48, %v330_v44  ;;  %v366_v62 = vpack.c.bf16 %v347_v50, %v346_v49  ;;  %v302_v0 = vadd.f32 %v1110_v12, %v266_v51  ;;  %v611_v38 = vld [vmem:[%s1224_s12 + $0x80] sm:$0xff]  ;;  %v614_v44 = vld [vmem:[%s1224_s12 + $0x98] sm:$0xff]  ;;  %v596_v49 = vld [vmem:[%s1224_s12 + $0x8] sm:$0xff] }
  0x31   : > { %843 = vmatpush3.bf16.msra.mxu0 %v940_v1  ;;  %891 = vmatpush3.bf16.msra.mxu1 %v940_v1  ;;  %v303_v1 = vadd.f32 %v1110_v12, %v267_v52  ;;  %v318_v2 = vadd.f32 %v1110_v12, %v282_v53  ;;  %v319_v3 = vadd.f32 %v1110_v12, %v283_v54  ;;  %v332_v7 = vmax.f32 %v300_v55, 0.0  ;;  %v612_v50 = vld [vmem:[%s1224_s12 + $0x88] sm:$0xff]  ;;  %v601_v55 = vld [vmem:[%s1224_s12 + $0x30] sm:$0xff] }
  0x32   : > { %v333_v8 = vmax.f32 %v301_v56, 0.0  ;;  %v348_v9 = vmax.f32 %v316_v57, 0.0  ;;  %v349_v10 = vmax.f32 %v317_v58, 0.0  ;;  %v268_v13 = vmul.f32 %v1108_v11, %v232_v63  ;;  %v617_v56 = vld [vmem:[%s1224_s12 + $0xb0] sm:$0xff] }
  0x33   : > { %v269_v14 = vmul.f32 %v1108_v11, %v233_v4  ;;  %v284_v15 = vmul.f32 %v1108_v11, %v248_v5  ;;  %v285_v16 = vmul.f32 %v1108_v11, %v249_v6  ;;  %v334_v17 = vmax.f32 %v302_v0, 0.0  ;;  %v618_v4 = vld [vmem:[%s1224_s12 + $0xb8] sm:$0xff] }
  0x34   : > { %845 = vmatmul.mubr.bf16.vlgmr.msra.gmra.mxu0 %v355_v23  ;;  %861 = vmatmul.mubr.bf16.vlgmr.msra.gmra.mxu1 %v363_v26  ;;  %v335_v18 = vmax.f32 %v303_v1, 0.0  ;;  %v350_v19 = vmax.f32 %v318_v2, 0.0  ;;  %v351_v20 = vmax.f32 %v319_v3, 0.0  ;;  %v359_v21 = vpack.c.bf16 %v333_v8, %v332_v7  ;;  %v602_v3 = vld [vmem:[%s1224_s12 + $0x38] sm:$0xff] }
  0x35   : > { %848 = vmatprep.mubr.bf16.mxu0 %v356_v33  ;;  %864 = vmatprep.mubr.bf16.mxu1 %v364_v34  ;;  %v367_v22 = vpack.c.bf16 %v349_v10, %v348_v9  ;;  %v304_v23 = vadd.f32 %v1110_v12, %v268_v13  ;;  %v305_v24 = vadd.f32 %v1110_v12, %v269_v14  ;;  %v613_v34 = vld [vmem:[%s1224_s12 + $0x90] sm:$0xff]  ;;  %v600_v9 = vld [vmem:[%s1224_s12 + $0x28] sm:$0xff] }
  0x36   : > { %v320_v25 = vadd.f32 %v1110_v12, %v284_v15  ;;  %v321_v26 = vadd.f32 %v1110_v12, %v285_v16  ;;  %v360_v27 = vpack.c.bf16 %v335_v18, %v334_v17  ;;  %v368_v11 = vpack.c.bf16 %v351_v20, %v350_v19  ;;  %v597_v12 = vld [vmem:[%s1224_s12 + $0x10] sm:$0xff]  ;;  %v616_v10 = vld [vmem:[%s1224_s12 + $0xa8] sm:$0xff] }
  0x37   : > { %v336_v28 = vmax.f32 %v304_v23, 0.0  ;;  %v337_v29 = vmax.f32 %v305_v24, 0.0  ;;  %v605_v17 = vld [vmem:[%s1224_s12 + $0x50] sm:$0xff]  ;;  %v603_v23 = vld [vmem:[%s1224_s12 + $0x40] sm:$0xff] }
  0x38   : > { %v352_v30 = vmax.f32 %v320_v25, 0.0  ;;  %v353_v31 = vmax.f32 %v321_v26, 0.0  ;;  %v621_v18 = vld [vmem:[%s1224_s12 + $0xd0] sm:$0xff]  ;;  %v619_v24 = vld [vmem:[%s1224_s12 + $0xc0] sm:$0xff] }
  0x39   : > { %v361_v32 = vpack.c.bf16 %v337_v29, %v336_v28  ;;  %v606_v28 = vld [vmem:[%s1224_s12 + $0x58] sm:$0xff] }
  0x3a   : > { %v369_v33 = vpack.c.bf16 %v353_v31, %v352_v30  ;;  %v622_v29 = vld [vmem:[%s1224_s12 + $0xd8] sm:$0xff] }
  0x3c   : > { %849 = vmatmul.mubr.bf16.gmra.mxu0 %v357_v59  ;;  %865 = vmatmul.mubr.bf16.gmra.mxu1 %v365_v60 }
  0x3d   : > { %852 = vmatprep.mubr.bf16.mxu0 %v358_v61  ;;  %868 = vmatprep.mubr.bf16.mxu1 %v366_v62  ;;  %v599_v61 = vld [vmem:[%s1224_s12 + $0x20] sm:$0xff] }
  0x3e   : > { %v615_v62 = vld [vmem:[%s1224_s12 + $0xa0] sm:$0xff] }
  0x44   : > { %853 = vmatmul.mubr.bf16.gmra.mxu0 %v359_v21  ;;  %869 = vmatmul.mubr.bf16.gmra.mxu1 %v367_v22 }
  0x45   : > { %856 = vmatprep.mubr.bf16.mxu0 %v360_v27  ;;  %872 = vmatprep.mubr.bf16.mxu1 %v368_v11 }
  0x4c   : > { %857 = vmatmul.mubr.bf16.gmra.mxu0 %v361_v32  ;;  %873 = vmatmul.mubr.bf16.gmra.mxu1 %v369_v33 }
  0xf4   : > { %v846_v35 = vpop.f32.mrf.mxu0  ;;  %v862_v36 = vpop.f32.mrf.mxu1 }
  0xf5   : > { %v629_v39 = vadd.f32 %v846_v35, %v597_v12  ;;  %v645_v40 = vadd.f32 %v862_v36, %v613_v34  ;;  %v604_v12 = vld [vmem:[%s1224_s12 + $0x48] sm:$0xff] }
  0xf6   : > { %v468_v41 = vpop.f32.mrf.mxu0  ;;  %v532_v42 = vpop.f32.mrf.mxu1  ;;  %v620_v34 = vld [vmem:[%s1224_s12 + $0xc8] sm:$0xff] }
  0xf7   : > { %661 = vst [vmem:[%s1234_s5 + $0x10] sm:$0xff] %v629_v39  ;;  %677 = vst [vmem:[%s1234_s5 + $0x90] sm:$0xff] %v645_v40  ;;  %v627_v45 = vadd.f32 %v595_v37, %v468_v41  ;;  %v643_v46 = vadd.f32 %v611_v38, %v532_v42  ;;  %v609_v39 = vld [vmem:[%s1224_s12 + $0x70] sm:$0xff] }
  0xf8   : > { %v847_v47 = vpop.f32.mrf.mxu0  ;;  %v863_v48 = vpop.f32.mrf.mxu1  ;;  %v625_v40 = vld [vmem:[%s1224_s12 + $0xf0] sm:$0xff] }
  0xf9   : > { %659 = vst [vmem:[%s1234_s5] sm:$0xff] %v627_v45  ;;  %675 = vst [vmem:[%s1234_s5 + $0x80] sm:$0xff] %v643_v46  ;;  %v630_v51 = vadd.f32 %v847_v47, %v598_v43  ;;  %v646_v52 = vadd.f32 %v863_v48, %v614_v44  ;;  %v607_v45 = vld [vmem:[%s1224_s12 + $0x60] sm:$0xff] }
  0xfa   : > { %v471_v53 = vpop.f32.mrf.mxu0  ;;  %v535_v54 = vpop.f32.mrf.mxu1  ;;  %v623_v46 = vld [vmem:[%s1224_s12 + $0xe0] sm:$0xff] }
  0xfb   : > { %662 = vst [vmem:[%s1234_s5 + $0x18] sm:$0xff] %v630_v51  ;;  %678 = vst [vmem:[%s1234_s5 + $0x98] sm:$0xff] %v646_v52  ;;  %v628_v57 = vadd.f32 %v596_v49, %v471_v53  ;;  %v644_v58 = vadd.f32 %v612_v50, %v535_v54  ;;  %v610_v51 = vld [vmem:[%s1224_s12 + $0x78] sm:$0xff] }
  0xfc   : > { %v850_v59 = vpop.f32.mrf.mxu0  ;;  %v866_v60 = vpop.f32.mrf.mxu1  ;;  %v626_v52 = vld [vmem:[%s1224_s12 + $0xf8] sm:$0xff] }
  0xfd   : > { %660 = vst [vmem:[%s1234_s5 + $0x8] sm:$0xff] %v628_v57  ;;  %676 = vst [vmem:[%s1234_s5 + $0x88] sm:$0xff] %v644_v58  ;;  %v633_v63 = vadd.f32 %v850_v59, %v601_v55  ;;  %v649_v0 = vadd.f32 %v866_v60, %v617_v56  ;;  %v608_v57 = vld [vmem:[%s1224_s12 + $0x68] sm:$0xff] }
  0xfe   : > { %v484_v1 = vpop.f32.mrf.mxu0  ;;  %v548_v2 = vpop.f32.mrf.mxu1  ;;  %v624_v58 = vld [vmem:[%s1224_s12 + $0xe8] sm:$0xff] }
  0xff   : > { %665 = vst [vmem:[%s1234_s5 + $0x30] sm:$0xff] %v633_v63  ;;  %681 = vst [vmem:[%s1234_s5 + $0xb0] sm:$0xff] %v649_v0  ;;  %v631_v5 = vadd.f32 %v599_v61, %v484_v1  ;;  %v647_v6 = vadd.f32 %v615_v62, %v548_v2 }
 0x100   : > { %v851_v7 = vpop.f32.mrf.mxu0  ;;  %v867_v8 = vpop.f32.mrf.mxu1 }
 0x101   : > { %663 = vst [vmem:[%s1234_s5 + $0x20] sm:$0xff] %v631_v5  ;;  %679 = vst [vmem:[%s1234_s5 + $0xa0] sm:$0xff] %v647_v6  ;;  %v634_v13 = vadd.f32 %v851_v7, %v602_v3  ;;  %v650_v14 = vadd.f32 %v867_v8, %v618_v4 }
 0x102   : > { %v487_v15 = vpop.f32.mrf.mxu0  ;;  %v551_v16 = vpop.f32.mrf.mxu1 }
 0x103   : > { %666 = vst [vmem:[%s1234_s5 + $0x38] sm:$0xff] %v634_v13  ;;  %682 = vst [vmem:[%s1234_s5 + $0xb8] sm:$0xff] %v650_v14  ;;  %v632_v19 = vadd.f32 %v600_v9, %v487_v15  ;;  %v648_v20 = vadd.f32 %v616_v10, %v551_v16 }
 0x104   : > { %v854_v21 = vpop.f32.mrf.mxu0  ;;  %v870_v22 = vpop.f32.mrf.mxu1 }
 0x105   : > { %664 = vst [vmem:[%s1234_s5 + $0x28] sm:$0xff] %v632_v19  ;;  %680 = vst [vmem:[%s1234_s5 + $0xa8] sm:$0xff] %v648_v20  ;;  %v637_v25 = vadd.f32 %v854_v21, %v605_v17  ;;  %v653_v26 = vadd.f32 %v870_v22, %v621_v18 }
 0x106   : > { %v500_v27 = vpop.f32.mrf.mxu0  ;;  %v564_v11 = vpop.f32.mrf.mxu1 }
 0x107   : > { %669 = vst [vmem:[%s1234_s5 + $0x50] sm:$0xff] %v637_v25  ;;  %685 = vst [vmem:[%s1234_s5 + $0xd0] sm:$0xff] %v653_v26  ;;  %v635_v30 = vadd.f32 %v603_v23, %v500_v27  ;;  %v651_v31 = vadd.f32 %v619_v24, %v564_v11 }
 0x108   : > { %v855_v32 = vpop.f32.mrf.mxu0  ;;  %v871_v33 = vpop.f32.mrf.mxu1 }
 0x109   : > { %667 = vst [vmem:[%s1234_s5 + $0x40] sm:$0xff] %v635_v30  ;;  %683 = vst [vmem:[%s1234_s5 + $0xc0] sm:$0xff] %v651_v31  ;;  %v638_v35 = vadd.f32 %v855_v32, %v606_v28  ;;  %v654_v36 = vadd.f32 %v871_v33, %v622_v29 }
 0x10a   : > { %v503_v37 = vpop.f32.mrf.mxu0  ;;  %v567_v38 = vpop.f32.mrf.mxu1 }
 0x10b   : > { %670 = vst [vmem:[%s1234_s5 + $0x58] sm:$0xff] %v638_v35  ;;  %686 = vst [vmem:[%s1234_s5 + $0xd8] sm:$0xff] %v654_v36  ;;  %v636_v41 = vadd.f32 %v604_v12, %v503_v37  ;;  %v652_v42 = vadd.f32 %v620_v34, %v567_v38 }
 0x10c   : > { %v858_v43 = vpop.f32.mrf.mxu0  ;;  %v874_v44 = vpop.f32.mrf.mxu1 }
 0x10d   : > { %668 = vst [vmem:[%s1234_s5 + $0x48] sm:$0xff] %v636_v41  ;;  %684 = vst [vmem:[%s1234_s5 + $0xc8] sm:$0xff] %v652_v42  ;;  %v641_v47 = vadd.f32 %v858_v43, %v609_v39  ;;  %v657_v48 = vadd.f32 %v874_v44, %v625_v40 }
 0x10e   : > { %v516_v49 = vpop.f32.mrf.mxu0  ;;  %v580_v50 = vpop.f32.mrf.mxu1 }
 0x10f   : > { %673 = vst [vmem:[%s1234_s5 + $0x70] sm:$0xff] %v641_v47  ;;  %689 = vst [vmem:[%s1234_s5 + $0xf0] sm:$0xff] %v657_v48  ;;  %v639_v53 = vadd.f32 %v607_v45, %v516_v49  ;;  %v655_v54 = vadd.f32 %v623_v46, %v580_v50 }
 0x110   : > { %v859_v55 = vpop.f32.mrf.mxu0  ;;  %v875_v56 = vpop.f32.mrf.mxu1 }
 0x111   : > { %671 = vst [vmem:[%s1234_s5 + $0x60] sm:$0xff] %v639_v53  ;;  %687 = vst [vmem:[%s1234_s5 + $0xe0] sm:$0xff] %v655_v54  ;;  %v642_v59 = vadd.f32 %v859_v55, %v610_v51  ;;  %v658_v60 = vadd.f32 %v875_v56, %v626_v52 }
 0x112   : > { %v519_v61 = vpop.f32.mrf.mxu0  ;;  %v583_v62 = vpop.f32.mrf.mxu1 }
 0x113   : > { %674 = vst [vmem:[%s1234_s5 + $0x78] sm:$0xff] %v642_v59  ;;  %690 = vst [vmem:[%s1234_s5 + $0xf8] sm:$0xff] %v658_v60  ;;  %v640_v63 = vadd.f32 %v608_v57, %v519_v61  ;;  %v656_v0 = vadd.f32 %v624_v58, %v583_v62 }
 0x115   : > { %672 = vst [vmem:[%s1234_s5 + $0x68] sm:$0xff] %v640_v63  ;;  %688 = vst [vmem:[%s1234_s5 + $0xe8] sm:$0xff] %v656_v0 }
 0x116   : > { %954 = shalt.err (!%p951_p3)
}
 0x117   : > { %s955_s6 = scalar_lea.hbm %s1295_s23, 4096  ;;  %s959_s10 = scalar_lea.hbm %s1349_s4, 8192 }
 0x118   : > { %p956_p4 = scmp.ne.s32.totalorder %s1295_s23, %s955_s6  ;;  %p960_p9 = scmp.lt.s32.totalorder %s1295_s23, %s1349_s4 }
 0x119   : > { %p961_p10 = scmp.lt.s32.totalorder %s959_s10, %s955_s6 }
 0x11a   : > { %p957_p7 = pnand %p956_p4, %p1069_p5 }
 0x11b   : > { %p962_p11 = por %p961_p10, %p960_p9 }
 0x11c   : > { %p958_p8 = pneg %p957_p7 }
 0x11e   : > { %p963_p12 = pnand %p962_p11, %p958_p8 }
 0x120   : > { %966 = shalt.err (!%p963_p12)
}
 0x121   : > { %s1004_s13 = smov 128   ;;  %s1005_s5 = smov 8  }
 0x122   : > { %892 = dma.vmem_to_hbm [thread:$0]  (%p1069_p5), %s1297_s14, 4096, %s1295_s23, %s1305_s19, %s1004_s13, %s1004_s13, %s1005_s5  }
 0x123 PF: > { %p898_p13 = scmp.ge.s32.totalorder %s1001_s18, 2  ;;  %s720_s8 = sand.u32 1, %s989_s15  }
 0x124   : > { %s721_s20 = scalar_lea.sflag [#allocation3], %s720_s8 }
 0x125   : > { %p895_p0 = pnand %p898_p13, %p1073_p6 }
 0x127   : > { %p896_p1 = pneg %p895_p0 }
 0x129   : > { %984 = dma.done.wait (%p896_p1), %s721_s20, 4096  }
 0x12a   : > { %986 = vsyncadd (%p896_p1), %s721_s20, 4294963200  ;;  %p14_p2 = scmp.ge.s32.totalorder %s1056_s21, 4   ;;  %s1352_s15 = smov %s993_s16 }
 0x12b   : > { %s1353_s16 = smov %s997_s17  ;;  %s1354_s17 = smov %s1067_s24 }
 0x12c   : > { %s1355_s18 = smov %s1056_s21  ;;  %16 = sbr.rel (!%p14_p2) target bundleno = 3 (0x3), region = 74 }
 0x131   :  { %726 = vsyncpa [#allocation3], 1 }
 0x132   :  { %728 = vsyncpa [#allocation3 + $0x1], 1 }

// kernel: bottleneck_pallas.4
= control target key start
LH: loop header
LB: loop body
LE: loop exit
PB: predicated region body
PF: predicated region fallthrough
CT: control target
= control target key end

     0   :  { %s3359_s15 = smov 0   ;;  %s4931_s0 = inlined_call_operand.vmem [shape: f32[2,18,18,128], index: 0, kind: input, shape index: {}]   ;;  %s4932_s1 = inlined_call_operand.vmem [shape: f32[2,128], index: 1, kind: input, shape index: {}]   ;;  %s4933_s2 = inlined_call_operand.vmem [shape: bf16[1152,128], index: 2, kind: input, shape index: {}]   ;;  %s4934_s3 = inlined_call_operand.vmem [shape: f32[2,16,16,128], index: 3, kind: output, shape index: {0}]   ;;  %s4935_s4 = inlined_call_operand.vmem [shape: f32[2,2,128], index: 4, kind: output, shape index: {1}]  }
   0x1 LB: > { %s2481_s16 = sadd.s32 4294967295, %s3329_s15   ;;  %p2485_p0 = scmp.ge.s32.totalorder %s3329_s15, 1  ;;  %s3329_s15 = sphi %s3359_s15, %s15_s15  }
   0x2   : > { %p165_p1 = scmp.lt.s32.totalorder %s3329_s15, 3 }
   0x4   : > { %p166_p2 = pnand %p2485_p0, %p165_p1 }
   0x6   : > { %169 = sbr.rel (%p166_p2) target bundleno = 548 (0x224), region = 32 }
   0xb   : > { %v3251_v0 = vld [vmem:[%s4933_s2 + $0x78] sm:$0xff]   ;;  %v3331_v2 = vmov 0.0   ;;  %v3253_v4 = vld [vmem:[%s4933_s2 + $0x70] sm:$0xff]   ;;  %p195_p3 = scmp.lt.s32.totalorder %s2481_s16, 1  ;;  %v3255_v7 = vld [vmem:[%s4933_s2 + $0x68] sm:$0xff]   ;;  %v409_v8 = vlaneseq  ;;  %vm703_vm2 = vcmask 1046528  }
   0xc   : > { %v3252_v1 = vld [vmem:[%s4933_s2 + $0x38] sm:$0xff]   ;;  %v704_v3 = vrot.slane %v3331_v2, 1  ;;  %2703 = vmatprep.subr.bf16.mxu0 %v3251_v0  ;;  %3223 = vmatprep.subr.bf16.mxu1 %v3251_v0  ;;  %v3254_v5 = vld [vmem:[%s4933_s2 + $0x30] sm:$0xff]   ;;  %v3256_v9 = vld [vmem:[%s4933_s2 + $0x28] sm:$0xff]   ;;  %v3440_v31 = vrot.slane %v3331_v2, 2  ;;  %vm3332_vm3 = vmmov 1  }
   0xd   : > { %2704 = vmatpush3.bf16.msra.mxu0 %v3252_v1  ;;  %3231 = vmatpush3.bf16.msra.mxu1 %v3252_v1  ;;  %s5038_s16 = smov (!%p195_p3, %s2481_s16), 1  ;;  %v3257_v10 = vld [vmem:[%s4933_s2 + $0x60] sm:$0xff]   ;;  %v3394_v11 = vshrl.u32 %v409_v8, 7  ;;  %v3259_v13 = vld [vmem:[%s4933_s2 + $0x58] sm:$0xff]   ;;  %v3261_v17 = vld [vmem:[%s4933_s2 + $0x50] sm:$0xff]   ;;  %vm816_vm5 = vcmask 1045504  }
   0xe   : > { %v3379_v6 = vpack.c.bf16 %v704_v3, %v704_v3  ;;  %2705 = vmatprep.subr.bf16.mxu0 %v3253_v4  ;;  %3224 = vmatprep.subr.bf16.mxu1 %v3253_v4  ;;  %s3239_s5 = smul.u32 432, %s5038_s16  ;;  %v3258_v12 = vld [vmem:[%s4933_s2 + $0x20] sm:$0xff]   ;;  %v3260_v16 = vld [vmem:[%s4933_s2 + $0x18] sm:$0xff]   ;;  %v3262_v24 = vld [vmem:[%s4933_s2 + $0x10] sm:$0xff]   ;;  %vm2392_vm6 = vcmask 1040384  }
   0xf   : > { %v411_v14 = vsub.s32 0, %v3394_v11  ;;  %v469_v15 = vsub.s32 1, %v3394_v11  ;;  %v264_v21 = vld [vmem:[%s4932_s1] sm:$0x3]  ;;  %v3429_v25 = vadd.s32 16, %v3394_v11  ;;  %v3263_v26 = vld [vmem:[%s4933_s2 + $0x48] sm:$0xff]  }
  0x10   : > { %4970 = vst [vmem:[#allocation2_spill] sm:$0xff] %v3379_v6  ;;  %1481 = vmatprep.mubr.bf16.mxu0 %v3379_v6  ;;  %s3405_s12 = scalar_lea.vmem %s4931_s0, %s3239_s5  ;;  %v3264_v30 = vld [vmem:[%s4933_s2 + $0x8] sm:$0xff]   ;;  %v3265_v35 = vld [vmem:[%s4933_s2 + $0x40] sm:$0xff]   ;;  %vm583_vm0 = vcmp.ge.s32.totalorder %v3394_v11, 1  ;;  %v3267_v53 = vld [vmem:[%s4933_s2 + $0xf8] sm:$0xff]   ;;  %s2489_s5 = sshll.u32 %s5038_s16, 1 }
  0x11   : > { %2706 = vmatpush3.bf16.msra.mxu0 %v3254_v5  ;;  %3232 = vmatpush3.bf16.msra.mxu1 %v3254_v5  ;;  %v246_v18 = vld [vmem:[%s3405_s12 + $0x120] sm:$0xff]  ;;  %v247_v19 = vld [vmem:[%s3405_s12 + $0x128] sm:$0xff]  ;;  %v248_v20 = vld [vmem:[%s3405_s12 + $0x130] sm:$0x3]  ;;  %v3421_v22 = vrot.slane %v264_v21, %v411_v14  ;;  %v3423_v23 = vrot.slane %v264_v21, %v469_v15  ;;  %vm594_vm1 = vcmp.le.s32.totalorder %v3429_v25, 16  ;;  %s208_s8 = scalar_lea.vmem %s4935_s4, %s2489_s5 }
  0x12   : > { %2707 = vmatprep.subr.bf16.mxu0 %v3255_v7  ;;  %3225 = vmatprep.subr.bf16.mxu1 %v3255_v7  ;;  %v213_v36 = vld [vmem:[%s3405_s12 + $0x18] sm:$0xff]  ;;  %v214_v40 = vld [vmem:[%s3405_s12 + $0x20] sm:$0xff]  ;;  %v215_v41 = vld [vmem:[%s3405_s12 + $0x28] sm:$0x3] }
  0x13   : > { %v449_v27 = vmul.f32 %v3421_v22, %v246_v18  ;;  %v450_v28 = vmul.f32 %v3421_v22, %v247_v19  ;;  %v451_v29 = vmul.f32 %v3421_v22, %v248_v20  ;;  %v416_v42 = vmul.f32 %v3421_v22, %v213_v36  ;;  %v3266_v43 = vld [vmem:[%s4933_s2] sm:$0xff]   ;;  %v249_v46 = vld [vmem:[%s3405_s12 + $0x138] sm:$0xff]  ;;  %v251_v48 = vld [vmem:[%s3405_s12 + $0x148] sm:$0x3] }
  0x14   : > { %v417_v44 = vmul.f32 %v3421_v22, %v214_v40  ;;  %v418_v45 = vmul.f32 %v3421_v22, %v215_v41  ;;  %v250_v47 = vld [vmem:[%s3405_s12 + $0x140] sm:$0xff]  ;;  %v3268_v58 = vld [vmem:[%s4933_s2 + $0x178] sm:$0xff]   ;;  %v452_v60 = vmul.f32 %v3421_v22, %v249_v46  ;;  %v3271_v5 = vld [vmem:[%s4933_s2 + $0xf0] sm:$0xff]   ;;  %v454_v8 = vmul.f32 %v3421_v22, %v251_v48 }
  0x15   : > { %2708 = vmatpush3.bf16.msra.mxu0 %v3256_v9  ;;  %3233 = vmatpush3.bf16.msra.mxu1 %v3256_v9  ;;  %v507_v32 = vadd.f32 %v3423_v23, %v449_v27  ;;  %v508_v33 = vadd.f32 %v3423_v23, %v450_v28  ;;  %v509_v34 = vadd.f32 %v3423_v23, %v451_v29  ;;  %v3269_v0 = vld [vmem:[%s4933_s2 + $0xb8] sm:$0xff]   ;;  %vm3508_vm4 = vmpackc.low %vm3332_vm3, %vm583_vm0  ;;  %v3276_v19 = vld [vmem:[%s4933_s2 + $0x170] sm:$0xff]   ;;  %v4936_v29 = vmov 0.0|0.0  }
  0x16   : > { %2709 = vmatprep.subr.bf16.mxu0 %v3257_v10  ;;  %3226 = vmatprep.subr.bf16.mxu1 %v3257_v10  ;;  %v474_v56 = vadd.f32 %v3423_v23, %v416_v42  ;;  %v475_v57 = vadd.f32 %v3423_v23, %v417_v44  ;;  %v476_v59 = vadd.f32 %v3423_v23, %v418_v45  ;;  %v3270_v1 = vld [vmem:[%s4933_s2 + $0x138] sm:$0xff]   ;;  %v3272_v20 = vld [vmem:[%s4933_s2 + $0xb0] sm:$0xff]   ;;  %v3273_v46 = vld [vmem:[%s4933_s2 + $0xe8] sm:$0xff]  }
  0x17   : > { %v561_v37 = vmax.f32 %v507_v32, 0.0  ;;  %v3451_v38 = vmax.f32 %v508_v33, 0.0  ;;  %v563_v39 = vmax.f32 %v509_v34, 0.0  ;;  %v453_v61 = vmul.f32 %v3421_v22, %v250_v47  ;;  %v216_v27 = vld [vmem:[%s3405_s12 + $0x30] sm:$0xff]  ;;  %v217_v28 = vld [vmem:[%s3405_s12 + $0x38] sm:$0xff] }
  0x18   : > { %v528_v2 = vmax.f32 %v474_v56, 0.0  ;;  %v3497_v3 = vmax.f32 %v475_v57, 0.0  ;;  %v530_v7 = vmax.f32 %v476_v59, 0.0  ;;  %v510_v9 = vadd.f32 %v3423_v23, %v452_v60  ;;  %v218_v34 = vld [vmem:[%s3405_s12 + $0x40] sm:$0x3]  ;;  %v252_v36 = vld [vmem:[%s3405_s12 + $0x150] sm:$0xff] }
  0x19   : > { %2710 = vmatpush3.bf16.msra.mxu0 %v3258_v12  ;;  %3234 = vmatpush3.bf16.msra.mxu1 %v3258_v12  ;;  %v3466_v49 = vsel %vm583_vm0, %v561_v37, 0.0  ;;  %v3470_v50 = vsel %vm594_vm1, %v563_v39, 0.0  ;;  %v765_v51 = vrot.slane %v3451_v38, 1  ;;  %v3474_v52 = vpack.c.bf16 %v3451_v38, %v561_v37  ;;  %v253_v37 = vld [vmem:[%s3405_s12 + $0x158] sm:$0xff] }
  0x1a   : > { %2711 = vmatprep.subr.bf16.mxu0 %v3259_v13  ;;  %3227 = vmatprep.subr.bf16.mxu1 %v3259_v13  ;;  %4971 = vst [vmem:[#allocation3_spill] sm:$0xff] %v3470_v50  ;;  %v764_v54 = vrot.slane %v3466_v49, 1  ;;  %v767_v55 = vrot.slane %v3470_v50, 1  ;;  %v3514_v12 = vsel %vm583_vm0, %v528_v2, 0.0  ;;  %v710_v13 = vrot.slane %v3497_v3, 1  ;;  %v229_v6 = vld [vmem:[%s3405_s12 + $0x98] sm:$0xff] }
  0x1b   : > { %v511_v14 = vadd.f32 %v3423_v23, %v453_v61  ;;  %v3521_v15 = vsel %vm594_vm1, %v530_v7, 0.0  ;;  %v564_v18 = vmax.f32 %v510_v9, 0.0  ;;  %v3556_v42 = vpack.c.bf16 %v3497_v3, %v528_v2  ;;  %v3274_v2 = vld [vmem:[%s4933_s2 + $0xa8] sm:$0xff]   ;;  %v3275_v9 = vld [vmem:[%s4933_s2 + $0xe0] sm:$0xff]  }
  0x1c   : > { %v766_v62 = vsel %vm703_vm2, %v764_v54, %v765_v51  ;;  %v768_v63 = vsel %vm703_vm2, %v765_v51, %v767_v55  ;;  %v712_v21 = vrot.slane %v3521_v15, 1  ;;  %v420_v47 = vmul.f32 %v3421_v22, %v217_v28 }
  0x1d   : > { %2712 = vmatpush3.bf16.msra.mxu0 %v3260_v16  ;;  %3235 = vmatpush3.bf16.msra.mxu1 %v3260_v16  ;;  %v3499_v4 = vpack.c.bf16 %v768_v63, %v766_v62  ;;  %v709_v16 = vrot.slane %v3514_v12, 1  ;;  %v3546_v33 = vsel %vm583_vm0, %v564_v18, 0.0  ;;  %v421_v48 = vmul.f32 %v3421_v22, %v218_v34 }
  0x1e   : > { %2713 = vmatprep.subr.bf16.mxu0 %v3261_v17  ;;  %3228 = vmatprep.subr.bf16.mxu1 %v3261_v17  ;;  %v512_v17 = vadd.f32 %v3423_v23, %v454_v8  ;;  %4976 = vst [vmem:[#allocation6_spill] sm:$0xff] %v3546_v33  ;;  %v713_v39 = vsel %vm703_vm2, %v710_v13, %v712_v21  ;;  %v769_v40 = vrot.slane %v3546_v33, 1 }
  0x1f   : > { %4972 = vst [vmem:[#allocation4_spill] sm:$0xff] %v3499_v4  ;;  %1577 = vmatprep.mubr.bf16.mxu1 %v3499_v4  ;;  %v455_v55 = vmul.f32 %v3421_v22, %v252_v36  ;;  %v478_v56 = vadd.f32 %v3423_v23, %v420_v47  ;;  %v479_v57 = vadd.f32 %v3423_v23, %v421_v48 }
  0x20   : > { %v566_v32 = vmax.f32 %v512_v17, 0.0  ;;  %v220_v17 = vld [vmem:[%s3405_s12 + $0x50] sm:$0xff] }
  0x21   : > { %2714 = vmatpush3.bf16.msra.mxu0 %v3262_v24  ;;  %3236 = vmatpush3.bf16.msra.mxu1 %v3262_v24  ;;  %v3532_v24 = vmax.f32 %v511_v14, 0.0  ;;  %v513_v63 = vadd.f32 %v3423_v23, %v455_v55  ;;  %v533_v7 = vmax.f32 %v479_v57, 0.0 }
  0x22   : > { %2715 = vmatprep.subr.bf16.mxu0 %v3263_v26  ;;  %3229 = vmatprep.subr.bf16.mxu1 %v3263_v26  ;;  %v3278_v26 = vld [vmem:[%s4933_s2 + $0x130] sm:$0xff]   ;;  %v3563_v45 = vsel %vm594_vm1, %v566_v32, 0.0 }
  0x23   : > { %4975 = vst [vmem:[#allocation5_spill] sm:$0xff] %v3532_v24  ;;  %v770_v41 = vrot.slane %v3532_v24, 1  ;;  %4977 = vst [vmem:[#allocation7_spill] sm:$0xff] %v3563_v45  ;;  %v3581_v61 = vpack.c.bf16 %v3532_v24, %v564_v18  ;;  %v221_v18 = vld [vmem:[%s3405_s12 + $0x58] sm:$0x3]  ;;  %v3613_v21 = vsel %vm594_vm1, %v533_v7, 0.0 }
  0x24   : > { %v256_v32 = vld [vmem:[%s3405_s12 + $0x170] sm:$0xff]  ;;  %v717_v34 = vrot.slane %v3613_v21, 1 }
  0x25   : > { %2716 = vmatpush3.bf16.msra.mxu0 %v3264_v30  ;;  %3237 = vmatpush3.bf16.msra.mxu1 %v3264_v30  ;;  %v711_v30 = vsel %vm703_vm2, %v709_v16, %v710_v13  ;;  %v771_v51 = vsel %vm703_vm2, %v769_v40, %v770_v41  ;;  %4978 = vst [vmem:[#allocation8_spill] sm:$0xff] %v3581_v61  ;;  %v567_v16 = vmax.f32 %v513_v63, 0.0 }
  0x26   : > { %2717 = vmatprep.subr.bf16.mxu0 %v3265_v35  ;;  %3230 = vmatprep.subr.bf16.mxu1 %v3265_v35  ;;  %v419_v35 = vmul.f32 %v3421_v22, %v216_v27  ;;  %v3559_v44 = vpack.c.bf16 %v713_v39, %v711_v30  ;;  %v255_v30 = vld [vmem:[%s3405_s12 + $0x168] sm:$0xff] }
  0x27   : > { %v3627_v36 = vsel %vm583_vm0, %v567_v16, 0.0  ;;  %v3284_v39 = vld [vmem:[%s4933_s2 + $0x168] sm:$0xff]   ;;  %v458_v63 = vmul.f32 %v3421_v22, %v255_v30 }
  0x28   : > { %v477_v54 = vadd.f32 %v3423_v23, %v419_v35 }
  0x29   : > { %2718 = vmatpush3.bf16.msra.mxu0 %v3266_v43  ;;  %3238 = vmatpush3.bf16.msra.mxu1 %v3266_v43  ;;  %v254_v43 = vld [vmem:[%s3405_s12 + $0x160] sm:$0x3] }
  0x2a   : > { %2815 = vmatprep.subr.bf16.mxu1 %v3267_v53  ;;  %2927 = vmatprep.subr.bf16.mxu0 %v3268_v58  ;;  %v772_v53 = vrot.slane %v3563_v45, 1  ;;  %v456_v58 = vmul.f32 %v3421_v22, %v253_v37  ;;  %v457_v59 = vmul.f32 %v3421_v22, %v254_v43  ;;  %v531_v62 = vmax.f32 %v477_v54, 0.0  ;;  %v257_v37 = vld [vmem:[%s3405_s12 + $0x178] sm:$0x3] }
  0x2b   : > { %v424_v54 = vmul.f32 %v3421_v22, %v221_v18  ;;  %v3281_v18 = vld [vmem:[%s4933_s2 + $0xd0] sm:$0xff]  }
  0x2c   : > { %1482 = vmatmul.mubr.bf16.vlgmr.msra.gmra.mxu0 %v4936_v29  ;;  %2597 = vmatmul.mubr.msk.bf16.vlgmr.msra.gmra.mxu1 %vm3508_vm4, %v3474_v52  ;;  %v773_v60 = vsel %vm703_vm2, %v770_v41, %v772_v53  ;;  %v514_v8 = vadd.f32 %v3423_v23, %v456_v58  ;;  %v3598_v13 = vsel %vm583_vm0, %v531_v62, 0.0  ;;  %v515_v14 = vadd.f32 %v3423_v23, %v457_v59  ;;  %v3286_v59 = vld [vmem:[%s4933_s2 + $0x128] sm:$0xff]  }
  0x2d   : > { %2816 = vmatpush3.bf16.msra.mxu1 %v3269_v0  ;;  %2928 = vmatpush3.bf16.msra.mxu0 %v3270_v1  ;;  %v219_v0 = vld [vmem:[%s3405_s12 + $0x48] sm:$0xff]  ;;  %v3585_v1 = vpack.c.bf16 %v773_v60, %v771_v51  ;;  %v774_v41 = vrot.slane %v3627_v36, 1  ;;  %v3279_v51 = vld [vmem:[%s4933_s2 + $0xd8] sm:$0xff]   ;;  %v423_v53 = vmul.f32 %v3421_v22, %v220_v17  ;;  %v825_v29 = vrot.slane %v3521_v15, 2 }
  0x2e   : > { %2817 = vmatprep.subr.bf16.mxu1 %v3271_v5  ;;  %2929 = vmatprep.subr.bf16.mxu0 %v3276_v19  ;;  %v3590_v5 = vmax.f32 %v478_v56, 0.0  ;;  %v422_v19 = vmul.f32 %v3421_v22, %v219_v0  ;;  %v3617_v28 = vmax.f32 %v514_v8, 0.0  ;;  %v569_v35 = vmax.f32 %v515_v14, 0.0  ;;  %v3280_v8 = vld [vmem:[%s4933_s2 + $0x98] sm:$0xff]  }
  0x2f   : > { %1489 = vmatprep.mubr.bf16.mxu0 %v3559_v44  ;;  %4979 = vst [vmem:[#allocation9_spill] sm:$0xff] %v3585_v1  ;;  %1585 = vmatprep.mubr.bf16.mxu1 %v3585_v1  ;;  %v481_v60 = vadd.f32 %v3423_v23, %v423_v53  ;;  %v459_v0 = vmul.f32 %v3421_v22, %v256_v32 }
  0x30   : > { %v715_v27 = vrot.slane %v3590_v5, 1  ;;  %v775_v43 = vrot.slane %v3617_v28, 1  ;;  %v3642_v48 = vsel %vm594_vm1, %v569_v35, 0.0  ;;  %v480_v58 = vadd.f32 %v3423_v23, %v422_v19  ;;  %v223_v35 = vld [vmem:[%s3405_s12 + $0x68] sm:$0xff] }
  0x31   : > { %2818 = vmatpush3.bf16.msra.mxu1 %v3272_v20  ;;  %2930 = vmatpush3.bf16.msra.mxu0 %v3278_v26  ;;  %v3277_v20 = vld [vmem:[%s4933_s2 + $0xa0] sm:$0xff]   ;;  %v714_v26 = vrot.slane %v3598_v13, 1  ;;  %v777_v57 = vrot.slane %v3642_v48, 1  ;;  %v3664_v7 = vpack.c.bf16 %v3617_v28, %v567_v16  ;;  %v460_v14 = vmul.f32 %v3421_v22, %v257_v37 }
  0x32   : > { %2819 = vmatprep.subr.bf16.mxu1 %v3273_v46  ;;  %v3637_v46 = vpack.c.bf16 %v3590_v5, %v531_v62  ;;  %v718_v47 = vsel %vm703_vm2, %v715_v27, %v717_v34  ;;  %2931 = vmatprep.subr.bf16.mxu0 %v3284_v39  ;;  %v776_v56 = vsel %vm703_vm2, %v774_v41, %v775_v43  ;;  %v3675_v19 = vmax.f32 %v481_v60, 0.0  ;;  %v3282_v39 = vld [vmem:[%s4933_s2 + $0x90] sm:$0xff]  }
  0x33   : > { %v716_v40 = vsel %vm703_vm2, %v714_v26, %v715_v27  ;;  %v482_v62 = vadd.f32 %v3423_v23, %v424_v54  ;;  %4981 = vst [vmem:[#allocation11_spill] sm:$0xff] %v3664_v7  ;;  %v516_v16 = vadd.f32 %v3423_v23, %v458_v63  ;;  %v222_v26 = vld [vmem:[%s3405_s12 + $0x60] sm:$0xff]  ;;  %v224_v27 = vld [vmem:[%s3405_s12 + $0x70] sm:$0x3]  ;;  %v517_v32 = vadd.f32 %v3423_v23, %v459_v0 }
  0x34   : > { %2564 = vmatmul.mubr.msk.bf16.gmra.mxu0 %vm3508_vm4, %v3556_v42  ;;  %2600 = vmatmul.mubr.msk.bf16.gmra.mxu1 %vm3508_vm4, %v3581_v61  ;;  %4980 = vst [vmem:[#allocation10_spill] sm:$0xff] %v3637_v46  ;;  %v3649_v55 = vpack.c.bf16 %v718_v47, %v716_v40  ;;  %v518_v34 = vadd.f32 %v3423_v23, %v460_v14  ;;  %v3291_v63 = vld [vmem:[%s4933_s2 + $0x160] sm:$0xff]  }
  0x35   : > { %2820 = vmatpush3.bf16.msra.mxu1 %v3274_v2  ;;  %v778_v2 = vsel %vm703_vm2, %v775_v43, %v777_v57  ;;  %2932 = vmatpush3.bf16.msra.mxu0 %v3286_v59  ;;  %v425_v37 = vmul.f32 %v3421_v22, %v222_v26  ;;  %v720_v43 = vrot.slane %v3675_v19, 1  ;;  %v570_v47 = vmax.f32 %v516_v16, 0.0  ;;  %v3283_v57 = vld [vmem:[%s4933_s2 + $0xc8] sm:$0xff]   ;;  %v3292_v14 = vld [vmem:[%s4933_s2 + $0x120] sm:$0xff]  }
  0x36   : > { %2821 = vmatprep.subr.bf16.mxu1 %v3275_v9  ;;  %1497 = vmatprep.mubr.bf16.mxu0 %v3649_v55  ;;  %v534_v9 = vmax.f32 %v480_v58, 0.0  ;;  %v3670_v17 = vpack.c.bf16 %v778_v2, %v776_v56  ;;  %v3705_v53 = vmax.f32 %v517_v32, 0.0  ;;  %v572_v54 = vmax.f32 %v518_v34, 0.0  ;;  %v226_v32 = vld [vmem:[%s3405_s12 + $0x80] sm:$0xff] }
  0x37   : > { %v3716_v59 = vsel %vm583_vm0, %v570_v47, 0.0  ;;  %v426_v60 = vmul.f32 %v3421_v22, %v223_v35  ;;  %v483_v26 = vadd.f32 %v3423_v23, %v425_v37  ;;  %2933 = vmatprep.subr.bf16.mxu0 %v3291_v63  ;;  %v3285_v35 = vld [vmem:[%s4933_s2 + $0x88] sm:$0xff]   ;;  %v429_v63 = vmul.f32 %v3421_v22, %v226_v32  ;;  %v228_v32 = vld [vmem:[%s3405_s12 + $0x90] sm:$0xff] }
  0x38   : > { %4982 = vst [vmem:[#allocation12_spill] sm:$0xff] %v3670_v17  ;;  %v3685_v30 = vsel %vm583_vm0, %v534_v9, 0.0  ;;  %1593 = vmatprep.mubr.bf16.mxu1 %v3670_v17  ;;  %v3708_v56 = vpack.c.bf16 %v3675_v19, %v534_v9  ;;  %v3726_v2 = vsel %vm594_vm1, %v572_v54, 0.0  ;;  %v780_v9 = vrot.slane %v3705_v53, 1  ;;  %v3287_v54 = vld [vmem:[%s4933_s2 + $0xc0] sm:$0xff]  }
  0x39   : > { %2822 = vmatpush3.bf16.msra.mxu1 %v3277_v20  ;;  %v536_v20 = vmax.f32 %v482_v62, 0.0  ;;  %v719_v41 = vrot.slane %v3685_v30, 1  ;;  %v427_v62 = vmul.f32 %v3421_v22, %v224_v27  ;;  %v782_v16 = vrot.slane %v3726_v2, 1  ;;  %v225_v27 = vld [vmem:[%s3405_s12 + $0x78] sm:$0xff]  ;;  %2934 = vmatpush3.bf16.msra.mxu0 %v3292_v14 }
  0x3a   : > { %2823 = vmatprep.subr.bf16.mxu1 %v3279_v51  ;;  %4983 = vst [vmem:[#allocation13_spill] sm:$0xff] %v3708_v56  ;;  %v233_v17 = vld [vmem:[%s3405_s12 + $0xb8] sm:$0x3] }
  0x3b   : > { %v3697_v40 = vsel %vm594_vm1, %v536_v20, 0.0  ;;  %v721_v58 = vsel %vm703_vm2, %v719_v41, %v720_v43  ;;  %v484_v41 = vadd.f32 %v3423_v23, %v426_v60  ;;  %v783_v37 = vsel %vm703_vm2, %v780_v9, %v782_v16 }
  0x3c   : > { %2567 = vmatmul.mubr.msk.bf16.gmra.mxu0 %vm3508_vm4, %v3637_v46  ;;  %2603 = vmatmul.mubr.msk.bf16.gmra.mxu1 %vm3508_vm4, %v3664_v7  ;;  %v722_v51 = vrot.slane %v3697_v40, 1  ;;  %v487_v16 = vadd.f32 %v3423_v23, %v429_v63 }
  0x3d   : > { %2824 = vmatpush3.bf16.msra.mxu1 %v3280_v8  ;;  %v779_v8 = vrot.slane %v3716_v59, 1 }
  0x3e   : > { %2825 = vmatprep.subr.bf16.mxu1 %v3281_v18  ;;  %v723_v0 = vsel %vm703_vm2, %v720_v43, %v722_v51  ;;  %v3737_v18 = vpack.c.bf16 %v3705_v53, %v570_v47  ;;  %v485_v43 = vadd.f32 %v3423_v23, %v427_v62  ;;  %v227_v51 = vld [vmem:[%s3405_s12 + $0x88] sm:$0x3]  ;;  %v428_v47 = vmul.f32 %v3421_v22, %v225_v27  ;;  %v3293_v62 = vld [vmem:[%s4933_s2 + $0x158] sm:$0xff]  }
  0x3f   : > { %v3733_v20 = vpack.c.bf16 %v723_v0, %v721_v58  ;;  %v781_v34 = vsel %vm703_vm2, %v779_v8, %v780_v9  ;;  %v537_v58 = vmax.f32 %v483_v26, 0.0  ;;  %v430_v60 = vmul.f32 %v3421_v22, %v227_v51  ;;  %2935 = vmatprep.subr.bf16.mxu0 %v3293_v62 }
  0x40   : > { %4984 = vst [vmem:[#allocation14_spill] sm:$0xff] %v3737_v18  ;;  %v3760_v0 = vpack.c.bf16 %v783_v37, %v781_v34  ;;  %v539_v8 = vmax.f32 %v485_v43, 0.0  ;;  %v3768_v9 = vadd.f32 %v3423_v23, %v428_v47  ;;  %v822_v27 = vrot.slane %v3514_v12, 2  ;;  %v3288_v34 = vld [vmem:[%s4933_s2 + $0x80] sm:$0xff]  }
  0x41   : > { %2826 = vmatpush3.bf16.msra.mxu1 %v3282_v39  ;;  %1505 = vmatprep.mubr.bf16.mxu0 %v3733_v20  ;;  %v3765_v39 = vmax.f32 %v484_v41, 0.0  ;;  %v3772_v14 = vsel %vm583_vm0, %v537_v58, 0.0  ;;  %v488_v26 = vadd.f32 %v3423_v23, %v430_v60  ;;  %v823_v51 = vrot.slane %v3497_v3, 2  ;;  %v230_v47 = vld [vmem:[%s3405_s12 + $0xa0] sm:$0x3] }
  0x42   : > { %4985 = vst [vmem:[#allocation15_spill] sm:$0xff] %v3760_v0  ;;  %2827 = vmatprep.subr.bf16.mxu1 %v3283_v57  ;;  %v3295_v57 = vld [vmem:[%s4933_s2 + $0x118] sm:$0xff]   ;;  %1601 = vmatprep.mubr.bf16.mxu1 %v3760_v0  ;;  %v3787_v41 = vsel %vm594_vm1, %v539_v8, 0.0  ;;  %v724_v43 = vrot.slane %v3772_v14, 1  ;;  %v540_v63 = vmax.f32 %v3768_v9, 0.0  ;;  %v3798_v60 = vmax.f32 %v487_v16, 0.0 }
  0x43   : > { %v725_v12 = vrot.slane %v3765_v39, 1  ;;  %v727_v37 = vrot.slane %v3787_v41, 1  ;;  %v542_v62 = vmax.f32 %v488_v26, 0.0  ;;  %2936 = vmatpush3.bf16.msra.mxu0 %v3295_v57  ;;  %v3805_v3 = vpack.c.bf16 %v3765_v39, %v537_v58  ;;  %v231_v58 = vld [vmem:[%s3405_s12 + $0xa8] sm:$0xff] }
  0x44   : > { %2570 = vmatmul.mubr.msk.bf16.gmra.mxu0 %vm3508_vm4, %v3708_v56  ;;  %2606 = vmatmul.mubr.msk.bf16.gmra.mxu1 %vm3508_vm4, %v3737_v18  ;;  %v431_v9 = vmul.f32 %v3421_v22, %v228_v32  ;;  %v3816_v26 = vsel %vm583_vm0, %v540_v63, 0.0  ;;  %v730_v15 = vrot.slane %v3798_v60, 1  ;;  %v232_v32 = vld [vmem:[%s3405_s12 + $0xb0] sm:$0xff] }
  0x45   : > { %2828 = vmatpush3.bf16.msra.mxu1 %v3285_v35  ;;  %v726_v8 = vsel %vm703_vm2, %v724_v43, %v725_v12  ;;  %2609 = vmatprep.mubr.msk.bf16.mxu1 %vm3508_vm4, %v3556_v42  ;;  %4986 = vst [vmem:[#allocation16_spill] sm:$0xff] %v3805_v3  ;;  %v728_v16 = vsel %vm703_vm2, %v725_v12, %v727_v37  ;;  %v3289_v35 = vld [vmem:[%s4933_s2 + $0x1f8] sm:$0xff]   ;;  %v3820_v42 = vsel %vm594_vm1, %v542_v62, 0.0  ;;  %v729_v57 = vrot.slane %v3816_v26, 1 }
  0x46   : > { %2829 = vmatprep.subr.bf16.mxu1 %v3287_v54  ;;  %v3825_v54 = vpack.c.bf16 %v728_v16, %v726_v8  ;;  %v732_v43 = vrot.slane %v3820_v42, 1  ;;  %v3831_v12 = vpack.c.bf16 %v3440_v31, %v3440_v31  ;;  %v432_v37 = vmul.f32 %v3421_v22, %v229_v6  ;;  %v3297_v8 = vld [vmem:[%s4933_s2 + $0x150] sm:$0xff]   ;;  %v3290_v16 = vld [vmem:[%s4933_s2 + $0x1b8] sm:$0xff]  }
  0x47   : > { %v433_v62 = vmul.f32 %v3421_v22, %v230_v47  ;;  %v3836_v0 = vadd.f32 %v3423_v23, %v431_v9  ;;  %v731_v31 = vsel %vm703_vm2, %v729_v57, %v730_v15  ;;  %v824_v47 = vsel %vm816_vm5, %v822_v27, %v823_v51  ;;  %v3298_v27 = vld [vmem:[%s4933_s2 + $0x110] sm:$0xff]   ;;  %2937 = vmatprep.subr.bf16.mxu0 %v3297_v8 }
  0x48   : > { %4987 = vst [vmem:[#allocation17_spill] sm:$0xff] %v3825_v54  ;;  %4988 = vst [vmem:[#allocation18_spill] sm:$0xff] %v3831_v12  ;;  %1513 = vmatprep.mubr.bf16.mxu0 %v3825_v54  ;;  %v733_v6 = vsel %vm703_vm2, %v730_v15, %v732_v43  ;;  %v3294_v15 = vld [vmem:[%s4933_s2 + $0x1f0] sm:$0xff]   ;;  %v826_v57 = vsel %vm816_vm5, %v823_v51, %v825_v29  ;;  %v434_v43 = vmul.f32 %v3421_v22, %v231_v58 }
  0x49   : > { %2830 = vmatpush3.bf16.msra.mxu1 %v3288_v34  ;;  %v3852_v9 = vpack.c.bf16 %v733_v6, %v731_v31  ;;  %v490_v34 = vadd.f32 %v3423_v23, %v432_v37  ;;  %v491_v1 = vadd.f32 %v3423_v23, %v433_v62  ;;  %v4946_v4 = vmax.f32 %v3836_v0, 0.0  ;;  %2938 = vmatpush3.bf16.msra.mxu0 %v3298_v27 }
  0x4a   : > { %3039 = vmatprep.subr.bf16.mxu1 %v3289_v35  ;;  %v827_v35 = vrot.slane %v3598_v13, 2  ;;  %v435_v37 = vmul.f32 %v3421_v22, %v232_v32  ;;  %v436_v29 = vmul.f32 %v3421_v22, %v233_v17  ;;  %v828_v51 = vrot.slane %v3590_v5, 2  ;;  %v3299_v17 = vld [vmem:[%s4933_s2 + $0x1e8] sm:$0xff]  }
  0x4b   : > { %4989 = vst [vmem:[#allocation19_spill] sm:$0xff] %v3852_v9  ;;  %v3869_v62 = vmax.f32 %v490_v34, 0.0  ;;  %v545_v31 = vmax.f32 %v491_v1, 0.0  ;;  %v3875_v6 = vsel %vm583_vm0, %v4946_v4, 0.0  ;;  %v830_v58 = vrot.slane %v3613_v21, 2  ;;  %v3296_v1 = vld [vmem:[%s4933_s2 + $0x1b0] sm:$0xff]  }
  0x4c   : > { %2573 = vmatmul.mubr.msk.bf16.gmra.mxu0 %vm3508_vm4, %v3805_v3  ;;  %1643 = vmatmul.mubr.bf16.vlgmr.msra.gmra.mxu1 %v3831_v12  ;;  %v734_v13 = vrot.slane %v3875_v6, 1  ;;  %v3888_v32 = vadd.f32 %v3423_v23, %v434_v43  ;;  %v3894_v8 = vpack.c.bf16 %v3798_v60, %v540_v63  ;;  %v493_v34 = vadd.f32 %v3423_v23, %v435_v37  ;;  %v3301_v63 = vld [vmem:[%s4933_s2 + $0x148] sm:$0xff]  }
  0x4d   : > { %1521 = vmatprep.mubr.bf16.mxu0 %v3852_v9  ;;  %3040 = vmatpush3.bf16.msra.mxu1 %v3290_v16  ;;  %v3898_v5 = vsel %vm594_vm1, %v545_v31, 0.0  ;;  %v735_v21 = vrot.slane %v3869_v62, 1  ;;  %v494_v43 = vadd.f32 %v3423_v23, %v436_v29  ;;  %v3302_v31 = vld [vmem:[%s4933_s2 + $0x108] sm:$0xff]   ;;  %v3911_v12 = vpack.c.bf16 %v826_v57, %v824_v47  ;;  %v234_v29 = vld [vmem:[%s3405_s12 + $0xc0] sm:$0xff]  ;;  %v236_v57 = vld [vmem:[%s3405_s12 + $0xd0] sm:$0x3] }
  0x4e   : > { %2612 = vmatprep.mubr.msk.bf16.mxu1 %vm3508_vm4, %v3637_v46  ;;  %3041 = vmatprep.subr.bf16.mxu1 %v3294_v15  ;;  %v737_v16 = vrot.slane %v3898_v5, 1  ;;  %v832_v27 = vrot.slane %v3685_v30, 2  ;;  %v833_v37 = vrot.slane %v3675_v19, 2  ;;  %v235_v46 = vld [vmem:[%s3405_s12 + $0xc8] sm:$0xff]  ;;  %v3919_v18 = vmax.f32 %v493_v34, 0.0 }
  0x4f   : > { %v736_v15 = vsel %vm703_vm2, %v734_v13, %v735_v21  ;;  %v548_v7 = vmax.f32 %v494_v43, 0.0  ;;  %v4990_v9 = vmax.f32 %v3888_v32, 0.0  ;;  %v3300_v30 = vld [vmem:[%s4933_s2 + $0x1a8] sm:$0xff]   ;;  %2939 = vmatprep.subr.bf16.mxu0 %v3301_v63  ;;  %v437_v43 = vmul.f32 %v3421_v22, %v234_v29  ;;  %v3305_v29 = vld [vmem:[%s4933_s2 + $0x140] sm:$0xff]  }
  0x50   : > { %v738_v4 = vsel %vm703_vm2, %v735_v21, %v737_v16  ;;  %v829_v21 = vsel %vm816_vm5, %v827_v35, %v828_v51  ;;  %v831_v16 = vsel %vm816_vm5, %v828_v51, %v830_v58  ;;  %2940 = vmatpush3.bf16.msra.mxu0 %v3302_v31  ;;  %v438_v35 = vmul.f32 %v3421_v22, %v235_v46  ;;  %v238_v58 = vld [vmem:[%s3405_s12 + $0xe0] sm:$0xff] }
  0x51   : > { %3042 = vmatpush3.bf16.msra.mxu1 %v3296_v1  ;;  %v3925_v47 = vsel %vm583_vm0, %v4990_v9, 0.0  ;;  %v3934_v19 = vpack.c.bf16 %v738_v4, %v736_v15  ;;  %v237_v1 = vld [vmem:[%s3405_s12 + $0xd8] sm:$0xff]  ;;  %v3303_v9 = vld [vmem:[%s4933_s2 + $0x1e0] sm:$0xff]   ;;  %v3945_v34 = vsel %vm594_vm1, %v548_v7, 0.0  ;;  %v740_v4 = vrot.slane %v3919_v18, 1  ;;  %2941 = vmatprep.subr.bf16.mxu0 %v3305_v29 }
  0x52   : > { %v739_v13 = vrot.slane %v3925_v47, 1  ;;  %3043 = vmatprep.subr.bf16.mxu1 %v3299_v17  ;;  %v742_v17 = vrot.slane %v3945_v34, 1  ;;  %v439_v51 = vmul.f32 %v3421_v22, %v236_v57  ;;  %v4992_v7 = vmax.f32 %v3836_v0, 0.0  ;;  %v3304_v46 = vld [vmem:[%s4933_s2 + $0x1a0] sm:$0xff]  }
  0x53   : > { %4991 = vst [vmem:[#allocation20_spill] sm:$0xff] %v3934_v19  ;;  %v835_v15 = vrot.slane %v3697_v40, 2  ;;  %v3973_v0 = vadd.f32 %v3423_v23, %v437_v43  ;;  %v3306_v40 = vld [vmem:[%s4933_s2 + $0x100] sm:$0xff]   ;;  %v440_v45 = vmul.f32 %v3421_v22, %v237_v1 }
  0x54   : > { %2576 = vmatmul.mubr.msk.bf16.gmra.mxu0 %vm3508_vm4, %v3894_v8  ;;  %1651 = vmatmul.mubr.bf16.gmra.mxu1 %v3911_v12  ;;  %v3961_v63 = vpack.c.bf16 %v3869_v62, %v4992_v7  ;;  %v741_v31 = vsel %vm703_vm2, %v739_v13, %v740_v4  ;;  %v743_v57 = vsel %vm703_vm2, %v740_v4, %v742_v17  ;;  %v240_v4 = vld [vmem:[%s3405_s12 + $0xf0] sm:$0xff] }
  0x55   : > { %1529 = vmatprep.mubr.bf16.mxu0 %v3934_v19  ;;  %2615 = vmatprep.mubr.msk.bf16.mxu1 %vm3508_vm4, %v3708_v56  ;;  %v496_v7 = vadd.f32 %v3423_v23, %v438_v35  ;;  %v497_v13 = vadd.f32 %v3423_v23, %v439_v51  ;;  %v239_v56 = vld [vmem:[%s3405_s12 + $0xe8] sm:$0x3]  ;;  %v3983_v19 = vpack.c.bf16 %v743_v57, %v741_v31  ;;  %v4959_v43 = vmax.f32 %v3973_v0, 0.0 }
  0x56   : > { %3044 = vmatpush3.bf16.msra.mxu1 %v3300_v30  ;;  %v3981_v30 = vpack.c.bf16 %v831_v16, %v829_v21  ;;  %v834_v17 = vsel %vm816_vm5, %v832_v27, %v833_v37  ;;  %2942 = vmatpush3.bf16.msra.mxu0 %v3306_v40  ;;  %v837_v21 = vrot.slane %v3772_v14, 2  ;;  %v441_v16 = vmul.f32 %v3421_v22, %v238_v58  ;;  %v4003_v27 = vld [vmem:[%s4933_s2 + $0x238] sm:$0xff]  }
  0x57   : > { %3045 = vmatprep.subr.bf16.mxu1 %v3303_v9  ;;  %4993 = vst [vmem:[#allocation21_spill] sm:$0xff] %v3983_v19  ;;  %v3989_v35 = vmax.f32 %v496_v7, 0.0  ;;  %v551_v51 = vmax.f32 %v497_v13, 0.0  ;;  %v3307_v9 = vld [vmem:[%s4933_s2 + $0x1d8] sm:$0xff]   ;;  %v442_v1 = vmul.f32 %v3421_v22, %v239_v56  ;;  %v3998_v31 = vadd.f32 %v3423_v23, %v440_v45  ;;  %v242_v13 = vld [vmem:[%s3405_s12 + $0x100] sm:$0x3]  ;;  %3175 = vmatprep.subr.bf16.mxu0 %v4003_v27 }
  0x58   : > { %v836_v14 = vsel %vm816_vm5, %v833_v37, %v835_v15  ;;  %v4013_v56 = vsel %vm583_vm0, %v4959_v43, 0.0  ;;  %v499_v29 = vadd.f32 %v3423_v23, %v441_v16  ;;  %v241_v7 = vld [vmem:[%s3405_s12 + $0xf8] sm:$0xff]  ;;  %v838_v40 = vrot.slane %v3765_v39, 2  ;;  %v3310_v16 = vld [vmem:[%s4933_s2 + $0x1d0] sm:$0xff]  }
  0x59   : > { %v4017_v45 = vsel %vm594_vm1, %v551_v51, 0.0  ;;  %v745_v58 = vrot.slane %v3989_v35, 1  ;;  %v744_v37 = vrot.slane %v4013_v56, 1  ;;  %v500_v57 = vadd.f32 %v3423_v23, %v442_v1 }
  0x5a   : > { %3046 = vmatpush3.bf16.msra.mxu1 %v3304_v46  ;;  %v3309_v46 = vld [vmem:[%s4933_s2 + $0x198] sm:$0xff]   ;;  %v747_v15 = vrot.slane %v4017_v45, 1  ;;  %v840_v51 = vrot.slane %v3787_v41, 2  ;;  %v443_v43 = vmul.f32 %v3421_v22, %v240_v4  ;;  %v4044_v39 = vmax.f32 %v499_v29, 0.0  ;;  %v3312_v29 = vld [vmem:[%s4933_s2 + $0x190] sm:$0xff]  }
  0x5b   : > { %3047 = vmatprep.subr.bf16.mxu1 %v3307_v9  ;;  %v746_v1 = vsel %vm703_vm2, %v744_v37, %v745_v58  ;;  %v554_v41 = vmax.f32 %v500_v57, 0.0  ;;  %v4994_v9 = vmax.f32 %v3888_v32, 0.0  ;;  %v4995_v24 = vmax.f32 %v3998_v31, 0.0 }
  0x5c   : > { %2579 = vmatmul.mubr.msk.bf16.gmra.mxu0 %vm3508_vm4, %v3961_v63  ;;  %1659 = vmatmul.mubr.bf16.gmra.mxu1 %v3981_v30  ;;  %v4070_v57 = vpack.c.bf16 %v836_v14, %v834_v17  ;;  %v3315_v17 = vld [vmem:[%s4933_s2 + $0x188] sm:$0xff]   ;;  %v839_v14 = vsel %vm816_vm5, %v837_v21, %v838_v40 }
  0x5d   : > { %1537 = vmatprep.mubr.bf16.mxu0 %v3983_v19  ;;  %2618 = vmatprep.mubr.msk.bf16.mxu1 %vm3508_vm4, %v3805_v3  ;;  %v748_v19 = vsel %vm703_vm2, %v745_v58, %v747_v15  ;;  %v4049_v4 = vpack.c.bf16 %v3919_v18, %v4994_v9  ;;  %v4055_v33 = vsel %vm583_vm0, %v4995_v24, 0.0  ;;  %v243_v3 = vld [vmem:[%s3405_s12 + $0x108] sm:$0xff]  ;;  %v4062_v58 = vsel %vm594_vm1, %v554_v41, 0.0  ;;  %v244_v15 = vld [vmem:[%s3405_s12 + $0x110] sm:$0xff]  ;;  %v245_v41 = vld [vmem:[%s3405_s12 + $0x118] sm:$0x3] }
  0x5e   : > { %3048 = vmatpush3.bf16.msra.mxu1 %v3309_v46  ;;  %v4058_v37 = vpack.c.bf16 %v748_v19, %v746_v1  ;;  %v749_v32 = vrot.slane %v4055_v33, 1  ;;  %v750_v46 = vrot.slane %v4044_v39, 1  ;;  %v752_v24 = vrot.slane %v4062_v58, 1 }
  0x5f   : > { %3049 = vmatprep.subr.bf16.mxu1 %v3310_v16  ;;  %v444_v19 = vmul.f32 %v3421_v22, %v241_v7  ;;  %v445_v9 = vmul.f32 %v3421_v22, %v242_v13  ;;  %v3313_v16 = vld [vmem:[%s4933_s2 + $0x1c8] sm:$0xff]   ;;  %v4079_v1 = vadd.f32 %v3423_v23, %v443_v43  ;;  %v3316_v43 = vld [vmem:[%s4933_s2 + $0x1c0] sm:$0xff]   ;;  %v446_v50 = vmul.f32 %v3421_v22, %v243_v3 }
  0x60   : > { %v751_v61 = vsel %vm703_vm2, %v749_v32, %v750_v46  ;;  %v753_v21 = vsel %vm703_vm2, %v750_v46, %v752_v24  ;;  %v3318_v32 = vld [vmem:[%s4933_s2 + $0x180] sm:$0xff]   ;;  %v4996_v46 = vmax.f32 %v3973_v0, 0.0 }
  0x61   : > { %v502_v7 = vadd.f32 %v3423_v23, %v444_v19  ;;  %v503_v13 = vadd.f32 %v3423_v23, %v445_v9  ;;  %v555_v54 = vmax.f32 %v4079_v1, 0.0  ;;  %v4113_v3 = vadd.f32 %v3423_v23, %v446_v50 }
  0x62   : > { %3050 = vmatpush3.bf16.msra.mxu1 %v3312_v29  ;;  %v841_v29 = vsel %vm816_vm5, %v838_v40, %v840_v51  ;;  %v448_v51 = vmul.f32 %v3421_v22, %v245_v41  ;;  %v842_v1 = vrot.slane %v3816_v26, 2  ;;  %v4130_v50 = vpack.c.bf16 %v753_v21, %v751_v61 }
  0x63   : > { %3051 = vmatprep.subr.bf16.mxu1 %v3313_v16  ;;  %v4101_v19 = vmax.f32 %v502_v7, 0.0  ;;  %v557_v9 = vmax.f32 %v503_v13, 0.0  ;;  %v447_v16 = vmul.f32 %v3421_v22, %v244_v15  ;;  %v4109_v40 = vsel %vm583_vm0, %v555_v54, 0.0 }
  0x64   : > { %2582 = vmatmul.mubr.msk.bf16.gmra.mxu0 %vm3508_vm4, %v4049_v4  ;;  %1667 = vmatmul.mubr.bf16.gmra.mxu1 %v4070_v57  ;;  %v4121_v15 = vpack.c.bf16 %v3989_v35, %v4996_v46  ;;  %v4123_v24 = vpack.c.bf16 %v841_v29, %v839_v14  ;;  %v845_v7 = vrot.slane %v3820_v42, 2  ;;  %v506_v0 = vadd.f32 %v3423_v23, %v448_v51 }
  0x65   : > { %1545 = vmatprep.mubr.bf16.mxu0 %v4058_v37  ;;  %2621 = vmatprep.mubr.msk.bf16.mxu1 %vm3508_vm4, %v3894_v8  ;;  %v4128_v41 = vsel %vm594_vm1, %v557_v9, 0.0  ;;  %v754_v13 = vrot.slane %v4109_v40, 1  ;;  %v755_v14 = vrot.slane %v4101_v19, 1  ;;  %v505_v26 = vadd.f32 %v3423_v23, %v447_v16 }
  0x66   : > { %3052 = vmatpush3.bf16.msra.mxu1 %v3315_v17  ;;  %v843_v17 = vrot.slane %v3798_v60, 2  ;;  %v757_v29 = vrot.slane %v4128_v41, 1  ;;  %v558_v9 = vmax.f32 %v4113_v3, 0.0  ;;  %v560_v46 = vmax.f32 %v506_v0, 0.0 }
  0x67   : > { %3053 = vmatprep.subr.bf16.mxu1 %v3316_v43  ;;  %v756_v42 = vsel %vm703_vm2, %v754_v13, %v755_v14  ;;  %v4149_v21 = vmax.f32 %v505_v26, 0.0  ;;  %v4997_v3 = vmax.f32 %v3998_v31, 0.0  ;;  %v848_v0 = vrot.slane %v3869_v62, 2 }
  0x68   : > { %v844_v61 = vsel %vm816_vm5, %v842_v1, %v843_v17  ;;  %v846_v60 = vsel %vm816_vm5, %v843_v17, %v845_v7  ;;  %v758_v43 = vsel %vm703_vm2, %v755_v14, %v757_v29  ;;  %v4156_v16 = vsel %vm583_vm0, %v558_v9, 0.0 }
  0x69   : > { %v4160_v51 = vsel %vm594_vm1, %v560_v46, 0.0  ;;  %v4167_v1 = vpack.c.bf16 %v846_v60, %v844_v61  ;;  %v4169_v17 = vpack.c.bf16 %v758_v43, %v756_v42  ;;  %v847_v7 = vrot.slane %v3875_v6, 2 }
  0x6a   : > { %3054 = vmatpush3.bf16.msra.mxu1 %v3318_v32  ;;  %v4165_v32 = vpack.c.bf16 %v4044_v39, %v4997_v3  ;;  %v759_v13 = vrot.slane %v4156_v16, 1  ;;  %v760_v14 = vrot.slane %v4149_v21, 1  ;;  %v762_v29 = vrot.slane %v4160_v51, 1 }
  0x6b   : > { %v850_v26 = vrot.slane %v3898_v5, 2  ;;  %v849_v6 = vsel %vm816_vm5, %v847_v7, %v848_v0  ;;  %v887_v46 = vrot.slane %v3627_v36, 2  ;;  %v888_v61 = vrot.slane %v3617_v28, 2 }
  0x6c   : > { %2585 = vmatmul.mubr.msk.bf16.gmra.mxu0 %vm3508_vm4, %v4121_v15  ;;  %1675 = vmatmul.mubr.bf16.gmra.mxu1 %v4123_v24  ;;  %v761_v62 = vsel %vm703_vm2, %v759_v13, %v760_v14  ;;  %v763_v31 = vsel %vm703_vm2, %v760_v14, %v762_v29  ;;  %v890_v60 = vrot.slane %v3642_v48, 2  ;;  %v4193_v42 = vpack.c.bf16 %v4101_v19, %v555_v54 }
  0x6d   : > { %1553 = vmatprep.mubr.bf16.mxu0 %v4130_v50  ;;  %2624 = vmatprep.mubr.msk.bf16.mxu1 %vm3508_vm4, %v3961_v63  ;;  %v851_v5 = vsel %vm816_vm5, %v848_v0, %v850_v26  ;;  %v4195_v43 = vpack.c.bf16 %v763_v31, %v761_v62  ;;  %v889_v3 = vsel %vm816_vm5, %v887_v46, %v888_v61  ;;  %v892_v13 = vrot.slane %v3716_v59, 2 }
  0x6e   : > { %v891_v7 = vsel %vm816_vm5, %v888_v61, %v890_v60  ;;  %v4200_v14 = vpack.c.bf16 %v851_v5, %v849_v6  ;;  %v893_v36 = vrot.slane %v3705_v53, 2  ;;  %v852_v28 = vrot.slane %v3925_v47, 2  ;;  %v3314_v61 = vld [vmem:[%s4933_s2 + $0x228] sm:$0xff]  }
  0x6f   : > { %v4202_v0 = vpack.c.bf16 %v891_v7, %v889_v3  ;;  %v853_v48 = vrot.slane %v3919_v18, 2  ;;  %v855_v54 = vrot.slane %v3945_v34, 2  ;;  %v895_v29 = vrot.slane %v3726_v2, 2  ;;  %v3319_v7 = vld [vmem:[%s4933_s2 + $0x218] sm:$0xff]  }
  0x70   : > { %v894_v59 = vsel %vm816_vm5, %v892_v13, %v893_v36  ;;  %v4224_v47 = vpack.c.bf16 %v4149_v21, %v558_v9  ;;  %v857_v6 = vrot.slane %v4013_v56, 2  ;;  %v858_v62 = vrot.slane %v3989_v35, 2  ;;  %v3311_v35 = vld [vmem:[%s4933_s2 + $0x230] sm:$0xff]  }
  0x71   : > { %v896_v26 = vsel %vm816_vm5, %v893_v36, %v895_v29  ;;  %v854_v2 = vsel %vm816_vm5, %v852_v28, %v853_v48  ;;  %v856_v18 = vsel %vm816_vm5, %v853_v48, %v855_v54  ;;  %v860_v31 = vrot.slane %v4017_v45, 2  ;;  %v3320_v13 = vld [vmem:[%s4933_s2 + $0x210] sm:$0xff]   ;;  %v3321_v54 = vld [vmem:[%s4933_s2 + $0x208] sm:$0xff]   ;;  %v3322_v29 = vld [vmem:[%s4933_s2 + $0x200] sm:$0xff]  }
  0x72   : > { %v4216_v53 = vpack.c.bf16 %v896_v26, %v894_v59  ;;  %v4226_v34 = vpack.c.bf16 %v856_v18, %v854_v2  ;;  %v859_v9 = vsel %vm816_vm5, %v857_v6, %v858_v62  ;;  %v862_v45 = vrot.slane %v4055_v33, 2  ;;  %v4998_v2 = vld [vmem:[#allocation3_spill] sm:$0xff]  ;;  %v4999_v6 = vld [vmem:[#allocation17_spill] sm:$0xff] }
  0x73   : > { %v861_v56 = vsel %vm816_vm5, %v858_v62, %v860_v31  ;;  %v865_v46 = vrot.slane %v4062_v58, 2  ;;  %v867_v58 = vrot.slane %v4109_v40, 2  ;;  %v868_v60 = vrot.slane %v4101_v19, 2  ;;  %v5000_v62 = vld [vmem:[#allocation8_spill] sm:$0xff] }
  0x74   : > { %2588 = vmatmul.mubr.msk.bf16.gmra.mxu0 %vm3508_vm4, %v4165_v32  ;;  %1683 = vmatmul.mubr.bf16.gmra.mxu1 %v4167_v1  ;;  %v4241_v5 = vpack.c.bf16 %v861_v56, %v859_v9  ;;  %v870_v3 = vrot.slane %v4128_v41, 2  ;;  %v872_v36 = vrot.slane %v4156_v16, 2  ;;  %v873_v28 = vrot.slane %v4149_v21, 2  ;;  %v5001_v9 = vld [vmem:[#allocation6_spill] sm:$0xff] }
  0x75   : > { %1561 = vmatprep.mubr.bf16.mxu0 %v4169_v17  ;;  %2627 = vmatprep.mubr.msk.bf16.mxu1 %vm3508_vm4, %v4049_v4  ;;  %v869_v19 = vsel %vm816_vm5, %v867_v58, %v868_v60  ;;  %v875_v48 = vrot.slane %v4160_v51, 2  ;;  %v877_v59 = vrot.slane %v3466_v49, 2  ;;  %v878_v26 = vrot.slane %v3451_v38, 2 }
  0x76   : > { %v871_v40 = vsel %vm816_vm5, %v868_v60, %v870_v3  ;;  %v874_v21 = vsel %vm816_vm5, %v872_v36, %v873_v28  ;;  %v880_v18 = vrot.slane %v4998_v2, 2  ;;  %v882_v56 = vrot.slane %v5001_v9, 2  ;;  %v5006_v36 = vld [vmem:[#allocation20_spill] sm:$0xff]  ;;  %v5013_v9 = vld [vmem:[#allocation9_spill] sm:$0xff] }
  0x77   : > { %v4280_v41 = vpack.c.bf16 %v871_v40, %v869_v19  ;;  %v876_v16 = vsel %vm816_vm5, %v873_v28, %v875_v48  ;;  %v879_v49 = vsel %vm816_vm5, %v877_v59, %v878_v26  ;;  %v5007_v28 = vld [vmem:[#allocation14_spill] sm:$0xff]  ;;  %v5010_v59 = vld [vmem:[#allocation13_spill] sm:$0xff]  ;;  %v5012_v2 = vld [vmem:[#allocation4_spill] sm:$0xff] }
  0x78   : > { %v4299_v51 = vpack.c.bf16 %v876_v16, %v874_v21  ;;  %v881_v38 = vsel %vm816_vm5, %v878_v26, %v880_v18  ;;  %v5008_v16 = vld [vmem:[#allocation21_spill] sm:$0xff] }
  0x79   : > { %v4315_v31 = vpack.c.bf16 %v881_v38, %v879_v49 }
  0x7c   : > { %2591 = vmatmul.mubr.msk.bf16.gmra.mxu0 %vm3508_vm4, %v4193_v42  ;;  %1691 = vmatmul.mubr.bf16.gmra.mxu1 %v4200_v14 }
  0x7d   : > { %1569 = vmatprep.mubr.bf16.mxu0 %v4195_v43  ;;  %2630 = vmatprep.mubr.msk.bf16.mxu1 %vm3508_vm4, %v4121_v15 }
  0x84   : > { %2594 = vmatmul.mubr.msk.bf16.gmra.mxu0 %vm3508_vm4, %v4224_v47  ;;  %1699 = vmatmul.mubr.bf16.gmra.mxu1 %v4226_v34 }
  0x85   : > { %1803 = vmatprep.mubr.bf16.mxu0 %v3911_v12  ;;  %2633 = vmatprep.mubr.msk.bf16.mxu1 %vm3508_vm4, %v4165_v32  ;;  %v863_v12 = vrot.slane %v4044_v39, 2 }
  0x87   : > { %v864_v33 = vsel %vm816_vm5, %v862_v45, %v863_v12  ;;  %v866_v39 = vsel %vm816_vm5, %v863_v12, %v865_v46  ;;  %v5003_v12 = vld [vmem:[#allocation7_spill] sm:$0xff] }
  0x88   : > { %v885_v46 = vrot.slane %v5003_v12, 2 }
  0x8c   : > { %1804 = vmatmul.mubr.bf16.vlgmr.msra.gmra.mxu0 %v3559_v44  ;;  %1707 = vmatmul.mubr.bf16.gmra.mxu1 %v4241_v5  ;;  %v4261_v44 = vpack.c.bf16 %v866_v39, %v864_v33  ;;  %v258_v33 = vld [vmem:[%s3405_s12 + $0x180] sm:$0xff]  ;;  %v259_v39 = vld [vmem:[%s3405_s12 + $0x188] sm:$0xff] }
  0x8d   : > { %3176 = vmatpush3.bf16.msra.mxu0 %v4003_v27  ;;  %1811 = vmatprep.mubr.bf16.mxu0 %v3981_v30  ;;  %v3317_v27 = vld [vmem:[%s4933_s2 + $0x220] sm:$0xff]   ;;  %v461_v3 = vmul.f32 %v3421_v22, %v258_v33 }
  0x8e   : > { %3177 = vmatprep.subr.bf16.mxu0 %v3311_v35  ;;  %2636 = vmatprep.mubr.msk.bf16.mxu1 %vm3508_vm4, %v4193_v42 }
  0x8f   : > { %v519_v40 = vadd.f32 %v3423_v23, %v461_v3 }
  0x91   : > { %3178 = vmatpush3.bf16.msra.mxu0 %v3311_v35  ;;  %v5002_v35 = vld [vmem:[#allocation5_spill] sm:$0xff]  ;;  %v573_v48 = vmax.f32 %v519_v40, 0.0  ;;  %v5014_v40 = vld [vmem:[#allocation12_spill] sm:$0xff] }
  0x92   : > { %3179 = vmatprep.subr.bf16.mxu0 %v3314_v61  ;;  %v883_v45 = vrot.slane %v5002_v35, 2 }
  0x94   : > { %1812 = vmatmul.mubr.bf16.gmra.mxu0 %v3649_v55  ;;  %1715 = vmatmul.mubr.bf16.gmra.mxu1 %v4261_v44  ;;  %v884_v58 = vsel %vm816_vm5, %v882_v56, %v883_v45  ;;  %v886_v60 = vsel %vm816_vm5, %v883_v45, %v885_v46 }
  0x95   : > { %1819 = vmatprep.mubr.bf16.mxu0 %v4070_v57  ;;  %3180 = vmatpush3.bf16.msra.mxu0 %v3314_v61  ;;  %v5004_v61 = vld [vmem:[#allocation19_spill] sm:$0xff]  ;;  %v4332_v19 = vpack.c.bf16 %v886_v60, %v884_v58 }
  0x96   : > { %3181 = vmatprep.subr.bf16.mxu0 %v3317_v27  ;;  %2639 = vmatprep.mubr.msk.bf16.mxu1 %vm3508_vm4, %v4224_v47 }
  0x99   : > { %3182 = vmatpush3.bf16.msra.mxu0 %v3317_v27  ;;  %v5005_v27 = vld [vmem:[#allocation11_spill] sm:$0xff] }
  0x9a   : > { %3183 = vmatprep.subr.bf16.mxu0 %v3319_v7 }
  0x9c   : > { %1820 = vmatmul.mubr.bf16.gmra.mxu0 %v3733_v20  ;;  %1723 = vmatmul.mubr.bf16.gmra.mxu1 %v4280_v41 }
  0x9d   : > { %1827 = vmatprep.mubr.bf16.mxu0 %v4123_v24  ;;  %3184 = vmatpush3.bf16.msra.mxu0 %v3319_v7  ;;  %v462_v7 = vmul.f32 %v3421_v22, %v259_v39 }
  0x9e   : > { %3185 = vmatprep.subr.bf16.mxu0 %v3320_v13  ;;  %2642 = vmatprep.mubr.msk.bf16.mxu1 %vm3508_vm4, %v3474_v52 }
  0xa1   : > { %3186 = vmatpush3.bf16.msra.mxu0 %v3320_v13  ;;  %v520_v13 = vadd.f32 %v3423_v23, %v462_v7 }
  0xa2   : > { %3187 = vmatprep.subr.bf16.mxu0 %v3321_v54 }
  0xa4   : > { %1828 = vmatmul.mubr.bf16.gmra.mxu0 %v4999_v6  ;;  %1731 = vmatmul.mubr.bf16.gmra.mxu1 %v4299_v51 }
  0xa5   : > { %1835 = vmatprep.mubr.bf16.mxu0 %v4167_v1  ;;  %3188 = vmatpush3.bf16.msra.mxu0 %v3321_v54  ;;  %v4342_v54 = vmax.f32 %v520_v13, 0.0 }
  0xa6   : > { %3189 = vmatprep.subr.bf16.mxu0 %v3322_v29  ;;  %2645 = vmatprep.mubr.msk.bf16.mxu1 %vm3508_vm4, %v5000_v62 }
  0xa7   : > { %v4345_v21 = vpack.c.bf16 %v4342_v54, %v573_v48  ;;  %v940_v60 = vrot.slane %v4342_v54, 2 }
  0xa9   : > { %3190 = vmatpush3.bf16.msra.mxu0 %v3322_v29  ;;  %v5009_v29 = vld [vmem:[#allocation10_spill] sm:$0xff] }
  0xac   : > { %1836 = vmatmul.mubr.bf16.gmra.mxu0 %v5004_v61  ;;  %1739 = vmatmul.mubr.bf16.gmra.mxu1 %v4315_v31 }
  0xad   : > { %1843 = vmatprep.mubr.bf16.mxu0 %v4200_v14  ;;  %2648 = vmatprep.mubr.msk.bf16.mxu1 %vm3508_vm4, %v5005_v27 }
  0xb4   : > { %1844 = vmatmul.mubr.bf16.gmra.mxu0 %v5006_v36  ;;  %1747 = vmatmul.mubr.bf16.gmra.mxu1 %v4332_v19 }
  0xb5   : > { %1851 = vmatprep.mubr.bf16.mxu0 %v4226_v34  ;;  %2651 = vmatprep.mubr.msk.bf16.mxu1 %vm3508_vm4, %v5007_v28 }
  0xbc   : > { %1852 = vmatmul.mubr.bf16.gmra.mxu0 %v5008_v16  ;;  %1755 = vmatmul.mubr.bf16.gmra.mxu1 %v4202_v0 }
  0xbd   : > { %1859 = vmatprep.mubr.bf16.mxu0 %v4241_v5  ;;  %2654 = vmatprep.mubr.msk.bf16.mxu1 %vm3508_vm4, %v4345_v21 }
  0xc4   : > { %1860 = vmatmul.mubr.bf16.gmra.mxu0 %v4058_v37  ;;  %1763 = vmatmul.mubr.bf16.gmra.mxu1 %v4216_v53 }
  0xc5   : > { %1867 = vmatprep.mubr.bf16.mxu0 %v4261_v44  ;;  %1964 = vmatprep.mubr.bf16.mxu1 %v3649_v55  ;;  %v5011_v55 = vld [vmem:[#allocation16_spill] sm:$0xff] }
  0xcc   : > { %1868 = vmatmul.mubr.bf16.gmra.mxu0 %v4130_v50  ;;  %2657 = vmatmul.mubr.msk.bf16.vlgmr.msra.gmra.mxu1 %vm3508_vm4, %v5009_v29 }
  0xcd   : > { %1875 = vmatprep.mubr.bf16.mxu0 %v4280_v41  ;;  %1972 = vmatprep.mubr.bf16.mxu1 %v3733_v20  ;;  %v260_v20 = vld [vmem:[%s3405_s12 + $0x190] sm:$0x3]  ;;  %s2702_s12 = sshll.u32 %s5038_s16, 8 }
  0xce   : > { %v463_v26 = vmul.f32 %v3421_v22, %v260_v20  ;;  %s4794_s30 = scalar_lea.vmem %s4934_s3, %s2702_s12 }
  0xd0   : > { %v521_v18 = vadd.f32 %v3423_v23, %v463_v26  ;;  %v649_v23 = vsel %vm583_vm0, %v573_v48, 0.0 }
  0xd1   : > { %v939_v39 = vrot.slane %v649_v23, 2 }
  0xd2   : > { %v575_v38 = vmax.f32 %v521_v18, 0.0  ;;  %v932_v18 = vrot.slane %v649_v23, 1 }
  0xd3   : > { %v941_v48 = vsel %vm816_vm5, %v939_v39, %v940_v60 }
  0xd4   : > { %1876 = vmatmul.mubr.bf16.gmra.mxu0 %v4169_v17  ;;  %2660 = vmatmul.mubr.msk.bf16.gmra.mxu1 %vm3508_vm4, %v5010_v59  ;;  %v651_v46 = vsel %vm594_vm1, %v575_v38, 0.0 }
  0xd5   : > { %1883 = vmatprep.mubr.bf16.mxu0 %v4299_v51  ;;  %1980 = vmatprep.mubr.bf16.mxu1 %v4999_v6  ;;  %v942_v3 = vrot.slane %v651_v46, 2 }
  0xdc   : > { %1884 = vmatmul.mubr.bf16.gmra.mxu0 %v4195_v43  ;;  %2663 = vmatmul.mubr.msk.bf16.gmra.mxu1 %vm3508_vm4, %v5011_v55 }
  0xdd   : > { %1891 = vmatprep.mubr.bf16.mxu0 %v4315_v31  ;;  %1988 = vmatprep.mubr.bf16.mxu1 %v5004_v61 }
  0xe4   : > { %1892 = vmatmul.mubr.bf16.gmra.mxu0 %v5012_v2  ;;  %2666 = vmatmul.mubr.msk.bf16.gmra.mxu1 %vm3508_vm4, %v3894_v8 }
  0xe5   : > { %1899 = vmatprep.mubr.bf16.mxu0 %v4332_v19  ;;  %1996 = vmatprep.mubr.bf16.mxu1 %v5006_v36 }
  0xec   : > { %v2719_v6 = vpop.f32.mrf.mxu0  ;;  %v2791_v49 = vpop.f32.mrf.mxu1  ;;  %1900 = vmatmul.mubr.bf16.gmra.mxu0 %v5013_v9  ;;  %2669 = vmatmul.mubr.msk.bf16.gmra.mxu1 %vm3508_vm4, %v3961_v63 }
  0xed   : > { %1907 = vmatprep.mubr.bf16.mxu0 %v4202_v0  ;;  %2004 = vmatprep.mubr.bf16.mxu1 %v5008_v16  ;;  %v943_v16 = vsel %vm816_vm5, %v940_v60, %v942_v3 }
  0xee   : > { %v2720_v56 = vpop.f32.mrf.mxu0  ;;  %v2792_v35 = vpop.f32.mrf.mxu1  ;;  %v4415_v26 = vpack.c.bf16 %v943_v16, %v941_v48 }
  0xef   : > { %v4389_v22 = vadd.f32 %v2720_v56, %v2719_v6  ;;  %v4391_v8 = vadd.f32 %v2792_v35, %v2791_v49  ;;  %v933_v6 = vrot.slane %v4342_v54, 1 }
  0xf0   : > { %v2722_v45 = vpop.f32.mrf.mxu0  ;;  %v2794_v12 = vpop.f32.mrf.mxu1 }
  0xf2   : > { %v2723_v61 = vpop.f32.mrf.mxu0  ;;  %v2795_v33 = vpop.f32.mrf.mxu1 }
  0xf3   : > { %v4398_v58 = vadd.f32 %v2723_v61, %v2722_v45  ;;  %v4400_v63 = vadd.f32 %v2795_v33, %v2794_v12  ;;  %v5015_v45 = vld [vmem:[#allocation15_spill] sm:$0xff] }
  0xf4   : > { %v2725_v7 = vpop.f32.mrf.mxu0  ;;  %v2797_v11 = vpop.f32.mrf.mxu1  ;;  %1908 = vmatmul.mubr.bf16.gmra.mxu0 %v5014_v40  ;;  %2672 = vmatmul.mubr.msk.bf16.gmra.mxu1 %vm3508_vm4, %v4049_v4  ;;  %v935_v4 = vrot.slane %v651_v46, 1 }
  0xf5   : > { %1915 = vmatprep.mubr.bf16.mxu0 %v4216_v53  ;;  %2012 = vmatprep.mubr.bf16.mxu1 %v4058_v37  ;;  %v934_v37 = vsel %vm703_vm2, %v932_v18, %v933_v6 }
  0xf6   : > { %v2726_v13 = vpop.f32.mrf.mxu0  ;;  %v2798_v36 = vpop.f32.mrf.mxu1  ;;  %v936_v33 = vsel %vm703_vm2, %v933_v6, %v935_v4 }
  0xf7   : > { %v4408_v25 = vadd.f32 %v2726_v13, %v2725_v7  ;;  %v4412_v29 = vadd.f32 %v2798_v36, %v2797_v11  ;;  %v4434_v60 = vpack.c.bf16 %v936_v33, %v934_v37 }
  0xf8   : > { %v2728_v59 = vpop.f32.mrf.mxu0  ;;  %v2800_v55 = vpop.f32.mrf.mxu1 }
  0xfa   : > { %v2729_v20 = vpop.f32.mrf.mxu0  ;;  %v2801_v38 = vpop.f32.mrf.mxu1 }
  0xfb   : > { %v4418_v49 = vadd.f32 %v2729_v20, %v2728_v59  ;;  %v4420_v56 = vadd.f32 %v2801_v38, %v2800_v55 }
  0xfc   : > { %v2731_v35 = vpop.f32.mrf.mxu0  ;;  %1916 = vmatmul.mubr.bf16.gmra.mxu0 %v5015_v45  ;;  %v2803_v12 = vpop.f32.mrf.mxu1  ;;  %2675 = vmatmul.mubr.msk.bf16.gmra.mxu1 %vm3508_vm4, %v4121_v15 }
  0xfd   : > { %1923 = vmatprep.mubr.bf16.mxu0 %v4415_v26  ;;  %2020 = vmatprep.mubr.bf16.mxu1 %v4130_v50 }
  0xfe   : > { %v2732_v61 = vpop.f32.mrf.mxu0  ;;  %v2804_v23 = vpop.f32.mrf.mxu1 }
  0xff   : > { %v4429_v54 = vadd.f32 %v2732_v61, %v2731_v35  ;;  %v4432_v39 = vadd.f32 %v2804_v23, %v2803_v12 }
 0x100   : > { %v2734_v46 = vpop.f32.mrf.mxu0  ;;  %v2806_v3 = vpop.f32.mrf.mxu1 }
 0x102   : > { %v2735_v7 = vpop.f32.mrf.mxu0  ;;  %v2807_v13 = vpop.f32.mrf.mxu1 }
 0x103   : > { %v4436_v11 = vadd.f32 %v2735_v7, %v2734_v46  ;;  %v4438_v48 = vadd.f32 %v2807_v13, %v2806_v3 }
 0x104   : > { %v2737_v36 = vpop.f32.mrf.mxu0  ;;  %1924 = vmatmul.mubr.bf16.gmra.mxu0 %v4434_v60  ;;  %v2809_v16 = vpop.f32.mrf.mxu1  ;;  %2678 = vmatmul.mubr.msk.bf16.gmra.mxu1 %vm3508_vm4, %v4165_v32 }
 0x105   : > { %3191 = vmatprep.mubr.bf16.mxu0 %v3981_v30  ;;  %2028 = vmatprep.mubr.bf16.mxu1 %v4169_v17 }
 0x106   : > { %v2738_v15 = vpop.f32.mrf.mxu0  ;;  %v2810_v55 = vpop.f32.mrf.mxu1 }
 0x107   : > { %v4445_v50 = vadd.f32 %v2738_v15, %v2737_v36  ;;  %v4448_v20 = vadd.f32 %v2810_v55, %v2809_v16 }
 0x108   : > { %v2740_v59 = vpop.f32.mrf.mxu0  ;;  %v2812_v6 = vpop.f32.mrf.mxu1 }
 0x10a   : > { %v2741_v18 = vpop.f32.mrf.mxu0  ;;  %v2813_v38 = vpop.f32.mrf.mxu1 }
 0x10b   : > { %v4450_v4 = vadd.f32 %v2741_v18, %v2740_v59  ;;  %v4453_v30 = vadd.f32 %v2813_v38, %v2812_v6 }
 0x10c   : > { %v2743_v35 = vpop.f32.mrf.mxu0  ;;  %3192 = vmatmul.mubr.bf16.vlgmr.msra.gmra.mxu0 %v4070_v57  ;;  %v2831_v32 = vpop.f32.mrf.mxu1  ;;  %2681 = vmatmul.mubr.msk.bf16.gmra.mxu1 %vm3508_vm4, %v4193_v42 }
 0x10d   : > { %3195 = vmatprep.mubr.bf16.mxu0 %v4123_v24  ;;  %2036 = vmatprep.mubr.bf16.mxu1 %v4195_v43 }
 0x10e   : > { %v2744_v17 = vpop.f32.mrf.mxu0  ;;  %v2832_v61 = vpop.f32.mrf.mxu1 }
 0x10f   : > { %v4459_v12 = vadd.f32 %v2744_v17, %v2743_v35  ;;  %v2833_v33 = vadd.f32 %v2832_v61, %v2831_v32 }
 0x110   : > { %v2746_v37 = vpop.f32.mrf.mxu0  ;;  %v2834_v23 = vpop.f32.mrf.mxu1 }
 0x111   : > { %v4463_v57 = vadd.f32 %v2833_v33, %v4389_v22 }
 0x112   : > { %v2747_v46 = vpop.f32.mrf.mxu0  ;;  %v2835_v24 = vpop.f32.mrf.mxu1 }
 0x113   : > { %v4465_v3 = vadd.f32 %v2747_v46, %v2746_v37  ;;  %v2836_v42 = vadd.f32 %v2835_v24, %v2834_v23 }
 0x114   : > { %v2749_v7 = vpop.f32.mrf.mxu0  ;;  %3196 = vmatmul.mubr.bf16.gmra.mxu0 %v4167_v1  ;;  %v2837_v13 = vpop.f32.mrf.mxu1  ;;  %2684 = vmatmul.mubr.msk.bf16.gmra.mxu1 %vm3508_vm4, %v4224_v47 }
 0x115   : > { %3199 = vmatprep.mubr.bf16.mxu0 %v4200_v14  ;;  %v4473_v36 = vadd.f32 %v2836_v42, %v4398_v58  ;;  %2044 = vmatprep.mubr.bf16.mxu1 %v5012_v2 }
 0x116   : > { %v2750_v43 = vpop.f32.mrf.mxu0  ;;  %v2838_v15 = vpop.f32.mrf.mxu1 }
 0x117   : > { %v4475_v22 = vadd.f32 %v2750_v43, %v2749_v7  ;;  %v2839_v59 = vadd.f32 %v2838_v15, %v2837_v13 }
 0x118   : > { %v2752_v16 = vpop.f32.mrf.mxu0  ;;  %v2840_v1 = vpop.f32.mrf.mxu1 }
 0x119   : > { %v4479_v14 = vadd.f32 %v2839_v59, %v4408_v25 }
 0x11a   : > { %v2753_v55 = vpop.f32.mrf.mxu0  ;;  %v2841_v6 = vpop.f32.mrf.mxu1 }
 0x11b   : > { %v4481_v18 = vadd.f32 %v2753_v55, %v2752_v16  ;;  %v2842_v58 = vadd.f32 %v2841_v6, %v2840_v1 }
 0x11c   : > { %v2755_v47 = vpop.f32.mrf.mxu0  ;;  %3200 = vmatmul.mubr.bf16.gmra.mxu0 %v4226_v34  ;;  %v2843_v38 = vpop.f32.mrf.mxu1  ;;  %2687 = vmatmul.mubr.msk.bf16.gmra.mxu1 %vm3508_vm4, %v3474_v52 }
 0x11d   : > { %3203 = vmatprep.mubr.bf16.mxu0 %v4241_v5  ;;  %v4489_v35 = vadd.f32 %v2842_v58, %v4418_v49  ;;  %2052 = vmatprep.mubr.bf16.mxu1 %v5013_v9 }
 0x11e   : > { %v2756_v2 = vpop.f32.mrf.mxu0  ;;  %v2844_v32 = vpop.f32.mrf.mxu1 }
 0x11f   : > { %v4491_v25 = vadd.f32 %v2756_v2, %v2755_v47  ;;  %v2845_v61 = vadd.f32 %v2844_v32, %v2843_v38 }
 0x120   : > { %v2758_v17 = vpop.f32.mrf.mxu0  ;;  %v2846_v34 = vpop.f32.mrf.mxu1 }
 0x121   : > { %v4495_v5 = vadd.f32 %v2845_v61, %v4429_v54 }
 0x122   : > { %v2759_v37 = vpop.f32.mrf.mxu0  ;;  %v2847_v23 = vpop.f32.mrf.mxu1 }
 0x123   : > { %v4497_v33 = vadd.f32 %v2759_v37, %v2758_v17  ;;  %v2848_v49 = vadd.f32 %v2847_v23, %v2846_v34 }
 0x124   : > { %v2761_v52 = vpop.f32.mrf.mxu0  ;;  %3204 = vmatmul.mubr.bf16.gmra.mxu0 %v4261_v44  ;;  %v2849_v46 = vpop.f32.mrf.mxu1  ;;  %2690 = vmatmul.mubr.msk.bf16.gmra.mxu1 %vm3508_vm4, %v5000_v62 }
 0x125   : > { %3207 = vmatprep.mubr.bf16.mxu0 %v4280_v41  ;;  %v4505_v24 = vadd.f32 %v2848_v49, %v4436_v11  ;;  %2060 = vmatprep.mubr.bf16.mxu1 %v5014_v40 }
 0x126   : > { %v2762_v9 = vpop.f32.mrf.mxu0  ;;  %v2850_v7 = vpop.f32.mrf.mxu1 }
 0x127   : > { %v4507_v54 = vadd.f32 %v2762_v9, %v2761_v52  ;;  %v2851_v13 = vadd.f32 %v2850_v7, %v2849_v46  ;;  %v5016_v7 = vld [vmem:[#allocation2_spill] sm:$0xff] }
 0x128   : > { %v2764_v42 = vpop.f32.mrf.mxu0  ;;  %v2852_v44 = vpop.f32.mrf.mxu1 }
 0x129   : > { %v4511_v41 = vadd.f32 %v2851_v13, %v4445_v50 }
 0x12a   : > { %v2765_v43 = vpop.f32.mrf.mxu0  ;;  %v2853_v16 = vpop.f32.mrf.mxu1 }
 0x12b   : > { %v4513_v15 = vadd.f32 %v2765_v43, %v2764_v42  ;;  %v2854_v11 = vadd.f32 %v2853_v16, %v2852_v44 }
 0x12c   : > { %v2767_v62 = vpop.f32.mrf.mxu0  ;;  %3208 = vmatmul.mubr.bf16.gmra.mxu0 %v4299_v51  ;;  %v2855_v59 = vpop.f32.mrf.mxu1  ;;  %2693 = vmatmul.mubr.msk.bf16.gmra.mxu1 %vm3508_vm4, %v5005_v27 }
 0x12d   : > { %3211 = vmatprep.mubr.bf16.mxu0 %v4315_v31  ;;  %v4521_v1 = vadd.f32 %v2854_v11, %v4450_v4  ;;  %2068 = vmatprep.mubr.bf16.mxu1 %v5015_v45 }
 0x12e   : > { %v2768_v40 = vpop.f32.mrf.mxu0  ;;  %v2856_v55 = vpop.f32.mrf.mxu1 }
 0x12f   : > { %v4523_v50 = vadd.f32 %v2768_v40, %v2767_v62  ;;  %v2857_v47 = vadd.f32 %v2856_v55, %v2855_v59  ;;  %v5017_v62 = vld [vmem:[#allocation18_spill] sm:$0xff]  ;;  %v5018_v59 = vmov 0.0|0.0  }
 0x130   : > { %v2770_v6 = vpop.f32.mrf.mxu0  ;;  %v2858_v51 = vpop.f32.mrf.mxu1 }
 0x131   : > { %v4527_v31 = vadd.f32 %v2857_v47, %v4459_v12 }
 0x132   : > { %v2771_v58 = vpop.f32.mrf.mxu0  ;;  %v2859_v2 = vpop.f32.mrf.mxu1 }
 0x133   : > { %v4529_v38 = vadd.f32 %v2771_v58, %v2770_v6  ;;  %v2860_v4 = vadd.f32 %v2859_v2, %v2858_v51 }
 0x134   : > { %v2773_v27 = vpop.f32.mrf.mxu0  ;;  %3212 = vmatmul.mubr.bf16.gmra.mxu0 %v4332_v19  ;;  %v2861_v32 = vpop.f32.mrf.mxu1  ;;  %2696 = vmatmul.mubr.msk.bf16.gmra.mxu1 %vm3508_vm4, %v5007_v28 }
 0x135   : > { %3215 = vmatprep.mubr.bf16.mxu0 %v4202_v0  ;;  %v4537_v17 = vadd.f32 %v2860_v4, %v4465_v3  ;;  %2076 = vmatprep.mubr.bf16.mxu1 %v4434_v60 }
 0x136   : > { %v2774_v45 = vpop.f32.mrf.mxu0  ;;  %v2862_v61 = vpop.f32.mrf.mxu1 }
 0x137   : > { %v4539_v12 = vadd.f32 %v2774_v45, %v2773_v27  ;;  %v2863_v37 = vadd.f32 %v2862_v61, %v2861_v32 }
 0x138   : > { %v2776_v34 = vpop.f32.mrf.mxu0  ;;  %v2864_v19 = vpop.f32.mrf.mxu1 }
 0x139   : > { %v4543_v0 = vadd.f32 %v2863_v37, %v4475_v22 }
 0x13a   : > { %v2777_v23 = vpop.f32.mrf.mxu0  ;;  %v2865_v49 = vpop.f32.mrf.mxu1 }
 0x13b   : > { %v4545_v52 = vadd.f32 %v2777_v23, %v2776_v34  ;;  %v2866_v3 = vadd.f32 %v2865_v49, %v2864_v19 }
 0x13c   : > { %v2779_v28 = vpop.f32.mrf.mxu0  ;;  %3216 = vmatmul.mubr.bf16.gmra.mxu0 %v4216_v53  ;;  %v2867_v46 = vpop.f32.mrf.mxu1  ;;  %2699 = vmatmul.mubr.msk.bf16.gmra.mxu1 %vm3508_vm4, %v4345_v21 }
 0x13d   : > { %3219 = vmatprep.mubr.bf16.mxu0 %v4415_v26  ;;  %v4553_v9 = vadd.f32 %v2866_v3, %v4481_v18  ;;  %2084 = vmatprep.mubr.bf16.mxu1 %v5016_v7 }
 0x13e   : > { %v2780_v60 = vpop.f32.mrf.mxu0  ;;  %v2868_v42 = vpop.f32.mrf.mxu1 }
 0x13f   : > { %v4555_v22 = vadd.f32 %v2780_v60, %v2779_v28  ;;  %v2869_v44 = vadd.f32 %v2868_v42, %v2867_v46 }
 0x140   : > { %v2782_v13 = vpop.f32.mrf.mxu0  ;;  %v2870_v53 = vpop.f32.mrf.mxu1 }
 0x141   : > { %v4559_v26 = vadd.f32 %v2869_v44, %v4491_v25 }
 0x142   : > { %v2783_v43 = vpop.f32.mrf.mxu0  ;;  %v2871_v10 = vpop.f32.mrf.mxu1 }
 0x143   : > { %v4561_v16 = vadd.f32 %v2783_v43, %v2782_v13  ;;  %v2872_v18 = vadd.f32 %v2871_v10, %v2870_v53 }
 0x144   : > { %v2785_v21 = vpop.f32.mrf.mxu0  ;;  %3220 = vmatmul.mubr.bf16.gmra.mxu0 %v5017_v62  ;;  %v2873_v11 = vpop.f32.mrf.mxu1  ;;  %2085 = vmatmul.mubr.bf16.gmra.mxu1 %v5018_v59 }
 0x145   : > { %v4566_v55 = vadd.f32 %v2872_v18, %v4497_v33 }
 0x146   : > { %v2786_v40 = vpop.f32.mrf.mxu0  ;;  %v2874_v47 = vpop.f32.mrf.mxu1 }
 0x147   : > { %v4568_v6 = vadd.f32 %v2786_v40, %v2785_v21  ;;  %v2875_v25 = vadd.f32 %v2874_v47, %v2873_v11 }
 0x148   : > { %v2788_v51 = vpop.f32.mrf.mxu0  ;;  %v2876_v58 = vpop.f32.mrf.mxu1 }
 0x149   : > { %v4571_v27 = vadd.f32 %v2875_v25, %v4507_v54 }
 0x14a   : > { %v2789_v2 = vpop.f32.mrf.mxu0  ;;  %v2877_v32 = vpop.f32.mrf.mxu1 }
 0x14b   : > { %v4573_v4 = vadd.f32 %v2789_v2, %v2788_v51  ;;  %v2878_v61 = vadd.f32 %v2877_v32, %v2876_v58 }
 0x14c   : > { %v2943_v45 = vpop.f32.mrf.mxu0  ;;  %v2879_v34 = vpop.f32.mrf.mxu1 }
 0x14d   : > { %v4576_v33 = vadd.f32 %v2878_v61, %v4513_v15 }
 0x14e   : > { %v2944_v37 = vpop.f32.mrf.mxu0  ;;  %v2880_v23 = vpop.f32.mrf.mxu1 }
 0x14f   : > { %v2945_v19 = vadd.f32 %v2944_v37, %v2943_v45  ;;  %v2881_v28 = vadd.f32 %v2880_v23, %v2879_v34 }
 0x150   : > { %v2946_v49 = vpop.f32.mrf.mxu0  ;;  %v2882_v46 = vpop.f32.mrf.mxu1 }
 0x151   : > { %v4579_v3 = vadd.f32 %v2945_v19, %v4463_v57  ;;  %v4582_v60 = vadd.f32 %v2881_v28, %v4523_v50 }
 0x152   : > { %v2947_v54 = vpop.f32.mrf.mxu0  ;;  %v2883_v42 = vpop.f32.mrf.mxu1 }
 0x153   : > { %v2948_v7 = vadd.f32 %v2947_v54, %v2946_v49  ;;  %v2884_v44 = vadd.f32 %v2883_v42, %v2882_v46 }
 0x154   : > { %v2949_v13 = vpop.f32.mrf.mxu0  ;;  %v2885_v15 = vpop.f32.mrf.mxu1 }
 0x155   : > { %v4585_v53 = vadd.f32 %v2948_v7, %v4473_v36  ;;  %v4588_v10 = vadd.f32 %v2884_v44, %v4529_v38 }
 0x156   : > { %v2950_v43 = vpop.f32.mrf.mxu0  ;;  %v2886_v57 = vpop.f32.mrf.mxu1 }
 0x157   : > { %v2951_v21 = vadd.f32 %v2950_v43, %v2949_v13  ;;  %v2887_v18 = vadd.f32 %v2886_v57, %v2885_v15 }
 0x158   : > { %v2952_v62 = vpop.f32.mrf.mxu0  ;;  %v2888_v50 = vpop.f32.mrf.mxu1 }
 0x159   : > { %v4591_v11 = vadd.f32 %v2951_v21, %v4479_v14  ;;  %v4594_v40 = vadd.f32 %v2887_v18, %v4539_v12 }
 0x15a   : > { %v2953_v59 = vpop.f32.mrf.mxu0  ;;  %v2889_v36 = vpop.f32.mrf.mxu1 }
 0x15b   : > { %v2954_v47 = vadd.f32 %v2953_v59, %v2952_v62  ;;  %v2890_v25 = vadd.f32 %v2889_v36, %v2888_v50 }
 0x15c   : > { %v2955_v51 = vpop.f32.mrf.mxu0  ;;  %v2891_v38 = vpop.f32.mrf.mxu1 }
 0x15d   : > { %v4597_v58 = vadd.f32 %v2954_v47, %v4489_v35  ;;  %v4600_v32 = vadd.f32 %v2890_v25, %v4545_v52 }
 0x15e   : > { %v2956_v2 = vpop.f32.mrf.mxu0  ;;  %v2892_v14 = vpop.f32.mrf.mxu1 }
 0x15f   : > { %v2957_v45 = vadd.f32 %v2956_v2, %v2955_v51  ;;  %v2893_v34 = vadd.f32 %v2892_v14, %v2891_v38 }
 0x160   : > { %v2958_v61 = vpop.f32.mrf.mxu0  ;;  %v2894_v12 = vpop.f32.mrf.mxu1 }
 0x161   : > { %v4603_v37 = vadd.f32 %v2957_v45, %v4495_v5  ;;  %v4606_v23 = vadd.f32 %v2893_v34, %v4555_v22 }
 0x162   : > { %v2959_v19 = vpop.f32.mrf.mxu0  ;;  %v2895_v35 = vpop.f32.mrf.mxu1 }
 0x163   : > { %v2960_v49 = vadd.f32 %v2959_v19, %v2958_v61  ;;  %v2896_v46 = vadd.f32 %v2895_v35, %v2894_v12 }
 0x164   : > { %v2961_v28 = vpop.f32.mrf.mxu0  ;;  %v2897_v52 = vpop.f32.mrf.mxu1 }
 0x165   : > { %v4609_v54 = vadd.f32 %v2960_v49, %v4505_v24  ;;  %v4612_v42 = vadd.f32 %v2896_v46, %v4561_v16 }
 0x166   : > { %v2962_v7 = vpop.f32.mrf.mxu0  ;;  %v2898_v5 = vpop.f32.mrf.mxu1 }
 0x167   : > { %v2963_v13 = vadd.f32 %v2962_v7, %v2961_v28  ;;  %v2899_v15 = vadd.f32 %v2898_v5, %v2897_v52 }
 0x168   : > { %v2964_v44 = vpop.f32.mrf.mxu0  ;;  %v2900_v22 = vpop.f32.mrf.mxu1 }
 0x169   : > { %v4615_v43 = vadd.f32 %v2963_v13, %v4511_v41  ;;  %v4618_v57 = vadd.f32 %v2899_v15, %v4568_v6 }
 0x16a   : > { %v2965_v21 = vpop.f32.mrf.mxu0  ;;  %v2901_v24 = vpop.f32.mrf.mxu1 }
 0x16b   : > { %v2966_v62 = vadd.f32 %v2965_v21, %v2964_v44  ;;  %v2902_v50 = vadd.f32 %v2901_v24, %v2900_v22 }
 0x16c   : > { %v2967_v18 = vpop.f32.mrf.mxu0  ;;  %v2903_v16 = vpop.f32.mrf.mxu1 }
 0x16d   : > { %v4621_v59 = vadd.f32 %v2966_v62, %v4521_v1  ;;  %v4624_v36 = vadd.f32 %v2902_v50, %v4573_v4 }
 0x16e   : > { %v2968_v47 = vpop.f32.mrf.mxu0  ;;  %v2904_v41 = vpop.f32.mrf.mxu1 }
 0x16f   : > { %v2969_v51 = vadd.f32 %v2968_v47, %v2967_v18  ;;  %v2905_v38 = vadd.f32 %v2904_v41, %v2903_v16 }
 0x170   : > { %v2970_v25 = vpop.f32.mrf.mxu0  ;;  %v2906_v6 = vpop.f32.mrf.mxu1 }
 0x171   : > { %v4627_v2 = vadd.f32 %v2969_v51, %v4527_v31  ;;  %v4630_v14 = vadd.f32 %v2905_v38, %v4391_v8 }
 0x172   : > { %v2971_v45 = vpop.f32.mrf.mxu0  ;;  %v2907_v1 = vpop.f32.mrf.mxu1 }
 0x173   : > { %v2972_v61 = vadd.f32 %v2971_v45, %v2970_v25  ;;  %v2908_v12 = vadd.f32 %v2907_v1, %v2906_v6 }
 0x174   : > { %v2973_v34 = vpop.f32.mrf.mxu0  ;;  %v2909_v4 = vpop.f32.mrf.mxu1 }
 0x175   : > { %v4633_v19 = vadd.f32 %v2972_v61, %v4537_v17  ;;  %v4636_v35 = vadd.f32 %v2908_v12, %v4400_v63 }
 0x176   : > { %v2974_v49 = vpop.f32.mrf.mxu0  ;;  %v2910_v31 = vpop.f32.mrf.mxu1 }
 0x177   : > { %v2975_v28 = vadd.f32 %v2974_v49, %v2973_v34  ;;  %v2911_v52 = vadd.f32 %v2910_v31, %v2909_v4 }
 0x178   : > { %v2976_v46 = vpop.f32.mrf.mxu0  ;;  %v2912_v8 = vpop.f32.mrf.mxu1 }
 0x179   : > { %v4639_v7 = vadd.f32 %v2975_v28, %v4543_v0  ;;  %v4642_v5 = vadd.f32 %v2911_v52, %v4412_v29 }
 0x17a   : > { %v2977_v13 = vpop.f32.mrf.mxu0  ;;  %v2913_v17 = vpop.f32.mrf.mxu1 }
 0x17b   : > { %v2978_v44 = vadd.f32 %v2977_v13, %v2976_v46  ;;  %v2914_v22 = vadd.f32 %v2913_v17, %v2912_v8 }
 0x17c   : > { %v2979_v15 = vpop.f32.mrf.mxu0  ;;  %v2915_v63 = vpop.f32.mrf.mxu1 }
 0x17d   : > { %v4645_v21 = vadd.f32 %v2978_v44, %v4553_v9  ;;  %v4648_v24 = vadd.f32 %v2914_v22, %v4420_v56 }
 0x17e   : > { %v2980_v62 = vpop.f32.mrf.mxu0  ;;  %v2916_v0 = vpop.f32.mrf.mxu1 }
 0x17f   : > { %v2981_v18 = vadd.f32 %v2980_v62, %v2979_v15  ;;  %v2917_v16 = vadd.f32 %v2916_v0, %v2915_v63 }
 0x180   : > { %v2982_v50 = vpop.f32.mrf.mxu0  ;;  %v2918_v29 = vpop.f32.mrf.mxu1 }
 0x181   : > { %v4651_v47 = vadd.f32 %v2981_v18, %v4559_v26  ;;  %v4654_v41 = vadd.f32 %v2917_v16, %v4432_v39 }
 0x182   : > { %v2983_v51 = vpop.f32.mrf.mxu0  ;;  %v2919_v9 = vpop.f32.mrf.mxu1 }
 0x183   : > { %v2984_v25 = vadd.f32 %v2983_v51, %v2982_v50  ;;  %v2920_v6 = vadd.f32 %v2919_v9, %v2918_v29 }
 0x184   : > { %v2985_v38 = vpop.f32.mrf.mxu0  ;;  %v2921_v56 = vpop.f32.mrf.mxu1 }
 0x185   : > { %v4657_v45 = vadd.f32 %v2984_v25, %v4566_v55  ;;  %v4660_v1 = vadd.f32 %v2920_v6, %v4438_v48 }
 0x186   : > { %v2986_v61 = vpop.f32.mrf.mxu0  ;;  %v2922_v26 = vpop.f32.mrf.mxu1 }
 0x187   : > { %v2987_v34 = vadd.f32 %v2986_v61, %v2985_v38  ;;  %v2923_v4 = vadd.f32 %v2922_v26, %v2921_v56 }
 0x188   : > { %v2988_v12 = vpop.f32.mrf.mxu0  ;;  %v2924_v39 = vpop.f32.mrf.mxu1 }
 0x189   : > { %v4663_v49 = vadd.f32 %v2987_v34, %v4571_v27  ;;  %v4666_v31 = vadd.f32 %v2923_v4, %v4448_v20 }
 0x18a   : > { %v2989_v28 = vpop.f32.mrf.mxu0  ;;  %v2925_v55 = vpop.f32.mrf.mxu1 }
 0x18b   : > { %v2990_v46 = vadd.f32 %v2989_v28, %v2988_v12  ;;  %v2926_v8 = vadd.f32 %v2925_v55, %v2924_v39 }
 0x18c   : > { %v2991_v52 = vpop.f32.mrf.mxu0  ;;  %v4671_v48 = vpop.f32.mrf.mxu1 }
 0x18d   : > { %v4669_v13 = vadd.f32 %v2990_v46, %v4576_v33  ;;  %v4674_v17 = vadd.f32 %v2926_v8, %v4453_v30 }
 0x18e   : > { %v2992_v44 = vpop.f32.mrf.mxu0  ;;  %v4676_v15 = vpop.f32.mrf.mxu1 }
 0x18f   : > { %v2993_v27 = vadd.f32 %v2992_v44, %v2991_v52 }
 0x190   : > { %v2994_v22 = vpop.f32.mrf.mxu0  ;;  %v4681_v63 = vpop.f32.mrf.mxu1 }
 0x191   : > { %v4679_v20 = vadd.f32 %v2993_v27, %v4582_v60 }
 0x192   : > { %v2995_v62 = vpop.f32.mrf.mxu0  ;;  %v4683_v0 = vpop.f32.mrf.mxu1 }
 0x193   : > { %v2996_v18 = vadd.f32 %v2995_v62, %v2994_v22 }
 0x194   : > { %v2997_v33 = vpop.f32.mrf.mxu0  ;;  %v4688_v16 = vpop.f32.mrf.mxu1 }
 0x195   : > { %v4686_v50 = vadd.f32 %v2996_v18, %v4588_v10 }
 0x196   : > { %v2998_v30 = vpop.f32.mrf.mxu0  ;;  %v4690_v51 = vpop.f32.mrf.mxu1 }
 0x197   : > { %v2999_v29 = vadd.f32 %v2998_v30, %v2997_v33 }
 0x198   : > { %v3000_v25 = vpop.f32.mrf.mxu0  ;;  %v4695_v9 = vpop.f32.mrf.mxu1 }
 0x199   : > { %v4693_v60 = vadd.f32 %v2999_v29, %v4594_v40 }
 0x19a   : > { %v3001_v38 = vpop.f32.mrf.mxu0  ;;  %v4697_v56 = vpop.f32.mrf.mxu1 }
 0x19b   : > { %v3002_v6 = vadd.f32 %v3001_v38, %v3000_v25 }
 0x19c   : > { %v3003_v61 = vpop.f32.mrf.mxu0  ;;  %v4702_v34 = vpop.f32.mrf.mxu1 }
 0x19d   : > { %v4700_v10 = vadd.f32 %v3002_v6, %v4600_v32 }
 0x19e   : > { %v3004_v26 = vpop.f32.mrf.mxu0  ;;  %v4704_v4 = vpop.f32.mrf.mxu1 }
 0x19f   : > { %v3005_v12 = vadd.f32 %v3004_v26, %v3003_v61 }
 0x1a0   : > { %v3006_v39 = vpop.f32.mrf.mxu0  ;;  %v4709_v28 = vpop.f32.mrf.mxu1 }
 0x1a1   : > { %v4707_v40 = vadd.f32 %v3005_v12, %v4606_v23 }
 0x1a2   : > { %v3007_v46 = vpop.f32.mrf.mxu0  ;;  %v4711_v52 = vpop.f32.mrf.mxu1 }
 0x1a3   : > { %5019 = vst [vmem:[#allocation3_spill] sm:$0xff] %v4707_v40  ;;  %v3008_v55 = vadd.f32 %v3007_v46, %v3006_v39 }
 0x1a4   : > { %v3009_v8 = vpop.f32.mrf.mxu0  ;;  %v4716_v44 = vpop.f32.mrf.mxu1 }
 0x1a5   : > { %v4714_v32 = vadd.f32 %v3008_v55, %v4612_v42 }
 0x1a6   : > { %v3010_v27 = vpop.f32.mrf.mxu0  ;;  %v4718_v62 = vpop.f32.mrf.mxu1 }
 0x1a7   : > { %5020 = vst [vmem:[#allocation17_spill] sm:$0xff] %v4714_v32  ;;  %v3011_v22 = vadd.f32 %v3010_v27, %v3009_v8 }
 0x1a8   : > { %v3012_v18 = vpop.f32.mrf.mxu0  ;;  %v4723_v33 = vpop.f32.mrf.mxu1 }
 0x1a9   : > { %v4721_v23 = vadd.f32 %v3011_v22, %v4618_v57 }
 0x1aa   : > { %v3013_v30 = vpop.f32.mrf.mxu0  ;;  %v4725_v25 = vpop.f32.mrf.mxu1 }
 0x1ab   : > { %5021 = vst [vmem:[#allocation8_spill] sm:$0xff] %v4721_v23  ;;  %v3014_v29 = vadd.f32 %v3013_v30, %v3012_v18 }
 0x1ac   : > { %v3015_v38 = vpop.f32.mrf.mxu0  ;;  %v4730_v6 = vpop.f32.mrf.mxu1 }
 0x1ad   : > { %v4728_v42 = vadd.f32 %v3014_v29, %v4624_v36 }
 0x1ae   : > { %v3016_v61 = vpop.f32.mrf.mxu0  ;;  %v4732_v12 = vpop.f32.mrf.mxu1 }
 0x1af   : > { %5022 = vst [vmem:[#allocation6_spill] sm:$0xff] %v4728_v42  ;;  %v3017_v26 = vadd.f32 %v3016_v61, %v3015_v38 }
 0x1b0   : > { %v3018_v39 = vpop.f32.mrf.mxu0  ;;  %v4737_v46 = vpop.f32.mrf.mxu1 }
 0x1b1   : > { %v4735_v57 = vadd.f32 %v3017_v26, %v4630_v14 }
 0x1b2   : > { %v3019_v55 = vpop.f32.mrf.mxu0  ;;  %v4739_v27 = vpop.f32.mrf.mxu1 }
 0x1b3   : > { %5023 = vst [vmem:[#allocation5_spill] sm:$0xff] %v4735_v57  ;;  %v3020_v8 = vadd.f32 %v3019_v55, %v3018_v39 }
 0x1b4   : > { %v3021_v22 = vpop.f32.mrf.mxu0  ;;  %v4744_v18 = vpop.f32.mrf.mxu1 }
 0x1b5   : > { %v4742_v36 = vadd.f32 %v3020_v8, %v4636_v35 }
 0x1b6   : > { %v3022_v30 = vpop.f32.mrf.mxu0  ;;  %v4746_v38 = vpop.f32.mrf.mxu1 }
 0x1b7   : > { %5024 = vst [vmem:[#allocation7_spill] sm:$0xff] %v4742_v36  ;;  %v3023_v29 = vadd.f32 %v3022_v30, %v3021_v22 }
 0x1b8   : > { %v3024_v61 = vpop.f32.mrf.mxu0  ;;  %v4751_v26 = vpop.f32.mrf.mxu1 }
 0x1b9   : > { %v4749_v14 = vadd.f32 %v3023_v29, %v4642_v5 }
 0x1ba   : > { %v3025_v57 = vpop.f32.mrf.mxu0  ;;  %v4753_v55 = vpop.f32.mrf.mxu1 }
 0x1bb   : > { %5025 = vst [vmem:[#allocation19_spill] sm:$0xff] %v4749_v14  ;;  %v3026_v39 = vadd.f32 %v3025_v57, %v3024_v61 }
 0x1bc   : > { %v3027_v32 = vpop.f32.mrf.mxu0  ;;  %v4758_v8 = vpop.f32.mrf.mxu1 }
 0x1bd   : > { %v4756_v35 = vadd.f32 %v3026_v39, %v4648_v24 }
 0x1be   : > { %v3028_v36 = vpop.f32.mrf.mxu0  ;;  %v4760_v30 = vpop.f32.mrf.mxu1 }
 0x1bf   : > { %5026 = vst [vmem:[#allocation11_spill] sm:$0xff] %v4756_v35  ;;  %v3029_v22 = vadd.f32 %v3028_v36, %v3027_v32  ;;  %v3063_v36 = vadd.f32 %v4690_v51, %v4688_v16 }
 0x1c0   : > { %v3030_v42 = vpop.f32.mrf.mxu0  ;;  %v4765_v29 = vpop.f32.mrf.mxu1 }
 0x1c1   : > { %v4763_v5 = vadd.f32 %v3029_v22, %v4654_v41  ;;  %v3057_v22 = vadd.f32 %v4676_v15, %v4671_v48  ;;  %v1975_v16 = vadd.f32 %v3063_v36, %v4591_v11  ;;  %v3060_v48 = vadd.f32 %v4683_v0, %v4681_v63 }
 0x1c2   : > { %v3031_v57 = vpop.f32.mrf.mxu0  ;;  %v4767_v14 = vpop.f32.mrf.mxu1  ;;  %v3069_v63 = vadd.f32 %v4704_v4, %v4702_v34  ;;  %v3078_v34 = vadd.f32 %v4725_v25, %v4723_v33  ;;  %v3087_v33 = vadd.f32 %v4746_v38, %v4744_v18 }
 0x1c3   : > { %v3032_v61 = vadd.f32 %v3031_v57, %v3030_v42  ;;  %v1967_v11 = vadd.f32 %v3057_v22, %v4579_v3  ;;  %v1970_v3 = vadd.f32 %v3060_v48, %v4585_v53 }
 0x1c4   : > { %v3033_v40 = vpop.f32.mrf.mxu0  ;;  %v4772_v39 = vpop.f32.mrf.mxu1 }
 0x1c5   : > { %v4770_v24 = vadd.f32 %v3032_v61, %v4660_v1  ;;  %v3066_v61 = vadd.f32 %v4697_v56, %v4695_v9 }
 0x1c6   : > { %v3034_v32 = vpop.f32.mrf.mxu0  ;;  %v4776_v23 = vpop.f32.mrf.mxu1 }
 0x1c7   : > { %5027 = vst [vmem:[#allocation20_spill] sm:$0xff] %v4770_v24  ;;  %v3035_v35 = vadd.f32 %v3034_v32, %v3033_v40  ;;  %v1978_v36 = vadd.f32 %v3066_v61, %v4597_v58  ;;  %v3072_v58 = vadd.f32 %v4711_v52, %v4709_v28  ;;  %v1983_v61 = vadd.f32 %v3069_v63, %v4603_v37 }
 0x1c8   : > { %v3036_v41 = vpop.f32.mrf.mxu0  ;;  %v4784_v57 = vpop.f32.mrf.mxu1  ;;  %v1994_v37 = vadd.f32 %v3078_v34, %v4621_v59  ;;  %v3081_v63 = vadd.f32 %v4732_v12, %v4730_v6  ;;  %v3084_v34 = vadd.f32 %v4739_v27, %v4737_v46  ;;  %v2007_v12 = vadd.f32 %v3087_v33, %v4639_v7 }
 0x1c9   : > { %v4781_v42 = vadd.f32 %v3035_v35, %v4666_v31  ;;  %v3075_v35 = vadd.f32 %v4718_v62, %v4716_v44  ;;  %v3093_v33 = vadd.f32 %v4760_v30, %v4758_v8 }
 0x1ca   : > { %v3037_v1 = vpop.f32.mrf.mxu0  ;;  %v4789_v51 = vpop.f32.mrf.mxu1 }
 0x1cb   : > { %v3038_v24 = vadd.f32 %v3037_v1, %v3036_v41  ;;  %v1991_v62 = vadd.f32 %v3075_v35, %v4615_v43 }
 0x1cc   : > { %v3193_v31 = vpop.f32.mrf.mxu0  ;;  %v4802_v56 = vpop.f32.mrf.mxu1 }
 0x1cd   : > { %v4799_v15 = vadd.f32 %v3038_v24, %v4674_v17  ;;  %v2136_v9 = vadd.f32 %v3193_v31, %v1975_v16 }
 0x1ce   : > { %v2127_v40 = vpop.f32.mrf.mxu0  ;;  %v4810_v0 = vpop.f32.mrf.mxu1 }
 0x1cf   : > { %2256 = vst [vmem:[%s4794_s30 + $0x10] sm:$0xff] %v2136_v9  ;;  %v2128_v32 = vadd.f32 %v2127_v40, %v1967_v11  ;;  %v2325_v40 = vmul.f32 %v2136_v9, %v2136_v9 }
 0x1d0   : > { %v3194_v17 = vpop.f32.mrf.mxu0  ;;  %v4814_v41 = vpop.f32.mrf.mxu1 }
 0x1d1   : > { %2254 = vst [vmem:[%s4794_s30] sm:$0xff] %v2128_v32  ;;  %v2139_v24 = vadd.f32 %v3194_v17, %v1978_v36  ;;  %v2323_v53 = vmul.f32 %v2128_v32, %v2128_v32 }
 0x1d2   : > { %v2130_v22 = vpop.f32.mrf.mxu0  ;;  %v4822_v4 = vpop.f32.mrf.mxu1 }
 0x1d3   : > { %2257 = vst [vmem:[%s4794_s30 + $0x18] sm:$0xff] %v2139_v24  ;;  %v2131_v44 = vadd.f32 %v2130_v22, %v1970_v3  ;;  %v2326_v17 = vmul.f32 %v2139_v24, %v2139_v24 }
 0x1d4   : > { %v3197_v1 = vpop.f32.mrf.mxu0  ;;  %v4826_v11 = vpop.f32.mrf.mxu1 }
 0x1d5   : > { %2255 = vst [vmem:[%s4794_s30 + $0x8] sm:$0xff] %v2131_v44  ;;  %v2286_v16 = vadd.f32 %v2131_v44, %v2128_v32  ;;  %v2324_v31 = vmul.f32 %v2131_v44, %v2131_v44  ;;  %v2152_v48 = vadd.f32 %v3197_v1, %v1991_v62  ;;  %v1986_v32 = vadd.f32 %v3072_v58, %v4609_v54 }
 0x1d6   : > { %v2143_v43 = vpop.f32.mrf.mxu0  ;;  %v4831_v25 = vpop.f32.mrf.mxu1  ;;  %v3090_v54 = vadd.f32 %v4753_v55, %v4751_v26 }
 0x1d7   : > { %v2287_v35 = vadd.f32 %v2286_v16, %v2136_v9  ;;  %v2355_v28 = vadd.f32 %v2324_v31, %v2323_v53  ;;  %2260 = vst [vmem:[%s4794_s30 + $0x30] sm:$0xff] %v2152_v48  ;;  %v2144_v52 = vadd.f32 %v2143_v43, %v1983_v61  ;;  %v1999_v16 = vadd.f32 %v3081_v63, %v4627_v2 }
 0x1d8   : > { %v3198_v36 = vpop.f32.mrf.mxu0  ;;  %v4838_v22 = vpop.f32.mrf.mxu1  ;;  %v2329_v43 = vmul.f32 %v2152_v48, %v2152_v48  ;;  %v2002_v2 = vadd.f32 %v3084_v34, %v4633_v19  ;;  %v3102_v19 = vadd.f32 %v4789_v51, %v4784_v57 }
 0x1d9   : > { %v2356_v3 = vadd.f32 %v2355_v28, %v2325_v40  ;;  %2258 = vst [vmem:[%s4794_s30 + $0x20] sm:$0xff] %v2144_v52  ;;  %v2288_v9 = vadd.f32 %v2287_v35, %v2139_v24  ;;  %v2155_v44 = vadd.f32 %v3198_v36, %v1994_v37  ;;  %v2327_v62 = vmul.f32 %v2144_v52, %v2144_v52 }
 0x1da   : > { %v2146_v18 = vpop.f32.mrf.mxu0  ;;  %v4845_v6 = vpop.f32.mrf.mxu1  ;;  %v3099_v35 = vadd.f32 %v4776_v23, %v4772_v39  ;;  %v2010_v28 = vadd.f32 %v3090_v54, %v4645_v21 }
 0x1db   : > { %v2289_v38 = vadd.f32 %v2288_v9, %v2144_v52  ;;  %v2357_v1 = vadd.f32 %v2356_v3, %v2326_v17  ;;  %v2147_v59 = vadd.f32 %v2146_v18, %v1986_v32  ;;  %2261 = vst [vmem:[%s4794_s30 + $0x38] sm:$0xff] %v2155_v44  ;;  %v2330_v37 = vmul.f32 %v2155_v44, %v2155_v44 }
 0x1dc   : > { %v3201_v24 = vpop.f32.mrf.mxu0  ;;  %v4850_v31 = vpop.f32.mrf.mxu1  ;;  %v3096_v9 = vadd.f32 %v4767_v14, %v4765_v29  ;;  %v2023_v30 = vadd.f32 %v3099_v35, %v4663_v49 }
 0x1dd   : > { %v2358_v58 = vadd.f32 %v2357_v1, %v2327_v62  ;;  %2259 = vst [vmem:[%s4794_s30 + $0x28] sm:$0xff] %v2147_v59  ;;  %v2290_v61 = vadd.f32 %v2289_v38, %v2147_v59  ;;  %v2328_v53 = vmul.f32 %v2147_v59, %v2147_v59  ;;  %v2168_v46 = vadd.f32 %v3201_v24, %v2007_v12 }
 0x1de   : > { %v2159_v27 = vpop.f32.mrf.mxu0  ;;  %v4855_v7 = vpop.f32.mrf.mxu1  ;;  %v2015_v1 = vadd.f32 %v3093_v33, %v4651_v47  ;;  %v3111_v12 = vadd.f32 %v4831_v25, %v4826_v11  ;;  %v2026_v24 = vadd.f32 %v3102_v19, %v4669_v13  ;;  %v3105_v47 = vadd.f32 %v4810_v0, %v4802_v56 }
 0x1df   : > { %v2291_v26 = vadd.f32 %v2290_v61, %v2152_v48  ;;  %v2359_v55 = vadd.f32 %v2358_v58, %v2328_v53  ;;  %v2160_v40 = vadd.f32 %v2159_v27, %v1999_v16  ;;  %2264 = vst [vmem:[%s4794_s30 + $0x50] sm:$0xff] %v2168_v46  ;;  %v2333_v29 = vmul.f32 %v2168_v46, %v2168_v46 }
 0x1e0   : > { %v3202_v52 = vpop.f32.mrf.mxu0  ;;  %v4862_v32 = vpop.f32.mrf.mxu1  ;;  %v2018_v61 = vadd.f32 %v3096_v9, %v4657_v45  ;;  %v3108_v13 = vadd.f32 %v4822_v4, %v4814_v41  ;;  %v3114_v45 = vadd.f32 %v4845_v6, %v4838_v22  ;;  %v2039_v0 = vadd.f32 %v3111_v12, %v4693_v60 }
 0x1e1   : > { %v2360_v36 = vadd.f32 %v2359_v55, %v2329_v43  ;;  %2262 = vst [vmem:[%s4794_s30 + $0x40] sm:$0xff] %v2160_v40  ;;  %v2292_v48 = vadd.f32 %v2291_v26, %v2155_v44  ;;  %v2171_v23 = vadd.f32 %v3202_v52, %v2010_v28  ;;  %v2331_v17 = vmul.f32 %v2160_v40, %v2160_v40 }
 0x1e2   : > { %v2162_v39 = vpop.f32.mrf.mxu0  ;;  %v4869_v8 = vpop.f32.mrf.mxu1  ;;  %v2031_v33 = vadd.f32 %v3105_v47, %v4679_v20  ;;  %v2042_v60 = vadd.f32 %v3114_v45, %v4700_v10  ;;  %v3117_v20 = vadd.f32 %v4855_v7, %v4850_v31 }
 0x1e3   : > { %v2293_v63 = vadd.f32 %v2292_v48, %v2160_v40  ;;  %v2361_v3 = vadd.f32 %v2360_v36, %v2330_v37  ;;  %v2163_v21 = vadd.f32 %v2162_v39, %v2002_v2  ;;  %2265 = vst [vmem:[%s4794_s30 + $0x58] sm:$0xff] %v2171_v23  ;;  %v2334_v53 = vmul.f32 %v2171_v23, %v2171_v23 }
 0x1e4   : > { %v3205_v44 = vpop.f32.mrf.mxu0  ;;  %v3121_v59 = vpop.f32.mrf.mxu1  ;;  %v3120_v10 = vadd.f32 %v4869_v8, %v4862_v32 }
 0x1e5   : > { %v2362_v18 = vadd.f32 %v2361_v3, %v2331_v17  ;;  %2263 = vst [vmem:[%s4794_s30 + $0x48] sm:$0xff] %v2163_v21  ;;  %v2294_v38 = vadd.f32 %v2293_v63, %v2163_v21  ;;  %v2332_v62 = vmul.f32 %v2163_v21, %v2163_v21  ;;  %v2184_v34 = vadd.f32 %v3205_v44, %v2023_v30 }
 0x1e6   : > { %v2175_v14 = vpop.f32.mrf.mxu0  ;;  %v3122_v49 = vpop.f32.mrf.mxu1  ;;  %v2034_v17 = vadd.f32 %v3108_v13, %v4686_v50 }
 0x1e7   : > { %v2295_v54 = vadd.f32 %v2294_v38, %v2168_v46  ;;  %v2363_v57 = vadd.f32 %v2362_v18, %v2332_v62  ;;  %v2176_v51 = vadd.f32 %v2175_v14, %v2015_v1  ;;  %2268 = vst [vmem:[%s4794_s30 + $0x70] sm:$0xff] %v2184_v34  ;;  %v2337_v41 = vmul.f32 %v2184_v34, %v2184_v34 }
 0x1e8   : > { %v3206_v58 = vpop.f32.mrf.mxu0  ;;  %v3124_v27 = vpop.f32.mrf.mxu1  ;;  %v3123_v6 = vadd.f32 %v3122_v49, %v3121_v59 }
 0x1e9   : > { %v2364_v16 = vadd.f32 %v2363_v57, %v2333_v29  ;;  %2266 = vst [vmem:[%s4794_s30 + $0x60] sm:$0xff] %v2176_v51  ;;  %v2296_v46 = vadd.f32 %v2295_v54, %v2171_v23  ;;  %v2187_v43 = vadd.f32 %v3206_v58, %v2026_v24  ;;  %v2335_v25 = vmul.f32 %v2176_v51, %v2176_v51  ;;  %v5029_v57 = vld [vmem:[#allocation3_spill] sm:$0xff] }
 0x1ea   : > { %v2178_v26 = vpop.f32.mrf.mxu0  ;;  %v3125_v56 = vpop.f32.mrf.mxu1 }
 0x1eb   : > { %v2297_v11 = vadd.f32 %v2296_v46, %v2176_v51  ;;  %v2365_v55 = vadd.f32 %v2364_v16, %v2334_v53  ;;  %v2179_v40 = vadd.f32 %v2178_v26, %v2018_v61  ;;  %2269 = vst [vmem:[%s4794_s30 + $0x78] sm:$0xff] %v2187_v43  ;;  %v2338_v3 = vmul.f32 %v2187_v43, %v2187_v43  ;;  %v5030_v16 = vld [vmem:[#allocation6_spill] sm:$0xff] }
 0x1ec   : > { %v3209_v35 = vpop.f32.mrf.mxu0  ;;  %v3127_v37 = vpop.f32.mrf.mxu1  ;;  %v3126_v59 = vadd.f32 %v3125_v56, %v3124_v27  ;;  %v2047_v51 = vadd.f32 %v3117_v20, %v5029_v57 }
 0x1ed   : > { %v2366_v28 = vadd.f32 %v2365_v55, %v2335_v25  ;;  %2267 = vst [vmem:[%s4794_s30 + $0x68] sm:$0xff] %v2179_v40  ;;  %v2298_v52 = vadd.f32 %v2297_v11, %v2179_v40  ;;  %v2336_v2 = vmul.f32 %v2179_v40, %v2179_v40  ;;  %v2200_v36 = vadd.f32 %v3209_v35, %v2039_v0 }
 0x1ee   : > { %v2191_v48 = vpop.f32.mrf.mxu0  ;;  %v3128_v39 = vpop.f32.mrf.mxu1  ;;  %v2058_v46 = vadd.f32 %v3126_v59, %v5030_v16 }
 0x1ef   : > { %v2299_v4 = vadd.f32 %v2298_v52, %v2184_v34  ;;  %v2367_v23 = vadd.f32 %v2366_v28, %v2336_v2  ;;  %v2192_v22 = vadd.f32 %v2191_v48, %v2031_v33  ;;  %2272 = vst [vmem:[%s4794_s30 + $0x90] sm:$0xff] %v2200_v36  ;;  %v5028_v34 = vld [vmem:[#allocation8_spill] sm:$0xff]  ;;  %v2341_v58 = vmul.f32 %v2200_v36, %v2200_v36 }
 0x1f0   : > { %v3210_v63 = vpop.f32.mrf.mxu0  ;;  %v3130_v19 = vpop.f32.mrf.mxu1  ;;  %v2055_v31 = vadd.f32 %v3123_v6, %v5028_v34  ;;  %v3129_v47 = vadd.f32 %v3128_v39, %v3127_v37  ;;  %v5032_v37 = vld [vmem:[#allocation19_spill] sm:$0xff] }
 0x1f1   : > { %v2368_v21 = vadd.f32 %v2367_v23, %v2337_v41  ;;  %2270 = vst [vmem:[%s4794_s30 + $0x80] sm:$0xff] %v2192_v22  ;;  %v2300_v9 = vadd.f32 %v2299_v4, %v2187_v43  ;;  %v2203_v30 = vadd.f32 %v3210_v63, %v2042_v60  ;;  %v2339_v38 = vmul.f32 %v2192_v22, %v2192_v22  ;;  %v5031_v43 = vld [vmem:[#allocation17_spill] sm:$0xff] }
 0x1f2   : > { %v2194_v44 = vpop.f32.mrf.mxu0  ;;  %v3131_v50 = vpop.f32.mrf.mxu1  ;;  %v2050_v26 = vadd.f32 %v3120_v10, %v5031_v43  ;;  %v5033_v41 = vld [vmem:[#allocation5_spill] sm:$0xff] }
 0x1f3   : > { %v2301_v18 = vadd.f32 %v2300_v9, %v2192_v22  ;;  %v2369_v62 = vadd.f32 %v2368_v21, %v2338_v3  ;;  %v2195_v1 = vadd.f32 %v2194_v44, %v2034_v17  ;;  %2273 = vst [vmem:[%s4794_s30 + $0x98] sm:$0xff] %v2203_v30  ;;  %v2342_v11 = vmul.f32 %v2203_v30, %v2203_v30 }
 0x1f4   : > { %v3213_v7 = vpop.f32.mrf.mxu0  ;;  %v3133_v12 = vpop.f32.mrf.mxu1  ;;  %v3132_v2 = vadd.f32 %v3131_v50, %v3130_v19  ;;  %v2063_v4 = vadd.f32 %v3129_v47, %v5033_v41 }
 0x1f5   : > { %v2370_v14 = vadd.f32 %v2369_v62, %v2339_v38  ;;  %2271 = vst [vmem:[%s4794_s30 + $0x88] sm:$0xff] %v2195_v1  ;;  %v2302_v29 = vadd.f32 %v2301_v18, %v2195_v1  ;;  %v2340_v54 = vmul.f32 %v2195_v1, %v2195_v1  ;;  %v2216_v49 = vadd.f32 %v3213_v7, %v2055_v31  ;;  %v5035_v38 = vld [vmem:[#allocation7_spill] sm:$0xff] }
 0x1f6   : > { %v2207_v24 = vpop.f32.mrf.mxu0  ;;  %v3134_v53 = vpop.f32.mrf.mxu1  ;;  %v2066_v62 = vadd.f32 %v3132_v2, %v5035_v38 }
 0x1f7   : > { %v2303_v61 = vadd.f32 %v2302_v29, %v2200_v36  ;;  %v2371_v32 = vadd.f32 %v2370_v14, %v2340_v54  ;;  %v2208_v8 = vadd.f32 %v2207_v24, %v2047_v51  ;;  %2276 = vst [vmem:[%s4794_s30 + $0xb0] sm:$0xff] %v2216_v49  ;;  %v3135_v55 = vadd.f32 %v3134_v53, %v3133_v12 }
 0x1f8   : > { %v3214_v27 = vpop.f32.mrf.mxu0  ;;  %v3136_v13 = vpop.f32.mrf.mxu1  ;;  %v2345_v20 = vmul.f32 %v2216_v49, %v2216_v49 }
 0x1f9   : > { %v2372_v25 = vadd.f32 %v2371_v32, %v2341_v58  ;;  %2274 = vst [vmem:[%s4794_s30 + $0xa0] sm:$0xff] %v2208_v8  ;;  %v2304_v40 = vadd.f32 %v2303_v61, %v2203_v30  ;;  %v2219_v45 = vadd.f32 %v3214_v27, %v2058_v46  ;;  %v2343_v35 = vmul.f32 %v2208_v8, %v2208_v8  ;;  %v5034_v30 = vld [vmem:[#allocation11_spill] sm:$0xff] }
 0x1fa   : > { %v2210_v56 = vpop.f32.mrf.mxu0  ;;  %v3137_v33 = vpop.f32.mrf.mxu1  ;;  %v2071_v36 = vadd.f32 %v3135_v55, %v5032_v37 }
 0x1fb   : > { %v2305_v0 = vadd.f32 %v2304_v40, %v2208_v8  ;;  %v2373_v28 = vadd.f32 %v2372_v25, %v2342_v11  ;;  %v2211_v52 = vadd.f32 %v2210_v56, %v2050_v26  ;;  %2277 = vst [vmem:[%s4794_s30 + $0xb8] sm:$0xff] %v2219_v45  ;;  %v3138_v22 = vadd.f32 %v3137_v33, %v3136_v13  ;;  %v5036_v40 = vld [vmem:[#allocation20_spill] sm:$0xff] }
 0x1fc   : > { %v3217_v48 = vpop.f32.mrf.mxu0  ;;  %v3139_v60 = vpop.f32.mrf.mxu1  ;;  %v2346_v1 = vmul.f32 %v2219_v45, %v2219_v45 }
 0x1fd   : > { %v2374_v23 = vadd.f32 %v2373_v28, %v2343_v35  ;;  %2275 = vst [vmem:[%s4794_s30 + $0xa8] sm:$0xff] %v2211_v52  ;;  %v2306_v6 = vadd.f32 %v2305_v0, %v2211_v52  ;;  %v2344_v39 = vmul.f32 %v2211_v52, %v2211_v52  ;;  %v2232_v63 = vadd.f32 %v3217_v48, %v2071_v36 }
 0x1fe   : > { %v2223_v17 = vpop.f32.mrf.mxu0  ;;  %v3140_v19 = vpop.f32.mrf.mxu1  ;;  %v2074_v44 = vadd.f32 %v3138_v22, %v5034_v30 }
 0x1ff   : > { %v2307_v3 = vadd.f32 %v2306_v6, %v2216_v49  ;;  %v2375_v21 = vadd.f32 %v2374_v23, %v2344_v39  ;;  %v2224_v9 = vadd.f32 %v2223_v17, %v2063_v4  ;;  %2280 = vst [vmem:[%s4794_s30 + $0xd0] sm:$0xff] %v2232_v63  ;;  %v3141_v59 = vadd.f32 %v3140_v19, %v3139_v60 }
 0x200   : > { %v3218_v18 = vpop.f32.mrf.mxu0  ;;  %v3142_v34 = vpop.f32.mrf.mxu1  ;;  %v2349_v53 = vmul.f32 %v2232_v63, %v2232_v63 }
 0x201   : > { %v2376_v10 = vadd.f32 %v2375_v21, %v2345_v20  ;;  %2278 = vst [vmem:[%s4794_s30 + $0xc0] sm:$0xff] %v2224_v9  ;;  %v2308_v50 = vadd.f32 %v2307_v3, %v2219_v45  ;;  %v2235_v31 = vadd.f32 %v3218_v18, %v2074_v44  ;;  %v2347_v29 = vmul.f32 %v2224_v9, %v2224_v9 }
 0x202   : > { %v2226_v7 = vpop.f32.mrf.mxu0  ;;  %v3143_v51 = vpop.f32.mrf.mxu1  ;;  %v2079_v49 = vadd.f32 %v3141_v59, %v4763_v5 }
 0x203   : > { %v2309_v14 = vadd.f32 %v2308_v50, %v2224_v9  ;;  %v2377_v54 = vadd.f32 %v2376_v10, %v2346_v1  ;;  %v2227_v57 = vadd.f32 %v2226_v7, %v2066_v62  ;;  %2281 = vst [vmem:[%s4794_s30 + $0xd8] sm:$0xff] %v2235_v31  ;;  %v3144_v58 = vadd.f32 %v3143_v51, %v3142_v34 }
 0x204   : > { %v3221_v12 = vpop.f32.mrf.mxu0  ;;  %v3145_v8 = vpop.f32.mrf.mxu1  ;;  %v2350_v43 = vmul.f32 %v2235_v31, %v2235_v31 }
 0x205   : > { %v2378_v24 = vadd.f32 %v2377_v54, %v2347_v29  ;;  %2279 = vst [vmem:[%s4794_s30 + $0xc8] sm:$0xff] %v2227_v57  ;;  %v2310_v61 = vadd.f32 %v2309_v14, %v2227_v57  ;;  %v2348_v32 = vmul.f32 %v2227_v57, %v2227_v57  ;;  %v2082_v13 = vadd.f32 %v3144_v58, %v5036_v40 }
 0x206   : > { %v2239_v47 = vpop.f32.mrf.mxu0  ;;  %v3146_v26 = vpop.f32.mrf.mxu1 }
 0x207   : > { %v2311_v16 = vadd.f32 %v2310_v61, %v2232_v63  ;;  %v2379_v46 = vadd.f32 %v2378_v24, %v2348_v32  ;;  %v2240_v27 = vadd.f32 %v2239_v47, %v2079_v49  ;;  %v3147_v55 = vadd.f32 %v3146_v26, %v3145_v8 }
 0x208   : > { %v3222_v11 = vpop.f32.mrf.mxu0  ;;  %v3148_v56 = vpop.f32.mrf.mxu1 }
 0x209   : > { %v2380_v25 = vadd.f32 %v2379_v46, %v2349_v53  ;;  %2282 = vst [vmem:[%s4794_s30 + $0xe0] sm:$0xff] %v2240_v27  ;;  %v2312_v5 = vadd.f32 %v2311_v16, %v2235_v31  ;;  %v2351_v45 = vmul.f32 %v2240_v27, %v2240_v27  ;;  %v2087_v35 = vadd.f32 %v3147_v55, %v4781_v42 }
 0x20a   : > { %v2242_v0 = vpop.f32.mrf.mxu0  ;;  %v3149_v33 = vpop.f32.mrf.mxu1 }
 0x20b   : > { %v2313_v28 = vadd.f32 %v2312_v5, %v2240_v27  ;;  %v2381_v52 = vadd.f32 %v2380_v25, %v2350_v43  ;;  %v2243_v2 = vadd.f32 %v2242_v0, %v2082_v13  ;;  %v2248_v37 = vadd.f32 %v3221_v12, %v2087_v35 }
 0x20c   : > { %v3150_v48 = vadd.f32 %v3149_v33, %v3148_v56 }
 0x20d   : > { %v2382_v36 = vadd.f32 %v2381_v52, %v2351_v45  ;;  %2283 = vst [vmem:[%s4794_s30 + $0xe8] sm:$0xff] %v2243_v2  ;;  %v2314_v41 = vadd.f32 %v2313_v28, %v2243_v2  ;;  %v2352_v4 = vmul.f32 %v2243_v2, %v2243_v2  ;;  %2284 = vst [vmem:[%s4794_s30 + $0xf0] sm:$0xff] %v2248_v37 }
 0x20e   : > { %v2090_v23 = vadd.f32 %v3150_v48, %v4799_v15  ;;  %v2353_v6 = vmul.f32 %v2248_v37, %v2248_v37 }
 0x20f   : > { %v2315_v22 = vadd.f32 %v2314_v41, %v2248_v37  ;;  %v2383_v39 = vadd.f32 %v2382_v36, %v2352_v4 }
 0x210   : > { %v2251_v60 = vadd.f32 %v3222_v11, %v2090_v23 }
 0x211   : > { %v2384_v42 = vadd.f32 %v2383_v39, %v2353_v6 }
 0x212   : > { %2285 = vst [vmem:[%s4794_s30 + $0xf8] sm:$0xff] %v2251_v60  ;;  %v2354_v63 = vmul.f32 %v2251_v60, %v2251_v60  ;;  %v2316_v17 = vadd.f32 %v2315_v22, %v2251_v60 }
 0x214   : > { %v2317_v20 = vrot.slane %v2316_v17, 4  ;;  %v2385_v3 = vadd.f32 %v2384_v42, %v2354_v63 }
 0x216   : > { %v2318_v21 = vadd.f32 %v2317_v20, %v2316_v17  ;;  %v2386_v9 = vrot.slane %v2385_v3, 4 }
 0x218   : > { %v2319_v19 = vrot.slane %v2318_v21, 2  ;;  %v2387_v30 = vadd.f32 %v2386_v9, %v2385_v3 }
 0x21a   : > { %v2320_v44 = vadd.f32 %v2319_v19, %v2318_v21  ;;  %v2388_v18 = vrot.slane %v2387_v30, 2 }
 0x21c   : > { %v2321_v38 = vrot.slane %v2320_v44, 1  ;;  %v2389_v62 = vadd.f32 %v2388_v18, %v2387_v30 }
 0x21e   : > { %v2390_v15 = vrot.slane %v2389_v62, 1  ;;  %v2322_v1 = vadd.f32 %v2321_v38, %v2320_v44 }
 0x220   : > { %v2391_v10 = vadd.f32 %v2390_v15, %v2389_v62 }
 0x222   : > { %v2393_v59 = vsel %vm2392_vm6, %v2322_v1, %v2391_v10 }
 0x223   : > { %2394 = vst [vmem:[%s208_s8] sm:$0x3] %v2393_v59 }
 0x224 PF: > { %s15_s15 = sadd.s32 1, %s3329_s15  }
 0x225   : > { %p12_p4 = scmp.ge.s32.totalorder %s15_s15, 4  }
 0x227   :  { %14 = sbr.rel (!%p12_p4) target bundleno = 1 (0x1), region = 74 }

// kernel: bottleneck_pallas.3
= control target key start
LH: loop header
LB: loop body
LE: loop exit
PB: predicated region body
PF: predicated region fallthrough
CT: control target
= control target key end

     0   :  { %s3800_s21 = smov 0   ;;  %s5135_s0 = inlined_call_operand.vmem [shape: f32[2,18,18,128], index: 0, kind: input, shape index: {}]   ;;  %s5136_s1 = inlined_call_operand.vmem [shape: f32[2,128], index: 1, kind: input, shape index: {}]   ;;  %s5137_s2 = inlined_call_operand.vmem [shape: bf16[1152,128], index: 2, kind: input, shape index: {}]   ;;  %s5138_s3 = inlined_call_operand.vmem [shape: bf16[128,128], index: 3, kind: input, shape index: {}]   ;;  %s5139_s4 = inlined_call_operand.vmem [shape: f32[2,16,16,128], index: 4, kind: output, shape index: {0}]   ;;  %s5140_s5 = inlined_call_operand.vmem [shape: f32[2,16,16,128], index: 5, kind: output, shape index: {1}]   ;;  %s5141_s6 = inlined_call_operand.vmem [shape: f32[2,2,128], index: 6, kind: output, shape index: {2}]  }
   0x1 LB: > { %s2837_s22 = sadd.s32 4294967295, %s3760_s21   ;;  %p2841_p0 = scmp.ge.s32.totalorder %s3760_s21, 1  ;;  %s3760_s21 = sphi %s3800_s21, %s17_s21  }
   0x2   : > { %p217_p1 = scmp.lt.s32.totalorder %s3760_s21, 3 }
   0x4   : > { %p218_p2 = pnand %p2841_p0, %p217_p1 }
   0x6   : > { %221 = sbr.rel (%p218_p2) target bundleno = 580 (0x244), region = 36 }
   0xb   : > { %v3674_v0 = vld [vmem:[%s5137_s2 + $0x78] sm:$0xff]   ;;  %v3762_v2 = vmov 0.0   ;;  %v3678_v7 = vld [vmem:[%s5137_s2 + $0x70] sm:$0xff]   ;;  %v3682_v11 = vld [vmem:[%s5137_s2 + $0x68] sm:$0xff]   ;;  %p256_p3 = scmp.lt.s32.totalorder %s2837_s22, 1  ;;  %v475_v24 = vlaneseq  ;;  %v5142_v50 = vmov 0.0|0.0  }
   0xc   : > { %v3675_v1 = vld [vmem:[%s5137_s2 + $0xf8] sm:$0xff]   ;;  %v770_v3 = vrot.slane %v3762_v2, 1  ;;  %3070 = vmatprep.subr.bf16.mxu0 %v3674_v0  ;;  %v3679_v8 = vld [vmem:[%s5137_s2 + $0xf0] sm:$0xff]   ;;  %v3683_v12 = vld [vmem:[%s5137_s2 + $0xe8] sm:$0xff]   ;;  %v883_v38 = vrot.slane %v3762_v2, 2  ;;  %vm769_vm1 = vcmask 1046528  }
   0xd   : > { %v3676_v4 = vld [vmem:[%s5137_s2 + $0x38] sm:$0xff]   ;;  %3182 = vmatprep.subr.bf16.mxu1 %v3675_v1  ;;  %v3680_v9 = vld [vmem:[%s5137_s2 + $0x30] sm:$0xff]   ;;  %v3684_v13 = vld [vmem:[%s5137_s2 + $0x28] sm:$0xff]   ;;  %s5182_s22 = smov (!%p256_p3, %s2837_s22), 1  ;;  %v3893_v29 = vshrl.u32 %v475_v24, 7  ;;  %vm882_vm3 = vcmask 1045504  }
   0xe   : > { %v3677_v5 = vld [vmem:[%s5137_s2 + $0xb8] sm:$0xff]   ;;  %v3821_v6 = vpack.c.bf16 %v770_v3, %v770_v3  ;;  %3071 = vmatpush3.bf16.msra.mxu0 %v3676_v4  ;;  %v3681_v10 = vld [vmem:[%s5137_s2 + $0xb0] sm:$0xff]   ;;  %v3685_v14 = vld [vmem:[%s5137_s2 + $0xa8] sm:$0xff]   ;;  %s3662_s7 = smul.u32 432, %s5182_s22  ;;  %v3938_v46 = vpack.c.bf16 %v883_v38, %v883_v38  ;;  %vm3764_vm4 = vmmov 1   ;;  %s3068_s13 = sshll.u32 %s5182_s22, 8 }
   0xf   : > { %3183 = vmatpush3.bf16.msra.mxu1 %v3677_v5  ;;  %3072 = vmatprep.subr.bf16.mxu0 %v3678_v7  ;;  %v3686_v15 = vld [vmem:[%s5137_s2 + $0x60] sm:$0xff]   ;;  %v3690_v19 = vld [vmem:[%s5137_s2 + $0x58] sm:$0xff]   ;;  %v3694_v23 = vld [vmem:[%s5137_s2 + $0x50] sm:$0xff]   ;;  %v477_v34 = vsub.s32 0, %v3893_v29  ;;  %v535_v36 = vsub.s32 1, %v3893_v29  ;;  %v3931_v43 = vadd.s32 16, %v3893_v29  ;;  %s5015_s16 = scalar_lea.vmem %s5139_s4, %s3068_s13  ;;  %s5023_s20 = scalar_lea.vmem %s5140_s5, %s3068_s13 }
  0x10   : > { %5158 = vst [vmem:[#allocation2_spill] sm:$0xff] %v3821_v6  ;;  %1547 = vmatprep.mubr.bf16.mxu0 %v3821_v6  ;;  %3184 = vmatprep.subr.bf16.mxu1 %v3679_v8  ;;  %v3687_v16 = vld [vmem:[%s5137_s2 + $0xe0] sm:$0xff]   ;;  %v3691_v20 = vld [vmem:[%s5137_s2 + $0xd8] sm:$0xff]   ;;  %v3695_v25 = vld [vmem:[%s5137_s2 + $0xd0] sm:$0xff]   ;;  %s3915_s18 = scalar_lea.vmem %s5135_s0, %s3662_s7  ;;  %vm649_vm0 = vcmp.ge.s32.totalorder %v3893_v29, 1  ;;  %s2847_s23 = sshll.u32 %s5182_s22, 1 }
  0x11   : > { %v3688_v17 = vld [vmem:[%s5137_s2 + $0x20] sm:$0xff]   ;;  %v3692_v21 = vld [vmem:[%s5137_s2 + $0x18] sm:$0xff]   ;;  %v3696_v26 = vld [vmem:[%s5137_s2 + $0x10] sm:$0xff]   ;;  %5159 = vst [vmem:[#allocation3_spill] sm:$0xff] %v3938_v46  ;;  %vm660_vm2 = vcmp.le.s32.totalorder %v3931_v43, 16  ;;  %vm2715_vm6 = vcmask 1040384   ;;  %s274_s26 = scalar_lea.vmem %s5141_s6, %s2847_s23 }
  0x12   : > { %3073 = vmatpush3.bf16.msra.mxu0 %v3680_v9  ;;  %v3689_v18 = vld [vmem:[%s5137_s2 + $0xa0] sm:$0xff]   ;;  %v3693_v22 = vld [vmem:[%s5137_s2 + $0x98] sm:$0xff]   ;;  %v3697_v27 = vld [vmem:[%s5137_s2 + $0x90] sm:$0xff]  }
  0x13   : > { %3185 = vmatpush3.bf16.msra.mxu1 %v3681_v10  ;;  %3074 = vmatprep.subr.bf16.mxu0 %v3682_v11  ;;  %v3698_v28 = vld [vmem:[%s5137_s2 + $0x48] sm:$0xff]   ;;  %v3702_v33 = vld [vmem:[%s5137_s2 + $0x40] sm:$0xff]   ;;  %v279_v40 = vld [vmem:[%s3915_s18 + $0x18] sm:$0xff] }
  0x14   : > { %3186 = vmatprep.subr.bf16.mxu1 %v3683_v12  ;;  %v3699_v30 = vld [vmem:[%s5137_s2 + $0xc8] sm:$0xff]   ;;  %v3703_v35 = vld [vmem:[%s5137_s2 + $0xc0] sm:$0xff]   ;;  %v3706_v47 = vld [vmem:[%s5137_s2 + $0x178] sm:$0xff]  }
  0x15   : > { %v3700_v31 = vld [vmem:[%s5137_s2 + $0x8] sm:$0xff]   ;;  %v3704_v37 = vld [vmem:[%s5137_s2] sm:$0xff]   ;;  %v3707_v51 = vld [vmem:[%s5137_s2 + $0x138] sm:$0xff]  }
  0x16   : > { %3075 = vmatpush3.bf16.msra.mxu0 %v3684_v13  ;;  %v3701_v32 = vld [vmem:[%s5137_s2 + $0x88] sm:$0xff]   ;;  %v3705_v39 = vld [vmem:[%s5137_s2 + $0x80] sm:$0xff]   ;;  %v282_v53 = vld [vmem:[%s3915_s18 + $0x30] sm:$0xff] }
  0x17   : > { %3187 = vmatpush3.bf16.msra.mxu1 %v3685_v14  ;;  %3076 = vmatprep.subr.bf16.mxu0 %v3686_v15  ;;  %v280_v41 = vld [vmem:[%s3915_s18 + $0x20] sm:$0xff]  ;;  %v281_v52 = vld [vmem:[%s3915_s18 + $0x28] sm:$0x3]  ;;  %v283_v55 = vld [vmem:[%s3915_s18 + $0x38] sm:$0xff] }
  0x18   : > { %3188 = vmatprep.subr.bf16.mxu1 %v3687_v16  ;;  %v330_v42 = vld [vmem:[%s5136_s1] sm:$0x3]  ;;  %v285_v58 = vld [vmem:[%s3915_s18 + $0x48] sm:$0xff]  ;;  %v286_v63 = vld [vmem:[%s3915_s18 + $0x50] sm:$0xff] }
  0x19   : > { %v3933_v44 = vrot.slane %v330_v42, %v477_v34  ;;  %v3935_v45 = vrot.slane %v330_v42, %v535_v36  ;;  %v284_v57 = vld [vmem:[%s3915_s18 + $0x40] sm:$0x3]  ;;  %v3708_v4 = vld [vmem:[%s5137_s2 + $0x170] sm:$0xff]   ;;  %vm3976_vm5 = vmpackc.low %vm3764_vm4, %vm649_vm0 }
  0x1a   : > { %3077 = vmatpush3.bf16.msra.mxu0 %v3688_v17  ;;  %v3709_v10 = vld [vmem:[%s5137_s2 + $0x130] sm:$0xff]   ;;  %v3710_v16 = vld [vmem:[%s5137_s2 + $0x1f8] sm:$0xff]   ;;  %v288_v36 = vld [vmem:[%s3915_s18 + $0x60] sm:$0xff] }
  0x1b   : > { %3189 = vmatpush3.bf16.msra.mxu1 %v3689_v18  ;;  %3078 = vmatprep.subr.bf16.mxu0 %v3690_v19  ;;  %v482_v48 = vmul.f32 %v3933_v44, %v279_v40  ;;  %v483_v49 = vmul.f32 %v3933_v44, %v280_v41  ;;  %v484_v54 = vmul.f32 %v3933_v44, %v281_v52 }
  0x1c   : > { %3190 = vmatprep.subr.bf16.mxu1 %v3691_v20  ;;  %v485_v56 = vmul.f32 %v3933_v44, %v282_v53  ;;  %v486_v61 = vmul.f32 %v3933_v44, %v283_v55  ;;  %v487_v62 = vmul.f32 %v3933_v44, %v284_v57  ;;  %v488_v2 = vmul.f32 %v3933_v44, %v285_v58  ;;  %v289_v53 = vld [vmem:[%s3915_s18 + $0x68] sm:$0xff] }
  0x1d   : > { %v540_v59 = vadd.f32 %v3935_v45, %v482_v48  ;;  %v541_v60 = vadd.f32 %v3935_v45, %v483_v49  ;;  %v542_v0 = vadd.f32 %v3935_v45, %v484_v54  ;;  %v489_v3 = vmul.f32 %v3933_v44, %v286_v63  ;;  %v3712_v48 = vld [vmem:[%s5137_s2 + $0x168] sm:$0xff]   ;;  %v290_v54 = vld [vmem:[%s3915_s18 + $0x70] sm:$0x3] }
  0x1e   : > { %3079 = vmatpush3.bf16.msra.mxu0 %v3692_v21  ;;  %v543_v1 = vadd.f32 %v3935_v45, %v485_v56  ;;  %v544_v8 = vadd.f32 %v3935_v45, %v486_v61  ;;  %v545_v9 = vadd.f32 %v3935_v45, %v487_v62  ;;  %v546_v14 = vadd.f32 %v3935_v45, %v488_v2  ;;  %v3711_v21 = vld [vmem:[%s5137_s2 + $0x1b8] sm:$0xff]   ;;  %v3713_v55 = vld [vmem:[%s5137_s2 + $0x128] sm:$0xff]   ;;  %v3714_v61 = vld [vmem:[%s5137_s2 + $0x1f0] sm:$0xff]  }
  0x1f   : > { %3191 = vmatpush3.bf16.msra.mxu1 %v3693_v22  ;;  %3080 = vmatprep.subr.bf16.mxu0 %v3694_v23  ;;  %v594_v5 = vmax.f32 %v540_v59, 0.0  ;;  %v595_v7 = vmax.f32 %v541_v60, 0.0  ;;  %v596_v12 = vmax.f32 %v542_v0, 0.0  ;;  %v547_v15 = vadd.f32 %v3935_v45, %v489_v3  ;;  %v291_v60 = vld [vmem:[%s3915_s18 + $0x78] sm:$0xff]  ;;  %v3715_v2 = vld [vmem:[%s5137_s2 + $0x1b0] sm:$0xff]  }
  0x20   : > { %3192 = vmatprep.subr.bf16.mxu1 %v3695_v25  ;;  %v597_v13 = vmax.f32 %v543_v1, 0.0  ;;  %v598_v20 = vmax.f32 %v544_v8, 0.0  ;;  %v491_v1 = vmul.f32 %v3933_v44, %v288_v36  ;;  %v292_v8 = vld [vmem:[%s3915_s18 + $0x80] sm:$0xff] }
  0x21   : > { %v670_v17 = vsel %vm649_vm0, %v594_v5, 0.0  ;;  %v2921_v18 = vpack.c.bf16 %v595_v7, %v594_v5  ;;  %v776_v19 = vrot.slane %v595_v7, 1  ;;  %v672_v24 = vsel %vm660_vm2, %v596_v12, 0.0 }
  0x22   : > { %3081 = vmatpush3.bf16.msra.mxu0 %v3696_v26  ;;  %v775_v22 = vrot.slane %v670_v17, 1  ;;  %v888_v23 = vrot.slane %v670_v17, 2  ;;  %v673_v25 = vsel %vm649_vm0, %v597_v13, 0.0  ;;  %v778_v26 = vrot.slane %v672_v24, 1  ;;  %v3716_v17 = vld [vmem:[%s5137_s2 + $0x160] sm:$0xff]  }
  0x23   : > { %3193 = vmatpush3.bf16.msra.mxu1 %v3697_v27  ;;  %3082 = vmatprep.subr.bf16.mxu0 %v3698_v28  ;;  %v780_v27 = vrot.slane %v673_v25, 1  ;;  %v3996_v28 = vpack.c.bf16 %v598_v20, %v597_v13  ;;  %v781_v34 = vrot.slane %v598_v20, 1  ;;  %v4007_v40 = vmax.f32 %v547_v15, 0.0 }
  0x24   : > { %3194 = vmatprep.subr.bf16.mxu1 %v3699_v30  ;;  %2967 = vmatprep.mubr.msk.bf16.mxu1 %vm3976_vm5, %v2921_v18  ;;  %v889_v30 = vrot.slane %v595_v7, 2  ;;  %v893_v57 = vrot.slane %v673_v25, 2  ;;  %v894_v58 = vrot.slane %v598_v20, 2  ;;  %v492_v7 = vmul.f32 %v3933_v44, %v289_v53  ;;  %v295_v53 = vld [vmem:[%s3915_s18 + $0x98] sm:$0xff] }
  0x25   : > { %v549_v12 = vadd.f32 %v3935_v45, %v491_v1  ;;  %v899_v25 = vrot.slane %v4007_v40, 2  ;;  %v3721_v1 = vld [vmem:[%s5137_s2 + $0x118] sm:$0xff]  }
  0x26   : > { %3083 = vmatpush3.bf16.msra.mxu0 %v3700_v31  ;;  %v777_v31 = vsel %vm769_vm1, %v775_v22, %v776_v19  ;;  %v890_v38 = vsel %vm882_vm3, %v888_v23, %v889_v30  ;;  %v550_v15 = vadd.f32 %v3935_v45, %v492_v7  ;;  %v495_v22 = vmul.f32 %v3933_v44, %v292_v8 }
  0x27   : > { %3195 = vmatpush3.bf16.msra.mxu1 %v3701_v32  ;;  %3084 = vmatprep.subr.bf16.mxu0 %v3702_v33  ;;  %v891_v32 = vrot.slane %v672_v24, 2  ;;  %v599_v33 = vmax.f32 %v545_v9, 0.0  ;;  %v603_v20 = vmax.f32 %v549_v12, 0.0  ;;  %v498_v12 = vmul.f32 %v3933_v44, %v295_v53 }
  0x28   : > { %3196 = vmatprep.subr.bf16.mxu1 %v3703_v35  ;;  %v287_v35 = vld [vmem:[%s3915_s18 + $0x58] sm:$0x3]  ;;  %v4072_v23 = vmax.f32 %v550_v15, 0.0  ;;  %v297_v15 = vld [vmem:[%s3915_s18 + $0xa8] sm:$0xff] }
  0x29   : > { %v892_v42 = vsel %vm882_vm3, %v889_v30, %v891_v32  ;;  %v490_v0 = vmul.f32 %v3933_v44, %v287_v35 }
  0x2a   : > { %3085 = vmatpush3.bf16.msra.mxu0 %v3704_v37  ;;  %v779_v37 = vsel %vm769_vm1, %v776_v19, %v778_v26  ;;  %v4017_v49 = vpack.c.bf16 %v892_v42, %v890_v38  ;;  %v3718_v38 = vld [vmem:[%s5137_s2 + $0x1e8] sm:$0xff]   ;;  %v791_v42 = vrot.slane %v4072_v23, 1 }
  0x2b   : > { %3197 = vmatpush3.bf16.msra.mxu1 %v3705_v39  ;;  %3294 = vmatprep.subr.bf16.mxu0 %v3706_v47  ;;  %v600_v39 = vmax.f32 %v546_v14, 0.0  ;;  %v4009_v41 = vpack.c.bf16 %v779_v37, %v777_v31  ;;  %v675_v47 = vsel %vm660_vm2, %v599_v33, 0.0  ;;  %v786_v14 = vrot.slane %v4007_v40, 1 }
  0x2c   : > { %3406 = vmatprep.subr.bf16.mxu1 %v3710_v16  ;;  %v783_v52 = vrot.slane %v675_v47, 1  ;;  %v896_v59 = vrot.slane %v675_v47, 2  ;;  %v493_v16 = vmul.f32 %v3933_v44, %v290_v54  ;;  %v4082_v31 = vsel %vm649_vm0, %v603_v20, 0.0  ;;  %v3719_v54 = vld [vmem:[%s5137_s2 + $0x1a8] sm:$0xff]  }
  0x2d   : > { %1548 = vmatmul.mubr.bf16.vlgmr.msra.gmra.mxu0 %v5142_v50  ;;  %v4028_v56 = vsel %vm649_vm0, %v600_v39, 0.0  ;;  %v4038_v63 = vpack.c.bf16 %v4007_v40, %v600_v39  ;;  %v553_v33 = vadd.f32 %v3935_v45, %v495_v22  ;;  %v790_v36 = vrot.slane %v4082_v31, 1  ;;  %v318_v50 = vld [vmem:[%s3915_s18 + $0x150] sm:$0xff] }
  0x2e   : > { %3295 = vmatpush3.bf16.msra.mxu0 %v3707_v51  ;;  %1709 = vmatmul.mubr.bf16.vlgmr.msra.gmra.mxu1 %v3938_v46  ;;  %v782_v51 = vsel %vm769_vm1, %v780_v27, %v781_v34  ;;  %v784_v62 = vsel %vm769_vm1, %v781_v34, %v783_v52  ;;  %v897_v5 = vsel %vm882_vm3, %v894_v58, %v896_v59  ;;  %v785_v9 = vrot.slane %v4028_v56, 1  ;;  %v293_v27 = vld [vmem:[%s3915_s18 + $0x88] sm:$0x3]  ;;  %v294_v52 = vld [vmem:[%s3915_s18 + $0x90] sm:$0xff] }
  0x2f   : > { %3296 = vmatprep.subr.bf16.mxu0 %v3708_v4  ;;  %2970 = vmatprep.mubr.msk.bf16.mxu1 %vm3976_vm5, %v3996_v28  ;;  %v4045_v3 = vpack.c.bf16 %v784_v62, %v782_v51  ;;  %v895_v4 = vsel %vm882_vm3, %v893_v57, %v894_v58  ;;  %v898_v24 = vrot.slane %v4028_v56, 2  ;;  %v551_v26 = vadd.f32 %v3935_v45, %v493_v16 }
  0x30   : > { %3407 = vmatpush3.bf16.msra.mxu1 %v3711_v21  ;;  %1555 = vmatprep.mubr.bf16.mxu0 %v4009_v41  ;;  %v4056_v13 = vpack.c.bf16 %v897_v5, %v895_v4  ;;  %v494_v21 = vmul.f32 %v3933_v44, %v291_v60  ;;  %v787_v34 = vsel %vm769_vm1, %v785_v9, %v786_v14  ;;  %v4110_v58 = vmax.f32 %v553_v33, 0.0  ;;  %v3724_v33 = vld [vmem:[%s5137_s2 + $0x150] sm:$0xff]  }
  0x31   : > { %3408 = vmatprep.subr.bf16.mxu1 %v3714_v61  ;;  %v4095_v39 = vpack.c.bf16 %v4072_v23, %v603_v20  ;;  %v605_v40 = vmax.f32 %v551_v26, 0.0  ;;  %v496_v47 = vmul.f32 %v3933_v44, %v293_v27  ;;  %v900_v56 = vsel %vm882_vm3, %v898_v24, %v899_v25  ;;  %v298_v27 = vld [vmem:[%s3915_s18 + $0xb0] sm:$0xff] }
  0x32   : > { %3297 = vmatpush3.bf16.msra.mxu0 %v3709_v10  ;;  %v548_v10 = vadd.f32 %v3935_v45, %v490_v0  ;;  %v552_v32 = vadd.f32 %v3935_v45, %v494_v21  ;;  %v792_v60 = vsel %vm769_vm1, %v790_v36, %v791_v42  ;;  %v3720_v0 = vld [vmem:[%s5137_s2 + $0x158] sm:$0xff]   ;;  %v903_v4 = vrot.slane %v4082_v31, 2  ;;  %v3725_v36 = vld [vmem:[%s5137_s2 + $0x110] sm:$0xff]  }
  0x33   : > { %3298 = vmatprep.subr.bf16.mxu0 %v3712_v48  ;;  %v681_v57 = vsel %vm660_vm2, %v605_v40, 0.0  ;;  %v904_v5 = vrot.slane %v4072_v23, 2  ;;  %v554_v7 = vadd.f32 %v3935_v45, %v496_v47  ;;  %v796_v9 = vrot.slane %v4110_v58, 1  ;;  %v3723_v23 = vld [vmem:[%s5137_s2 + $0x1a0] sm:$0xff]   ;;  %v299_v47 = vld [vmem:[%s3915_s18 + $0xb8] sm:$0x3] }
  0x34   : > { %v602_v19 = vmax.f32 %v548_v10, 0.0  ;;  %3409 = vmatpush3.bf16.msra.mxu1 %v3715_v2  ;;  %v606_v51 = vmax.f32 %v552_v32, 0.0  ;;  %v793_v61 = vrot.slane %v681_v57, 1  ;;  %v497_v10 = vmul.f32 %v3933_v44, %v294_v52 }
  0x35   : > { %2922 = vmatmul.mubr.msk.bf16.gmra.mxu0 %vm3976_vm5, %v2921_v18  ;;  %v3717_v18 = vld [vmem:[%s5137_s2 + $0x120] sm:$0xff]   ;;  %3410 = vmatprep.subr.bf16.mxu1 %v3718_v38  ;;  %v556_v22 = vadd.f32 %v3935_v45, %v498_v12  ;;  %v906_v24 = vrot.slane %v681_v57, 2 }
  0x36   : > { %3299 = vmatpush3.bf16.msra.mxu0 %v3713_v55  ;;  %1717 = vmatmul.mubr.bf16.gmra.mxu1 %v4017_v49  ;;  %v678_v30 = vsel %vm660_vm2, %v602_v19, 0.0  ;;  %v4117_v62 = vsel %vm649_vm0, %v606_v51, 0.0  ;;  %v794_v8 = vsel %vm769_vm1, %v791_v42, %v793_v61  ;;  %v4147_v20 = vpack.c.bf16 %v4110_v58, %v606_v51 }
  0x37   : > { %1563 = vmatprep.mubr.bf16.mxu0 %v4045_v3  ;;  %2973 = vmatprep.mubr.msk.bf16.mxu1 %vm3976_vm5, %v4038_v63  ;;  %v788_v35 = vrot.slane %v678_v30, 1  ;;  %v901_v37 = vrot.slane %v678_v30, 2  ;;  %v795_v2 = vrot.slane %v4117_v62, 1  ;;  %v4139_v16 = vpack.c.bf16 %v794_v8, %v792_v60 }
  0x38   : > { %3300 = vmatprep.subr.bf16.mxu0 %v3716_v17  ;;  %3411 = vmatpush3.bf16.msra.mxu1 %v3719_v54  ;;  %v608_v17 = vmax.f32 %v554_v7, 0.0  ;;  %v555_v21 = vadd.f32 %v3935_v45, %v497_v10  ;;  %v500_v30 = vmul.f32 %v3933_v44, %v297_v15  ;;  %v4176_v38 = vmax.f32 %v556_v22, 0.0 }
  0x39   : > { %v789_v48 = vsel %vm769_vm1, %v786_v14, %v788_v35  ;;  %v902_v59 = vsel %vm882_vm3, %v899_v25, %v901_v37  ;;  %v296_v14 = vld [vmem:[%s3915_s18 + $0xa0] sm:$0x3]  ;;  %v501_v42 = vmul.f32 %v3933_v44, %v298_v27  ;;  %v907_v51 = vsel %vm882_vm3, %v904_v5, %v906_v24 }
  0x3a   : > { %3301 = vmatpush3.bf16.msra.mxu0 %v3717_v18  ;;  %v4105_v55 = vpack.c.bf16 %v789_v48, %v787_v34  ;;  %v3722_v18 = vld [vmem:[%s5137_s2 + $0x1e0] sm:$0xff]   ;;  %v4144_v19 = vpack.c.bf16 %v902_v59, %v900_v56  ;;  %v4159_v25 = vsel %vm660_vm2, %v608_v17, 0.0  ;;  %v499_v26 = vmul.f32 %v3933_v44, %v296_v14  ;;  %v3726_v59 = vld [vmem:[%s5137_s2 + $0x1d8] sm:$0xff]  }
  0x3b   : > { %3302 = vmatprep.subr.bf16.mxu0 %v3720_v0  ;;  %3412 = vmatprep.subr.bf16.mxu1 %v3722_v18  ;;  %v798_v31 = vrot.slane %v4159_v25, 1  ;;  %v609_v32 = vmax.f32 %v555_v21, 0.0  ;;  %v797_v34 = vsel %vm769_vm1, %v795_v2, %v796_v9  ;;  %v905_v48 = vsel %vm882_vm3, %v903_v4, %v904_v5  ;;  %v3727_v2 = vld [vmem:[%s5137_s2 + $0x198] sm:$0xff]   ;;  %v3728_v18 = vld [vmem:[%s5137_s2 + $0x148] sm:$0xff]  }
  0x3c   : > { %3413 = vmatpush3.bf16.msra.mxu1 %v3723_v23  ;;  %v557_v35 = vadd.f32 %v3935_v45, %v499_v26  ;;  %v4190_v53 = vadd.f32 %v3935_v45, %v500_v30  ;;  %v801_v57 = vrot.slane %v4176_v38, 1  ;;  %v908_v60 = vrot.slane %v4117_v62, 2  ;;  %v301_v62 = vld [vmem:[%s3915_s18 + $0xc8] sm:$0xff] }
  0x3d   : > { %2925 = vmatmul.mubr.msk.bf16.gmra.mxu0 %vm3976_vm5, %v3996_v28  ;;  %v799_v37 = vsel %vm769_vm1, %v796_v9, %v798_v31  ;;  %v4180_v40 = vsel %vm649_vm0, %v609_v32, 0.0  ;;  %v502_v0 = vmul.f32 %v3933_v44, %v299_v47  ;;  %v4209_v4 = vpack.c.bf16 %v907_v51, %v905_v48  ;;  %v302_v9 = vld [vmem:[%s3915_s18 + $0xd0] sm:$0x3]  ;;  %3414 = vmatprep.subr.bf16.mxu1 %v3726_v59  ;;  %v303_v48 = vld [vmem:[%s3915_s18 + $0xd8] sm:$0xff] }
  0x3e   : > { %1725 = vmatmul.mubr.bf16.gmra.mxu1 %v4056_v13  ;;  %1571 = vmatprep.mubr.bf16.mxu0 %v4105_v55  ;;  %v611_v52 = vmax.f32 %v557_v35, 0.0  ;;  %v4192_v54 = vpack.c.bf16 %v799_v37, %v797_v34  ;;  %v800_v56 = vrot.slane %v4180_v40, 1  ;;  %v909_v5 = vrot.slane %v4110_v58, 2  ;;  %v3730_v31 = vld [vmem:[%s5137_s2 + $0x1d0] sm:$0xff]  }
  0x3f   : > { %2976 = vmatprep.mubr.msk.bf16.mxu1 %vm3976_vm5, %v4095_v39  ;;  %3303 = vmatpush3.bf16.msra.mxu0 %v3721_v1  ;;  %v300_v1 = vld [vmem:[%s3915_s18 + $0xc0] sm:$0xff]  ;;  %v559_v8 = vadd.f32 %v3935_v45, %v501_v42  ;;  %v4220_v10 = vpack.c.bf16 %v4176_v38, %v609_v32  ;;  %v911_v12 = vrot.slane %v4159_v25, 2  ;;  %v612_v14 = vmax.f32 %v4190_v53, 0.0  ;;  %v3729_v25 = vld [vmem:[%s5137_s2 + $0x108] sm:$0xff]  }
  0x40   : > { %3304 = vmatprep.subr.bf16.mxu0 %v3724_v33  ;;  %v4202_v61 = vsel %vm660_vm2, %v611_v52, 0.0  ;;  %v560_v58 = vadd.f32 %v3935_v45, %v502_v0  ;;  %3415 = vmatpush3.bf16.msra.mxu1 %v3727_v2  ;;  %v802_v15 = vsel %vm769_vm1, %v800_v56, %v801_v57  ;;  %v503_v17 = vmul.f32 %v3933_v44, %v300_v1  ;;  %v304_v56 = vld [vmem:[%s3915_s18 + $0xe0] sm:$0xff] }
  0x41   : > { %v803_v7 = vrot.slane %v4202_v61, 1  ;;  %v4234_v22 = vsel %vm649_vm0, %v612_v14, 0.0  ;;  %v504_v24 = vmul.f32 %v3933_v44, %v301_v62  ;;  %v910_v26 = vsel %vm882_vm3, %v908_v60, %v909_v5  ;;  %3416 = vmatprep.subr.bf16.mxu1 %v3730_v31  ;;  %v3733_v0 = vld [vmem:[%s5137_s2 + $0x100] sm:$0xff]  }
  0x42   : > { %v614_v23 = vmax.f32 %v560_v58, 0.0  ;;  %v4242_v27 = vmax.f32 %v559_v8, 0.0  ;;  %v913_v30 = vrot.slane %v4180_v40, 2  ;;  %v912_v32 = vsel %vm882_vm3, %v909_v5, %v911_v12  ;;  %v3734_v58 = vld [vmem:[%s5137_s2 + $0x1c8] sm:$0xff]  }
  0x43   : > { %3305 = vmatpush3.bf16.msra.mxu0 %v3725_v36  ;;  %v804_v21 = vsel %vm769_vm1, %v801_v57, %v803_v7  ;;  %v4257_v34 = vadd.f32 %v3935_v45, %v503_v17  ;;  %v505_v35 = vmul.f32 %v3933_v44, %v302_v9  ;;  %v3731_v36 = vld [vmem:[%s5137_s2 + $0x190] sm:$0xff]   ;;  %v805_v40 = vrot.slane %v4234_v22, 1  ;;  %v305_v57 = vld [vmem:[%s3915_s18 + $0xe8] sm:$0x3] }
  0x44   : > { %3306 = vmatprep.subr.bf16.mxu0 %v3728_v18  ;;  %v4254_v33 = vsel %vm660_vm2, %v614_v23, 0.0  ;;  %v4263_v37 = vpack.c.bf16 %v804_v21, %v802_v15  ;;  %v914_v42 = vrot.slane %v4176_v38, 2  ;;  %v806_v47 = vrot.slane %v4242_v27, 1  ;;  %3417 = vmatpush3.bf16.msra.mxu1 %v3731_v36  ;;  %v3732_v38 = vld [vmem:[%s5137_s2 + $0x140] sm:$0xff]   ;;  %v306_v23 = vld [vmem:[%s3915_s18 + $0xf0] sm:$0xff] }
  0x45   : > { %2928 = vmatmul.mubr.msk.bf16.gmra.mxu0 %vm3976_vm5, %v4038_v63  ;;  %v808_v51 = vrot.slane %v4254_v33, 1  ;;  %v562_v52 = vadd.f32 %v3935_v45, %v504_v24  ;;  %v563_v53 = vadd.f32 %v3935_v45, %v505_v35  ;;  %v4274_v59 = vpack.c.bf16 %v912_v32, %v910_v26  ;;  %v308_v24 = vld [vmem:[%s3915_s18 + $0x100] sm:$0x3]  ;;  %3418 = vmatprep.subr.bf16.mxu1 %v3734_v58  ;;  %v307_v35 = vld [vmem:[%s3915_s18 + $0xf8] sm:$0xff] }
  0x46   : > { %1579 = vmatprep.mubr.bf16.mxu0 %v4139_v16  ;;  %1733 = vmatmul.mubr.bf16.gmra.mxu1 %v4144_v19  ;;  %v916_v60 = vrot.slane %v4202_v61, 2  ;;  %v4287_v1 = vpack.c.bf16 %v4242_v27, %v612_v14  ;;  %v615_v2 = vmax.f32 %v4257_v34, 0.0  ;;  %v506_v61 = vmul.f32 %v3933_v44, %v303_v48  ;;  %v3736_v36 = vld [vmem:[%s5137_s2 + $0x1c0] sm:$0xff]  }
  0x47   : > { %2979 = vmatprep.mubr.msk.bf16.mxu1 %vm3976_vm5, %v4147_v20  ;;  %3307 = vmatpush3.bf16.msra.mxu0 %v3729_v25  ;;  %v617_v5 = vmax.f32 %v563_v53, 0.0  ;;  %v915_v7 = vsel %vm882_vm3, %v913_v30, %v914_v42  ;;  %v807_v8 = vsel %vm769_vm1, %v805_v40, %v806_v47  ;;  %v809_v62 = vsel %vm769_vm1, %v806_v47, %v808_v51  ;;  %v3735_v25 = vld [vmem:[%s5137_s2 + $0x188] sm:$0xff]  }
  0x48   : > { %3308 = vmatprep.subr.bf16.mxu0 %v3732_v38  ;;  %v4295_v9 = vmax.f32 %v562_v52, 0.0  ;;  %v4299_v12 = vsel %vm649_vm0, %v615_v2, 0.0  ;;  %v508_v14 = vmul.f32 %v3933_v44, %v305_v57  ;;  %v917_v15 = vsel %vm882_vm3, %v914_v42, %v916_v60  ;;  %3419 = vmatpush3.bf16.msra.mxu1 %v3735_v25 }
  0x49   : > { %v918_v17 = vrot.slane %v4234_v22, 2  ;;  %v4310_v18 = vsel %vm660_vm2, %v617_v5, 0.0  ;;  %v507_v21 = vmul.f32 %v3933_v44, %v304_v56  ;;  %v919_v26 = vrot.slane %v4242_v27, 2  ;;  %v3737_v27 = vld [vmem:[%s5137_s2 + $0x180] sm:$0xff]   ;;  %3420 = vmatprep.subr.bf16.mxu1 %v3736_v36  ;;  %v4365_v5 = vld [vmem:[%s5138_s3 + $0x38] sm:$0xff]  }
  0x4a   : > { %v811_v22 = vrot.slane %v4295_v9, 1  ;;  %v564_v30 = vadd.f32 %v3935_v45, %v506_v61  ;;  %v566_v31 = vadd.f32 %v3935_v45, %v508_v14  ;;  %v4325_v32 = vpack.c.bf16 %v809_v62, %v807_v8  ;;  %v311_v14 = vld [vmem:[%s3915_s18 + $0x118] sm:$0x3] }
  0x4b   : > { %3309 = vmatpush3.bf16.msra.mxu0 %v3733_v0  ;;  %v810_v34 = vrot.slane %v4299_v12, 1  ;;  %v813_v40 = vrot.slane %v4310_v18, 1  ;;  %v4336_v42 = vpack.c.bf16 %v917_v15, %v915_v7  ;;  %v921_v47 = vrot.slane %v4254_v33, 2  ;;  %v4351_v33 = vld [vmem:[%s5137_s2 + $0x238] sm:$0xff]  }
  0x4c   : > { %v565_v48 = vadd.f32 %v3935_v45, %v507_v21  ;;  %v620_v51 = vmax.f32 %v566_v31, 0.0  ;;  %v4344_v52 = vpack.c.bf16 %v4295_v9, %v615_v2  ;;  %v618_v53 = vmax.f32 %v564_v30, 0.0  ;;  %3421 = vmatpush3.bf16.msra.mxu1 %v3737_v27  ;;  %3566 = vmatprep.subr.bf16.mxu0 %v4351_v33 }
  0x4d   : > { %2931 = vmatmul.mubr.msk.bf16.gmra.mxu0 %vm3976_vm5, %v4095_v39  ;;  %v509_v56 = vmul.f32 %v3933_v44, %v306_v23  ;;  %v511_v57 = vmul.f32 %v3933_v44, %v308_v24  ;;  %v812_v60 = vsel %vm769_vm1, %v810_v34, %v811_v22  ;;  %v814_v38 = vsel %vm769_vm1, %v811_v22, %v813_v40  ;;  %v309_v23 = vld [vmem:[%s3915_s18 + $0x108] sm:$0xff] }
  0x4e   : > { %1587 = vmatprep.mubr.bf16.mxu0 %v4192_v54  ;;  %1741 = vmatmul.mubr.bf16.gmra.mxu1 %v4209_v4  ;;  %v4358_v0 = vsel %vm649_vm0, %v618_v53, 0.0  ;;  %v510_v2 = vmul.f32 %v3933_v44, %v307_v35  ;;  %v920_v61 = vsel %vm882_vm3, %v918_v17, %v919_v26  ;;  %v922_v7 = vsel %vm882_vm3, %v919_v26, %v921_v47  ;;  %v310_v35 = vld [vmem:[%s3915_s18 + $0x110] sm:$0xff] }
  0x4f   : > { %2982 = vmatprep.mubr.msk.bf16.mxu1 %vm3976_vm5, %v4220_v10  ;;  %v4372_v8 = vsel %vm660_vm2, %v620_v51, 0.0  ;;  %v569_v62 = vadd.f32 %v3935_v45, %v511_v57  ;;  %v619_v58 = vmax.f32 %v565_v48, 0.0  ;;  %v567_v15 = vadd.f32 %v3935_v45, %v509_v56  ;;  %3614 = vmatprep.subr.bf16.mxu1 %v4365_v5 }
  0x50   : > { %v4381_v17 = vpack.c.bf16 %v814_v38, %v812_v60  ;;  %v815_v21 = vrot.slane %v4358_v0, 1  ;;  %v4385_v24 = vpack.c.bf16 %v922_v7, %v920_v61  ;;  %v818_v26 = vrot.slane %v4372_v8, 1 }
  0x51   : > { %v816_v25 = vrot.slane %v619_v58, 1  ;;  %v568_v22 = vadd.f32 %v3935_v45, %v510_v2  ;;  %v923_v30 = vrot.slane %v4299_v12, 2  ;;  %v924_v31 = vrot.slane %v4295_v9, 2  ;;  %v314_v2 = vld [vmem:[%s3915_s18 + $0x130] sm:$0x3] }
  0x52   : > { %v623_v34 = vmax.f32 %v569_v62, 0.0  ;;  %v514_v36 = vmul.f32 %v3933_v44, %v311_v14  ;;  %v4396_v40 = vpack.c.bf16 %v619_v58, %v618_v53  ;;  %v926_v27 = vrot.slane %v4310_v18, 2  ;;  %v312_v14 = vld [vmem:[%s3915_s18 + $0x120] sm:$0xff] }
  0x53   : > { %v621_v47 = vmax.f32 %v567_v15, 0.0  ;;  %v512_v12 = vmul.f32 %v3933_v44, %v309_v23  ;;  %v817_v9 = vsel %vm769_vm1, %v815_v21, %v816_v25  ;;  %v819_v48 = vsel %vm769_vm1, %v816_v25, %v818_v26 }
  0x54   : > { %v4403_v51 = vmax.f32 %v568_v22, 0.0  ;;  %v4412_v18 = vsel %vm660_vm2, %v623_v34, 0.0  ;;  %v572_v56 = vadd.f32 %v3935_v45, %v514_v36  ;;  %v925_v57 = vsel %vm882_vm3, %v923_v30, %v924_v31 }
  0x55   : > { %2934 = vmatmul.mubr.msk.bf16.gmra.mxu0 %vm3976_vm5, %v4147_v20  ;;  %v4408_v53 = vsel %vm649_vm0, %v621_v47, 0.0  ;;  %v927_v60 = vsel %vm882_vm3, %v924_v31, %v926_v27  ;;  %v513_v38 = vmul.f32 %v3933_v44, %v310_v35  ;;  %v4422_v61 = vpack.c.bf16 %v819_v48, %v817_v9 }
  0x56   : > { %1595 = vmatprep.mubr.bf16.mxu0 %v4263_v37  ;;  %1749 = vmatmul.mubr.bf16.gmra.mxu1 %v4274_v59  ;;  %v821_v7 = vrot.slane %v4403_v51, 1  ;;  %v570_v62 = vadd.f32 %v3935_v45, %v512_v12  ;;  %v820_v15 = vrot.slane %v4408_v53, 1  ;;  %v823_v21 = vrot.slane %v4412_v18, 1 }
  0x57   : > { %2985 = vmatprep.mubr.msk.bf16.mxu1 %vm3976_vm5, %v4287_v1  ;;  %v4429_v23 = vpack.c.bf16 %v927_v60, %v925_v57  ;;  %v928_v25 = vrot.slane %v4358_v0, 2  ;;  %v626_v26 = vmax.f32 %v572_v56, 0.0  ;;  %v517_v22 = vmul.f32 %v3933_v44, %v314_v2  ;;  %v313_v0 = vld [vmem:[%s3915_s18 + $0x128] sm:$0xff] }
  0x58   : > { %v4437_v30 = vpack.c.bf16 %v4403_v51, %v621_v47  ;;  %v929_v31 = vrot.slane %v619_v58, 2  ;;  %v931_v34 = vrot.slane %v4372_v8, 2  ;;  %v571_v35 = vadd.f32 %v3935_v45, %v513_v38  ;;  %v317_v38 = vld [vmem:[%s3915_s18 + $0x148] sm:$0x3] }
  0x59   : > { %v624_v36 = vmax.f32 %v570_v62, 0.0  ;;  %v515_v27 = vmul.f32 %v3933_v44, %v312_v14  ;;  %v822_v12 = vsel %vm769_vm1, %v820_v15, %v821_v7  ;;  %v824_v9 = vsel %vm769_vm1, %v821_v7, %v823_v21  ;;  %v315_v21 = vld [vmem:[%s3915_s18 + $0x138] sm:$0xff] }
  0x5a   : > { %5162 = vst [vmem:[#allocation4_spill] sm:$0xff] %v4437_v30  ;;  %v4453_v8 = vsel %vm660_vm2, %v626_v26, 0.0  ;;  %v575_v47 = vadd.f32 %v3935_v45, %v517_v22  ;;  %v930_v48 = vsel %vm882_vm3, %v928_v25, %v929_v31  ;;  %v932_v56 = vsel %vm882_vm3, %v929_v31, %v931_v34 }
  0x5b   : > { %v4449_v58 = vsel %vm649_vm0, %v624_v36, 0.0  ;;  %v4461_v57 = vmax.f32 %v571_v35, 0.0  ;;  %v516_v60 = vmul.f32 %v3933_v44, %v313_v0  ;;  %v4465_v2 = vpack.c.bf16 %v824_v9, %v822_v12  ;;  %v316_v12 = vld [vmem:[%s3915_s18 + $0x140] sm:$0xff] }
  0x5c   : > { %v573_v7 = vadd.f32 %v3935_v45, %v515_v27  ;;  %v825_v62 = vrot.slane %v4449_v58, 1  ;;  %v828_v15 = vrot.slane %v4453_v8, 1  ;;  %v4472_v25 = vpack.c.bf16 %v932_v56, %v930_v48 }
  0x5d   : > { %2937 = vmatmul.mubr.msk.bf16.gmra.mxu0 %vm3976_vm5, %v4220_v10  ;;  %v826_v14 = vrot.slane %v4461_v57, 1  ;;  %v933_v26 = vrot.slane %v4408_v53, 2  ;;  %v629_v22 = vmax.f32 %v575_v47, 0.0  ;;  %v520_v31 = vmul.f32 %v3933_v44, %v317_v38 }
  0x5e   : > { %1603 = vmatprep.mubr.bf16.mxu0 %v4325_v32  ;;  %1757 = vmatmul.mubr.bf16.gmra.mxu1 %v4336_v42  ;;  %v4480_v34 = vpack.c.bf16 %v4461_v57, %v624_v36  ;;  %v934_v35 = vrot.slane %v4403_v51, 2  ;;  %v936_v0 = vrot.slane %v4412_v18, 2  ;;  %v574_v27 = vadd.f32 %v3935_v45, %v516_v60 }
  0x5f   : > { %2988 = vmatprep.mubr.msk.bf16.mxu1 %vm3976_vm5, %v4344_v52  ;;  %v627_v53 = vmax.f32 %v573_v7, 0.0  ;;  %v518_v9 = vmul.f32 %v3933_v44, %v315_v21  ;;  %v827_v47 = vsel %vm769_vm1, %v825_v62, %v826_v14  ;;  %v829_v48 = vsel %vm769_vm1, %v826_v14, %v828_v15  ;;  %v320_v62 = vld [vmem:[%s3915_s18 + $0x160] sm:$0x3] }
  0x60   : > { %5163 = vst [vmem:[#allocation5_spill] sm:$0xff] %v4480_v34  ;;  %v4497_v18 = vsel %vm660_vm2, %v629_v22, 0.0  ;;  %v578_v36 = vadd.f32 %v3935_v45, %v520_v31  ;;  %v935_v56 = vsel %vm882_vm3, %v933_v26, %v934_v35  ;;  %v937_v60 = vsel %vm882_vm3, %v934_v35, %v936_v0 }
  0x61   : > { %v4493_v51 = vsel %vm649_vm0, %v627_v53, 0.0  ;;  %v4505_v38 = vmax.f32 %v574_v27, 0.0  ;;  %v519_v7 = vmul.f32 %v3933_v44, %v316_v12  ;;  %v4509_v14 = vpack.c.bf16 %v829_v48, %v827_v47 }
  0x62   : > { %v576_v15 = vadd.f32 %v3935_v45, %v518_v9  ;;  %v830_v21 = vrot.slane %v4493_v51, 1  ;;  %v833_v31 = vrot.slane %v4497_v18, 1  ;;  %v4516_v26 = vpack.c.bf16 %v937_v60, %v935_v56 }
  0x63   : > { %5164 = vst [vmem:[#allocation6_spill] sm:$0xff] %v4509_v14  ;;  %v831_v22 = vrot.slane %v4505_v38, 1  ;;  %v938_v35 = vrot.slane %v4449_v58, 2  ;;  %v632_v0 = vmax.f32 %v578_v36, 0.0  ;;  %v523_v27 = vmul.f32 %v3933_v44, %v320_v62  ;;  %v319_v36 = vld [vmem:[%s3915_s18 + $0x158] sm:$0xff] }
  0x64   : > { %v4524_v12 = vpack.c.bf16 %v4505_v38, %v627_v53  ;;  %v939_v9 = vrot.slane %v4461_v57, 2  ;;  %v941_v47 = vrot.slane %v4453_v8, 2  ;;  %v577_v48 = vadd.f32 %v3935_v45, %v519_v7 }
  0x65   : > { %2940 = vmatmul.mubr.msk.bf16.gmra.mxu0 %vm3976_vm5, %v4287_v1  ;;  %v630_v58 = vmax.f32 %v576_v15, 0.0  ;;  %v521_v56 = vmul.f32 %v3933_v44, %v318_v50  ;;  %v832_v60 = vsel %vm769_vm1, %v830_v21, %v831_v22  ;;  %v834_v62 = vsel %vm769_vm1, %v831_v22, %v833_v31  ;;  %v323_v22 = vld [vmem:[%s3915_s18 + $0x178] sm:$0x3] }
  0x66   : > { %1611 = vmatprep.mubr.bf16.mxu0 %v4381_v17  ;;  %1765 = vmatmul.mubr.bf16.gmra.mxu1 %v4385_v24  ;;  %5165 = vst [vmem:[#allocation7_spill] sm:$0xff] %v4524_v12  ;;  %v4541_v8 = vsel %vm660_vm2, %v632_v0, 0.0  ;;  %v581_v53 = vadd.f32 %v3935_v45, %v523_v27  ;;  %v940_v50 = vsel %vm882_vm3, %v938_v35, %v939_v9  ;;  %v631_v15 = vmax.f32 %v577_v48, 0.0 }
  0x67   : > { %2991 = vmatprep.mubr.msk.bf16.mxu1 %vm3976_vm5, %v4396_v40  ;;  %v4537_v57 = vsel %vm649_vm0, %v630_v58, 0.0  ;;  %v942_v7 = vsel %vm882_vm3, %v939_v9, %v941_v47  ;;  %v522_v21 = vmul.f32 %v3933_v44, %v319_v36  ;;  %v4551_v31 = vpack.c.bf16 %v834_v62, %v832_v60  ;;  %v322_v62 = vld [vmem:[%s3915_s18 + $0x170] sm:$0xff] }
  0x68   : > { %v579_v0 = vadd.f32 %v3935_v45, %v521_v56  ;;  %v835_v46 = vrot.slane %v4537_v57, 1  ;;  %v836_v27 = vrot.slane %v631_v15, 1  ;;  %v838_v6 = vrot.slane %v4541_v8, 1 }
  0x69   : > { %5166 = vst [vmem:[#allocation8_spill] sm:$0xff] %v4551_v31  ;;  %v943_v35 = vrot.slane %v4493_v51, 2  ;;  %v635_v9 = vmax.f32 %v581_v53, 0.0  ;;  %v526_v47 = vmul.f32 %v3933_v44, %v323_v22  ;;  %v4564_v48 = vpack.c.bf16 %v631_v15, %v630_v58 }
  0x6a   : > { %v944_v36 = vrot.slane %v4505_v38, 2  ;;  %v946_v56 = vrot.slane %v4497_v18, 2  ;;  %v580_v60 = vadd.f32 %v3935_v45, %v522_v21  ;;  %v837_v53 = vsel %vm769_vm1, %v835_v46, %v836_v27 }
  0x6b   : > { %v711_v18 = vsel %vm660_vm2, %v635_v9, 0.0  ;;  %v525_v38 = vmul.f32 %v3933_v44, %v322_v62  ;;  %v584_v21 = vadd.f32 %v3935_v45, %v526_v47 }
  0x6c   : > { %v945_v46 = vsel %vm882_vm3, %v943_v35, %v944_v36  ;;  %v843_v62 = vrot.slane %v711_v18, 1 }
  0x6d   : > { %2943 = vmatmul.mubr.msk.bf16.gmra.mxu0 %vm3976_vm5, %v4344_v52  ;;  %v583_v47 = vadd.f32 %v3935_v45, %v525_v38 }
  0x6e   : > { %1619 = vmatprep.mubr.bf16.mxu0 %v4422_v61  ;;  %1773 = vmatmul.mubr.bf16.gmra.mxu1 %v4429_v23 }
  0x6f   : > { %2994 = vmatprep.mubr.msk.bf16.mxu1 %vm3976_vm5, %v4437_v30 }
  0x75   : > { %2946 = vmatmul.mubr.msk.bf16.gmra.mxu0 %vm3976_vm5, %v4396_v40 }
  0x76   : > { %1627 = vmatprep.mubr.bf16.mxu0 %v4465_v2  ;;  %1781 = vmatmul.mubr.bf16.gmra.mxu1 %v4472_v25 }
  0x77   : > { %2997 = vmatprep.mubr.msk.bf16.mxu1 %vm3976_vm5, %v4480_v34 }
  0x7d   : > { %2949 = vmatmul.mubr.msk.bf16.gmra.mxu0 %vm3976_vm5, %v4437_v30  ;;  %v4557_v30 = vpack.c.bf16 %v942_v7, %v940_v50  ;;  %v633_v50 = vmax.f32 %v579_v0, 0.0  ;;  %v839_v7 = vsel %vm769_vm1, %v836_v27, %v838_v6  ;;  %v947_v6 = vsel %vm882_vm3, %v944_v36, %v946_v56 }
  0x7e   : > { %1635 = vmatprep.mubr.bf16.mxu0 %v4509_v14  ;;  %1789 = vmatmul.mubr.bf16.gmra.mxu1 %v4516_v26  ;;  %v321_v14 = vld [vmem:[%s3915_s18 + $0x168] sm:$0xff]  ;;  %v4586_v22 = vpack.c.bf16 %v839_v7, %v837_v53  ;;  %v948_v36 = vrot.slane %v4537_v57, 2  ;;  %v949_v56 = vrot.slane %v631_v15, 2  ;;  %v324_v53 = vld [vmem:[%s3915_s18 + $0x180] sm:$0xff] }
  0x7f   : > { %3000 = vmatprep.mubr.msk.bf16.mxu1 %vm3976_vm5, %v4524_v12  ;;  %5167 = vst [vmem:[#allocation9_spill] sm:$0xff] %v4557_v30  ;;  %v524_v51 = vmul.f32 %v3933_v44, %v321_v14  ;;  %v709_v58 = vsel %vm649_vm0, %v633_v50, 0.0  ;;  %v634_v14 = vmax.f32 %v580_v60, 0.0  ;;  %v951_v60 = vrot.slane %v4541_v8, 2  ;;  %v325_v7 = vld [vmem:[%s3915_s18 + $0x188] sm:$0xff] }
  0x80   : > { %5168 = vst [vmem:[#allocation10_spill] sm:$0xff] %v4586_v22  ;;  %v840_v27 = vrot.slane %v709_v58, 1  ;;  %v950_v8 = vsel %vm882_vm3, %v948_v36, %v949_v56  ;;  %v956_v36 = vrot.slane %v711_v18, 2 }
  0x81   : > { %v582_v0 = vadd.f32 %v3935_v45, %v524_v51  ;;  %v841_v9 = vrot.slane %v634_v14, 1  ;;  %v4595_v35 = vpack.c.bf16 %v634_v14, %v633_v50  ;;  %v952_v15 = vsel %vm882_vm3, %v949_v56, %v951_v60 }
  0x83   : > { %v636_v51 = vmax.f32 %v582_v0, 0.0  ;;  %v844_v38 = vsel %vm769_vm1, %v841_v9, %v843_v62  ;;  %v528_v0 = vmul.f32 %v3933_v44, %v325_v7 }
  0x85   : > { %2952 = vmatmul.mubr.msk.bf16.gmra.mxu0 %vm3976_vm5, %v4480_v34  ;;  %v638_v34 = vmax.f32 %v584_v21, 0.0  ;;  %v637_v21 = vmax.f32 %v583_v47, 0.0  ;;  %v712_v50 = vsel %vm649_vm0, %v636_v51, 0.0  ;;  %v586_v60 = vadd.f32 %v3935_v45, %v528_v0 }
  0x86   : > { %1643 = vmatprep.mubr.bf16.mxu0 %v4551_v31  ;;  %1797 = vmatmul.mubr.bf16.gmra.mxu1 %v4557_v30  ;;  %v4589_v31 = vpack.c.bf16 %v947_v6, %v945_v46  ;;  %v842_v46 = vsel %vm769_vm1, %v840_v27, %v841_v9  ;;  %v527_v6 = vmul.f32 %v3933_v44, %v324_v53  ;;  %v845_v9 = vrot.slane %v712_v50, 1  ;;  %v326_v30 = vld [vmem:[%s3915_s18 + $0x190] sm:$0x3] }
  0x87   : > { %3003 = vmatprep.mubr.msk.bf16.mxu1 %vm3976_vm5, %v4564_v48  ;;  %v714_v57 = vsel %vm660_vm2, %v638_v34, 0.0  ;;  %v4616_v27 = vpack.c.bf16 %v844_v38, %v842_v46  ;;  %v846_v62 = vrot.slane %v637_v21, 1  ;;  %v4620_v34 = vpack.c.bf16 %v637_v21, %v636_v51 }
  0x88   : > { %5169 = vst [vmem:[#allocation11_spill] sm:$0xff] %v4589_v31  ;;  %v848_v47 = vrot.slane %v714_v57, 1  ;;  %v585_v56 = vadd.f32 %v3935_v45, %v527_v6  ;;  %v529_v53 = vmul.f32 %v3933_v44, %v326_v30  ;;  %v640_v44 = vmax.f32 %v586_v60, 0.0 }
  0x89   : > { %v847_v7 = vsel %vm769_vm1, %v845_v9, %v846_v62  ;;  %v958_v9 = vrot.slane %v712_v50, 2 }
  0x8a   : > { %v849_v51 = vsel %vm769_vm1, %v846_v62, %v848_v47  ;;  %v639_v46 = vmax.f32 %v585_v56, 0.0  ;;  %v999_v6 = vrot.slane %v640_v44, 1  ;;  %v959_v62 = vrot.slane %v637_v21, 2 }
  0x8b   : > { %v4639_v38 = vpack.c.bf16 %v849_v51, %v847_v7  ;;  %v961_v47 = vrot.slane %v714_v57, 2  ;;  %v1006_v57 = vrot.slane %v640_v44, 2 }
  0x8c   : > { %v960_v56 = vsel %vm882_vm3, %v958_v9, %v959_v62 }
  0x8d   : > { %2955 = vmatmul.mubr.msk.bf16.gmra.mxu0 %vm3976_vm5, %v4524_v12  ;;  %v953_v12 = vrot.slane %v709_v58, 2  ;;  %v587_v58 = vadd.f32 %v3935_v45, %v529_v53  ;;  %v962_v50 = vsel %vm882_vm3, %v959_v62, %v961_v47  ;;  %v5170_v62 = vld [vmem:[#allocation4_spill] sm:$0xff]  ;;  %v5171_v47 = vld [vmem:[#allocation6_spill] sm:$0xff] }
  0x8e   : > { %1651 = vmatprep.mubr.bf16.mxu0 %v4586_v22  ;;  %1805 = vmatmul.mubr.bf16.gmra.mxu1 %v4589_v31  ;;  %v4618_v22 = vpack.c.bf16 %v952_v15, %v950_v8  ;;  %v954_v31 = vrot.slane %v634_v14, 2  ;;  %v715_v8 = vsel %vm649_vm0, %v639_v46, 0.0  ;;  %v4663_v53 = vpack.c.bf16 %v962_v50, %v960_v56 }
  0x8f   : > { %3006 = vmatprep.mubr.msk.bf16.mxu1 %vm3976_vm5, %v4595_v35  ;;  %v641_v30 = vmax.f32 %v587_v58, 0.0  ;;  %v1005_v21 = vrot.slane %v715_v8, 2 }
  0x90   : > { %v955_v14 = vsel %vm882_vm3, %v953_v12, %v954_v31  ;;  %v957_v18 = vsel %vm882_vm3, %v954_v31, %v956_v36  ;;  %v998_v12 = vrot.slane %v715_v8, 1  ;;  %v4650_v31 = vpack.c.bf16 %v640_v44, %v639_v46  ;;  %v3744_v46 = vld [vmem:[%s5138_s3 + $0x28] sm:$0xff]   ;;  %v3747_v44 = vld [vmem:[%s5137_s2 + $0x210] sm:$0xff]  }
  0x91   : > { %v717_v45 = vsel %vm660_vm2, %v641_v30, 0.0  ;;  %v4645_v15 = vpack.c.bf16 %v957_v18, %v955_v14  ;;  %v1007_v7 = vsel %vm882_vm3, %v1005_v21, %v1006_v57  ;;  %v3739_v14 = vld [vmem:[%s5137_s2 + $0x230] sm:$0xff]   ;;  %v3748_v30 = vld [vmem:[%s5138_s3 + $0x18] sm:$0xff]   ;;  %v3749_v8 = vld [vmem:[%s5137_s2 + $0x208] sm:$0xff]  }
  0x92   : > { %v1001_v0 = vrot.slane %v717_v45, 1  ;;  %v1000_v29 = vsel %vm769_vm1, %v998_v12, %v999_v6  ;;  %v1008_v60 = vrot.slane %v717_v45, 2  ;;  %v3742_v18 = vld [vmem:[%s5138_s3 + $0x30] sm:$0xff]   ;;  %v3751_v45 = vld [vmem:[%s5137_s2 + $0x200] sm:$0xff]   ;;  %v3752_v12 = vld [vmem:[%s5138_s3 + $0x8] sm:$0xff]  }
  0x94   : > { %v1002_v43 = vsel %vm769_vm1, %v999_v6, %v1001_v0  ;;  %v1009_v51 = vsel %vm882_vm3, %v1006_v57, %v1008_v60  ;;  %v5172_v57 = vld [vmem:[#allocation9_spill] sm:$0xff] }
  0x95   : > { %2958 = vmatmul.mubr.msk.bf16.gmra.mxu0 %vm3976_vm5, %v4564_v48  ;;  %v4655_v36 = vpack.c.bf16 %v1002_v43, %v1000_v29  ;;  %v4670_v58 = vpack.c.bf16 %v1009_v51, %v1007_v7 }
  0x96   : > { %1659 = vmatprep.mubr.bf16.mxu0 %v4616_v27  ;;  %1813 = vmatmul.mubr.bf16.gmra.mxu1 %v4618_v22 }
  0x97   : > { %3009 = vmatprep.mubr.msk.bf16.mxu1 %vm3976_vm5, %v4620_v34 }
  0x9d   : > { %2961 = vmatmul.mubr.msk.bf16.gmra.mxu0 %vm3976_vm5, %v4595_v35 }
  0x9e   : > { %1667 = vmatprep.mubr.bf16.mxu0 %v4639_v38  ;;  %1821 = vmatmul.mubr.bf16.gmra.mxu1 %v4645_v15 }
  0x9f   : > { %3012 = vmatprep.mubr.msk.bf16.mxu1 %vm3976_vm5, %v4650_v31 }
  0xa5   : > { %2964 = vmatmul.mubr.msk.bf16.gmra.mxu0 %vm3976_vm5, %v4620_v34 }
  0xa6   : > { %1869 = vmatprep.mubr.bf16.mxu0 %v4017_v49  ;;  %1829 = vmatmul.mubr.bf16.gmra.mxu1 %v4663_v53  ;;  %v3741_v49 = vld [vmem:[%s5137_s2 + $0x228] sm:$0xff]  }
  0xa7   : > { %2030 = vmatprep.mubr.bf16.mxu1 %v4045_v3 }
  0xad   : > { %1870 = vmatmul.mubr.bf16.vlgmr.msra.gmra.mxu0 %v4009_v41 }
  0xae   : > { %3567 = vmatpush3.bf16.msra.mxu0 %v4351_v33  ;;  %1877 = vmatprep.mubr.bf16.mxu0 %v4056_v13  ;;  %v3743_v33 = vld [vmem:[%s5137_s2 + $0x220] sm:$0xff]  }
  0xaf   : > { %3568 = vmatprep.subr.bf16.mxu0 %v3739_v14  ;;  %3015 = vmatmul.mubr.msk.bf16.vlgmr.msra.gmra.mxu1 %vm3976_vm5, %v3996_v28  ;;  %v3746_v28 = vld [vmem:[%s5138_s3 + $0x20] sm:$0xff]  }
  0xb0   : > { %2038 = vmatprep.mubr.bf16.mxu1 %v4105_v55  ;;  %3615 = vmatpush3.bf16.msra.mxu1 %v4365_v5  ;;  %v3745_v5 = vld [vmem:[%s5137_s2 + $0x218] sm:$0xff]  }
  0xb1   : > { %3616 = vmatprep.subr.bf16.mxu1 %v3742_v18 }
  0xb2   : > { %3569 = vmatpush3.bf16.msra.mxu0 %v3739_v14 }
  0xb3   : > { %3570 = vmatprep.subr.bf16.mxu0 %v3741_v49 }
  0xb4   : > { %3617 = vmatpush3.bf16.msra.mxu1 %v3742_v18  ;;  %v5173_v18 = vld [vmem:[#allocation5_spill] sm:$0xff] }
  0xb5   : > { %1878 = vmatmul.mubr.bf16.gmra.mxu0 %v4045_v3  ;;  %3618 = vmatprep.subr.bf16.mxu1 %v3744_v46 }
  0xb6   : > { %1885 = vmatprep.mubr.bf16.mxu0 %v4144_v19  ;;  %3571 = vmatpush3.bf16.msra.mxu0 %v3741_v49 }
  0xb7   : > { %3572 = vmatprep.subr.bf16.mxu0 %v3743_v33  ;;  %3018 = vmatmul.mubr.msk.bf16.gmra.mxu1 %vm3976_vm5, %v4038_v63  ;;  %v3750_v63 = vld [vmem:[%s5138_s3 + $0x10] sm:$0xff]  }
  0xb8   : > { %2046 = vmatprep.mubr.bf16.mxu1 %v4139_v16  ;;  %3619 = vmatpush3.bf16.msra.mxu1 %v3744_v46  ;;  %v5174_v46 = vld [vmem:[#allocation8_spill] sm:$0xff] }
  0xb9   : > { %3620 = vmatprep.subr.bf16.mxu1 %v3746_v28 }
  0xba   : > { %3573 = vmatpush3.bf16.msra.mxu0 %v3743_v33 }
  0xbb   : > { %3574 = vmatprep.subr.bf16.mxu0 %v3745_v5 }
  0xbc   : > { %3621 = vmatpush3.bf16.msra.mxu1 %v3746_v28 }
  0xbd   : > { %1886 = vmatmul.mubr.bf16.gmra.mxu0 %v4105_v55  ;;  %3622 = vmatprep.subr.bf16.mxu1 %v3748_v30 }
  0xbe   : > { %1893 = vmatprep.mubr.bf16.mxu0 %v4209_v4  ;;  %3575 = vmatpush3.bf16.msra.mxu0 %v3745_v5 }
  0xbf   : > { %3576 = vmatprep.subr.bf16.mxu0 %v3747_v44  ;;  %3021 = vmatmul.mubr.msk.bf16.gmra.mxu1 %vm3976_vm5, %v4095_v39  ;;  %v3753_v39 = vld [vmem:[%s5138_s3] sm:$0xff]  }
  0xc0   : > { %2054 = vmatprep.mubr.bf16.mxu1 %v4192_v54  ;;  %3623 = vmatpush3.bf16.msra.mxu1 %v3748_v30 }
  0xc1   : > { %3624 = vmatprep.subr.bf16.mxu1 %v3750_v63 }
  0xc2   : > { %3577 = vmatpush3.bf16.msra.mxu0 %v3747_v44 }
  0xc3   : > { %3578 = vmatprep.subr.bf16.mxu0 %v3749_v8 }
  0xc4   : > { %3625 = vmatpush3.bf16.msra.mxu1 %v3750_v63 }
  0xc5   : > { %1894 = vmatmul.mubr.bf16.gmra.mxu0 %v4139_v16  ;;  %3626 = vmatprep.subr.bf16.mxu1 %v3752_v12 }
  0xc6   : > { %1901 = vmatprep.mubr.bf16.mxu0 %v4274_v59  ;;  %3579 = vmatpush3.bf16.msra.mxu0 %v3749_v8 }
  0xc7   : > { %3580 = vmatprep.subr.bf16.mxu0 %v3751_v45  ;;  %3024 = vmatmul.mubr.msk.bf16.gmra.mxu1 %vm3976_vm5, %v4147_v20 }
  0xc8   : > { %2062 = vmatprep.mubr.bf16.mxu1 %v4263_v37  ;;  %3627 = vmatpush3.bf16.msra.mxu1 %v3752_v12 }
  0xc9   : > { %3628 = vmatprep.subr.bf16.mxu1 %v3753_v39 }
  0xca   : > { %3581 = vmatpush3.bf16.msra.mxu0 %v3751_v45 }
  0xcc   : > { %3629 = vmatpush3.bf16.msra.mxu1 %v3753_v39  ;;  %v5175_v39 = vld [vmem:[#allocation11_spill] sm:$0xff] }
  0xcd   : > { %1902 = vmatmul.mubr.bf16.gmra.mxu0 %v4192_v54 }
  0xce   : > { %1909 = vmatprep.mubr.bf16.mxu0 %v4336_v42 }
  0xcf   : > { %3027 = vmatmul.mubr.msk.bf16.gmra.mxu1 %vm3976_vm5, %v4220_v10 }
  0xd0   : > { %2070 = vmatprep.mubr.bf16.mxu1 %v4325_v32 }
  0xd5   : > { %1910 = vmatmul.mubr.bf16.gmra.mxu0 %v4263_v37 }
  0xd6   : > { %1917 = vmatprep.mubr.bf16.mxu0 %v4385_v24 }
  0xd7   : > { %3030 = vmatmul.mubr.msk.bf16.gmra.mxu1 %vm3976_vm5, %v4287_v1 }
  0xd8   : > { %2078 = vmatprep.mubr.bf16.mxu1 %v4381_v17 }
  0xdd   : > { %1918 = vmatmul.mubr.bf16.gmra.mxu0 %v4325_v32 }
  0xde   : > { %1925 = vmatprep.mubr.bf16.mxu0 %v4429_v23 }
  0xdf   : > { %3033 = vmatmul.mubr.msk.bf16.gmra.mxu1 %vm3976_vm5, %v4344_v52 }
  0xe0   : > { %2086 = vmatprep.mubr.bf16.mxu1 %v4422_v61 }
  0xe5   : > { %1926 = vmatmul.mubr.bf16.gmra.mxu0 %v4381_v17 }
  0xe6   : > { %1933 = vmatprep.mubr.bf16.mxu0 %v4472_v25 }
  0xe7   : > { %3036 = vmatmul.mubr.msk.bf16.gmra.mxu1 %vm3976_vm5, %v4396_v40 }
  0xe8   : > { %2094 = vmatprep.mubr.bf16.mxu1 %v4465_v2 }
  0xed   : > { %v3086_v20 = vpop.f32.mrf.mxu0  ;;  %1934 = vmatmul.mubr.bf16.gmra.mxu0 %v4422_v61 }
  0xee   : > { %1941 = vmatprep.mubr.bf16.mxu0 %v4516_v26  ;;  %v3198_v9 = vpop.f32.mrf.mxu1 }
  0xef   : > { %v3087_v10 = vpop.f32.mrf.mxu0  ;;  %3039 = vmatmul.mubr.msk.bf16.gmra.mxu1 %vm3976_vm5, %v5170_v62  ;;  %v5177_v62 = vld [vmem:[#allocation10_spill] sm:$0xff] }
  0xf0   : > { %v3088_v1 = vadd.f32 %v3087_v10, %v3086_v20  ;;  %2102 = vmatprep.mubr.bf16.mxu1 %v5171_v47  ;;  %v3199_v29 = vpop.f32.mrf.mxu1 }
  0xf1   : > { %v3089_v6 = vpop.f32.mrf.mxu0  ;;  %v3200_v40 = vadd.f32 %v3199_v29, %v3198_v9 }
  0xf2   : > { %v3201_v43 = vpop.f32.mrf.mxu1 }
  0xf3   : > { %v3090_v0 = vpop.f32.mrf.mxu0  ;;  %v4773_v56 = vadd.f32 %v3200_v40, %v3088_v1 }
  0xf4   : > { %v3091_v52 = vadd.f32 %v3090_v0, %v3089_v6  ;;  %v3202_v21 = vpop.f32.mrf.mxu1  ;;  %v5176_v0 = vld [vmem:[#allocation7_spill] sm:$0xff] }
  0xf5   : > { %v3092_v50 = vpop.f32.mrf.mxu0  ;;  %1942 = vmatmul.mubr.bf16.gmra.mxu0 %v4465_v2  ;;  %v3203_v60 = vadd.f32 %v3202_v21, %v3201_v43 }
  0xf6   : > { %1949 = vmatprep.mubr.bf16.mxu0 %v5172_v57  ;;  %v3204_v51 = vpop.f32.mrf.mxu1 }
  0xf7   : > { %v3093_v7 = vpop.f32.mrf.mxu0  ;;  %3042 = vmatmul.mubr.msk.bf16.gmra.mxu1 %vm3976_vm5, %v5173_v18  ;;  %v4780_v49 = vadd.f32 %v3203_v60, %v3091_v52 }
  0xf8   : > { %v3094_v14 = vadd.f32 %v3093_v7, %v3092_v50  ;;  %2110 = vmatprep.mubr.bf16.mxu1 %v5174_v46  ;;  %v3205_v28 = vpop.f32.mrf.mxu1 }
  0xf9   : > { %v3095_v33 = vpop.f32.mrf.mxu0  ;;  %v3206_v5 = vadd.f32 %v3205_v28, %v3204_v51 }
  0xfa   : > { %v3207_v30 = vpop.f32.mrf.mxu1 }
  0xfb   : > { %v3096_v44 = vpop.f32.mrf.mxu0  ;;  %v4783_v8 = vadd.f32 %v3206_v5, %v3094_v14 }
  0xfc   : > { %v3097_v63 = vadd.f32 %v3096_v44, %v3095_v33  ;;  %v3208_v12 = vpop.f32.mrf.mxu1 }
  0xfd   : > { %v3098_v45 = vpop.f32.mrf.mxu0  ;;  %1950 = vmatmul.mubr.bf16.gmra.mxu0 %v5171_v47  ;;  %v3209_v20 = vadd.f32 %v3208_v12, %v3207_v30 }
  0xfe   : > { %1957 = vmatprep.mubr.bf16.mxu0 %v5175_v39  ;;  %v3210_v1 = vpop.f32.mrf.mxu1 }
  0xff   : > { %v3099_v10 = vpop.f32.mrf.mxu0  ;;  %3045 = vmatmul.mubr.msk.bf16.gmra.mxu1 %vm3976_vm5, %v5176_v0  ;;  %v4790_v52 = vadd.f32 %v3209_v20, %v3097_v63 }
 0x100   : > { %v3100_v6 = vadd.f32 %v3099_v10, %v3098_v45  ;;  %2118 = vmatprep.mubr.bf16.mxu1 %v5177_v62  ;;  %v3211_v29 = vpop.f32.mrf.mxu1 }
 0x101   : > { %v3101_v9 = vpop.f32.mrf.mxu0  ;;  %v3212_v40 = vadd.f32 %v3211_v29, %v3210_v1 }
 0x102   : > { %v3213_v50 = vpop.f32.mrf.mxu1 }
 0x103   : > { %v3102_v43 = vpop.f32.mrf.mxu0  ;;  %v4793_v60 = vadd.f32 %v3212_v40, %v3100_v6 }
 0x104   : > { %v3103_v21 = vadd.f32 %v3102_v43, %v3101_v9  ;;  %v3214_v51 = vpop.f32.mrf.mxu1 }
 0x105   : > { %v3104_v7 = vpop.f32.mrf.mxu0  ;;  %1958 = vmatmul.mubr.bf16.gmra.mxu0 %v5174_v46  ;;  %v3215_v14 = vadd.f32 %v3214_v51, %v3213_v50 }
 0x106   : > { %1965 = vmatprep.mubr.bf16.mxu0 %v4618_v22  ;;  %v3216_v33 = vpop.f32.mrf.mxu1 }
 0x107   : > { %v3105_v18 = vpop.f32.mrf.mxu0  ;;  %3048 = vmatmul.mubr.msk.bf16.gmra.mxu1 %vm3976_vm5, %v4564_v48  ;;  %v4800_v5 = vadd.f32 %v3215_v14, %v3103_v21 }
 0x108   : > { %v3106_v28 = vadd.f32 %v3105_v18, %v3104_v7  ;;  %2126 = vmatprep.mubr.bf16.mxu1 %v4616_v27  ;;  %v3217_v30 = vpop.f32.mrf.mxu1 }
 0x109   : > { %v3107_v44 = vpop.f32.mrf.mxu0  ;;  %v3218_v63 = vadd.f32 %v3217_v30, %v3216_v33 }
 0x10a   : > { %v3219_v12 = vpop.f32.mrf.mxu1 }
 0x10b   : > { %v3108_v45 = vpop.f32.mrf.mxu0  ;;  %v4803_v10 = vadd.f32 %v3218_v63, %v3106_v28 }
 0x10c   : > { %v3109_v20 = vadd.f32 %v3108_v45, %v3107_v44  ;;  %v3220_v6 = vpop.f32.mrf.mxu1 }
 0x10d   : > { %v3110_v1 = vpop.f32.mrf.mxu0  ;;  %1966 = vmatmul.mubr.bf16.gmra.mxu0 %v5177_v62  ;;  %v3221_v0 = vadd.f32 %v3220_v6, %v3219_v12 }
 0x10e   : > { %1973 = vmatprep.mubr.bf16.mxu0 %v4645_v15  ;;  %v3222_v9 = vpop.f32.mrf.mxu1 }
 0x10f   : > { %v3111_v48 = vpop.f32.mrf.mxu0  ;;  %3051 = vmatmul.mubr.msk.bf16.gmra.mxu1 %vm3976_vm5, %v4595_v35  ;;  %v4810_v40 = vadd.f32 %v3221_v0, %v3109_v20 }
 0x110   : > { %v3112_v29 = vadd.f32 %v3111_v48, %v3110_v1  ;;  %2134 = vmatprep.mubr.bf16.mxu1 %v4639_v38  ;;  %v3223_v50 = vpop.f32.mrf.mxu1 }
 0x111   : > { %v3113_v43 = vpop.f32.mrf.mxu0  ;;  %v3224_v21 = vadd.f32 %v3223_v50, %v3222_v9 }
 0x112   : > { %v3225_v51 = vpop.f32.mrf.mxu1 }
 0x113   : > { %v3114_v7 = vpop.f32.mrf.mxu0  ;;  %v4813_v18 = vadd.f32 %v3224_v21, %v3112_v29 }
 0x114   : > { %v3115_v14 = vadd.f32 %v3114_v7, %v3113_v43  ;;  %v3226_v28 = vpop.f32.mrf.mxu1 }
 0x115   : > { %v3116_v33 = vpop.f32.mrf.mxu0  ;;  %1974 = vmatmul.mubr.bf16.gmra.mxu0 %v4616_v27  ;;  %v3227_v44 = vadd.f32 %v3226_v28, %v3225_v51 }
 0x116   : > { %1981 = vmatprep.mubr.bf16.mxu0 %v4663_v53  ;;  %v3228_v30 = vpop.f32.mrf.mxu1 }
 0x117   : > { %v3117_v35 = vpop.f32.mrf.mxu0  ;;  %3054 = vmatmul.mubr.msk.bf16.gmra.mxu1 %vm3976_vm5, %v4620_v34  ;;  %v4820_v45 = vadd.f32 %v3227_v44, %v3115_v14 }
 0x118   : > { %v3118_v63 = vadd.f32 %v3117_v35, %v3116_v33  ;;  %2142 = vmatprep.mubr.bf16.mxu1 %v4655_v36  ;;  %v3229_v20 = vpop.f32.mrf.mxu1  ;;  %v5178_v33 = vld [vmem:[#allocation2_spill] sm:$0xff] }
 0x119   : > { %v3119_v12 = vpop.f32.mrf.mxu0  ;;  %v3230_v1 = vadd.f32 %v3229_v20, %v3228_v30 }
 0x11a   : > { %v3231_v0 = vpop.f32.mrf.mxu1 }
 0x11b   : > { %v3120_v6 = vpop.f32.mrf.mxu0  ;;  %v4823_v9 = vadd.f32 %v3230_v1, %v3118_v63 }
 0x11c   : > { %v3121_v48 = vadd.f32 %v3120_v6, %v3119_v12  ;;  %v3232_v43 = vpop.f32.mrf.mxu1 }
 0x11d   : > { %v3122_v29 = vpop.f32.mrf.mxu0  ;;  %1982 = vmatmul.mubr.bf16.gmra.mxu0 %v4639_v38  ;;  %v3233_v50 = vadd.f32 %v3232_v43, %v3231_v0 }
 0x11e   : > { %1989 = vmatprep.mubr.bf16.mxu0 %v4670_v58  ;;  %v3234_v21 = vpop.f32.mrf.mxu1 }
 0x11f   : > { %v3123_v34 = vpop.f32.mrf.mxu0  ;;  %3057 = vmatmul.mubr.msk.bf16.gmra.mxu1 %vm3976_vm5, %v4650_v31  ;;  %v4830_v51 = vadd.f32 %v3233_v50, %v3121_v48  ;;  %v5179_v48 = vmov 0.0|0.0  }
 0x120   : > { %v3124_v7 = vadd.f32 %v3123_v34, %v3122_v29  ;;  %2150 = vmatprep.mubr.bf16.mxu1 %v5178_v33  ;;  %v3235_v28 = vpop.f32.mrf.mxu1 }
 0x121   : > { %v3125_v14 = vpop.f32.mrf.mxu0  ;;  %v3236_v44 = vadd.f32 %v3235_v28, %v3234_v21 }
 0x122   : > { %v3237_v30 = vpop.f32.mrf.mxu1 }
 0x123   : > { %v3126_v35 = vpop.f32.mrf.mxu0  ;;  %v4833_v12 = vadd.f32 %v3236_v44, %v3124_v7 }
 0x124   : > { %v3127_v63 = vadd.f32 %v3126_v35, %v3125_v14  ;;  %v3238_v1 = vpop.f32.mrf.mxu1 }
 0x125   : > { %v3128_v20 = vpop.f32.mrf.mxu0  ;;  %1990 = vmatmul.mubr.bf16.gmra.mxu0 %v4655_v36  ;;  %v3239_v11 = vadd.f32 %v3238_v1, %v3237_v30 }
 0x126   : > { %3582 = vmatprep.mubr.bf16.mxu0 %v4056_v13  ;;  %v3240_v6 = vpop.f32.mrf.mxu1 }
 0x127   : > { %v3129_v31 = vpop.f32.mrf.mxu0  ;;  %2151 = vmatmul.mubr.bf16.gmra.mxu1 %v5179_v48  ;;  %v4838_v29 = vadd.f32 %v3239_v11, %v3127_v63 }
 0x128   : > { %v3130_v0 = vadd.f32 %v3129_v31, %v3128_v20  ;;  %3630 = vmatprep.mubr.bf16.mxu1 %v4009_v41  ;;  %v3241_v50 = vpop.f32.mrf.mxu1 }
 0x129   : > { %v3131_v43 = vpop.f32.mrf.mxu0  ;;  %v3242_v34 = vadd.f32 %v3241_v50, %v3240_v6 }
 0x12a   : > { %v3243_v7 = vpop.f32.mrf.mxu1 }
 0x12b   : > { %v3132_v21 = vpop.f32.mrf.mxu0  ;;  %v4841_v33 = vadd.f32 %v3242_v34, %v3130_v0 }
 0x12c   : > { %v3133_v14 = vadd.f32 %v3132_v21, %v3131_v43  ;;  %v3244_v13 = vpop.f32.mrf.mxu1 }
 0x12d   : > { %v3134_v28 = vpop.f32.mrf.mxu0  ;;  %3583 = vmatmul.mubr.bf16.vlgmr.msra.gmra.mxu0 %v4144_v19  ;;  %v3245_v44 = vadd.f32 %v3244_v13, %v3243_v7 }
 0x12e   : > { %3586 = vmatprep.mubr.bf16.mxu0 %v4209_v4  ;;  %v3246_v30 = vpop.f32.mrf.mxu1 }
 0x12f   : > { %v3135_v35 = vpop.f32.mrf.mxu0  ;;  %3631 = vmatmul.mubr.bf16.vlgmr.msra.gmra.mxu1 %v4045_v3  ;;  %v4846_v41 = vadd.f32 %v3245_v44, %v3133_v14 }
 0x130   : > { %v3136_v63 = vadd.f32 %v3135_v35, %v3134_v28  ;;  %3634 = vmatprep.mubr.bf16.mxu1 %v4105_v55  ;;  %v3247_v1 = vpop.f32.mrf.mxu1 }
 0x131   : > { %v3137_v20 = vpop.f32.mrf.mxu0  ;;  %v3248_v11 = vadd.f32 %v3247_v1, %v3246_v30 }
 0x132   : > { %v3249_v6 = vpop.f32.mrf.mxu1 }
 0x133   : > { %v3138_v31 = vpop.f32.mrf.mxu0  ;;  %v4849_v19 = vadd.f32 %v3248_v11, %v3136_v63 }
 0x134   : > { %v3139_v0 = vadd.f32 %v3138_v31, %v3137_v20  ;;  %v3250_v4 = vpop.f32.mrf.mxu1 }
 0x135   : > { %v3140_v48 = vpop.f32.mrf.mxu0  ;;  %3587 = vmatmul.mubr.bf16.gmra.mxu0 %v4274_v59  ;;  %v3251_v43 = vadd.f32 %v3250_v4, %v3249_v6 }
 0x136   : > { %3590 = vmatprep.mubr.bf16.mxu0 %v4336_v42  ;;  %v3252_v50 = vpop.f32.mrf.mxu1 }
 0x137   : > { %v3141_v3 = vpop.f32.mrf.mxu0  ;;  %3635 = vmatmul.mubr.bf16.gmra.mxu1 %v4139_v16  ;;  %v4854_v55 = vadd.f32 %v3251_v43, %v3139_v0 }
 0x138   : > { %v3142_v34 = vadd.f32 %v3141_v3, %v3140_v48  ;;  %3638 = vmatprep.mubr.bf16.mxu1 %v4192_v54  ;;  %v3253_v7 = vpop.f32.mrf.mxu1 }
 0x139   : > { %v3143_v21 = vpop.f32.mrf.mxu0  ;;  %v3254_v14 = vadd.f32 %v3253_v7, %v3252_v50 }
 0x13a   : > { %v3255_v13 = vpop.f32.mrf.mxu1 }
 0x13b   : > { %v3144_v28 = vpop.f32.mrf.mxu0  ;;  %v4857_v59 = vadd.f32 %v3254_v14, %v3142_v34 }
 0x13c   : > { %v3145_v44 = vadd.f32 %v3144_v28, %v3143_v21  ;;  %v3256_v42 = vpop.f32.mrf.mxu1 }
 0x13d   : > { %v3146_v35 = vpop.f32.mrf.mxu0  ;;  %3591 = vmatmul.mubr.bf16.gmra.mxu0 %v4385_v24  ;;  %v3257_v30 = vadd.f32 %v3256_v42, %v3255_v13 }
 0x13e   : > { %3594 = vmatprep.mubr.bf16.mxu0 %v4429_v23  ;;  %v3258_v63 = vpop.f32.mrf.mxu1 }
 0x13f   : > { %v3147_v16 = vpop.f32.mrf.mxu0  ;;  %3639 = vmatmul.mubr.bf16.gmra.mxu1 %v4263_v37  ;;  %v4862_v54 = vadd.f32 %v3257_v30, %v3145_v44 }
 0x140   : > { %v3148_v20 = vadd.f32 %v3147_v16, %v3146_v35  ;;  %3642 = vmatprep.mubr.bf16.mxu1 %v4325_v32  ;;  %v3259_v11 = vpop.f32.mrf.mxu1 }
 0x141   : > { %v3149_v1 = vpop.f32.mrf.mxu0  ;;  %v3260_v31 = vadd.f32 %v3259_v11, %v3258_v63 }
 0x142   : > { %v3261_v0 = vpop.f32.mrf.mxu1 }
 0x143   : > { %v3150_v6 = vpop.f32.mrf.mxu0  ;;  %v4865_v24 = vadd.f32 %v3260_v31, %v3148_v20 }
 0x144   : > { %v3151_v48 = vadd.f32 %v3150_v6, %v3149_v1  ;;  %v3262_v23 = vpop.f32.mrf.mxu1 }
 0x145   : > { %v3152_v4 = vpop.f32.mrf.mxu0  ;;  %3595 = vmatmul.mubr.bf16.gmra.mxu0 %v4472_v25  ;;  %v3263_v43 = vadd.f32 %v3262_v23, %v3261_v0 }
 0x146   : > { %3598 = vmatprep.mubr.bf16.mxu0 %v4516_v26  ;;  %v3264_v3 = vpop.f32.mrf.mxu1 }
 0x147   : > { %v3153_v37 = vpop.f32.mrf.mxu0  ;;  %3643 = vmatmul.mubr.bf16.gmra.mxu1 %v4381_v17  ;;  %v4870_v32 = vadd.f32 %v3263_v43, %v3151_v48 }
 0x148   : > { %v3154_v50 = vadd.f32 %v3153_v37, %v3152_v4  ;;  %3646 = vmatprep.mubr.bf16.mxu1 %v4422_v61  ;;  %v3265_v21 = vpop.f32.mrf.mxu1 }
 0x149   : > { %v3155_v34 = vpop.f32.mrf.mxu0  ;;  %v3266_v7 = vadd.f32 %v3265_v21, %v3264_v3 }
 0x14a   : > { %v3267_v28 = vpop.f32.mrf.mxu1 }
 0x14b   : > { %v3156_v14 = vpop.f32.mrf.mxu0  ;;  %v4873_v25 = vadd.f32 %v3266_v7, %v3154_v50 }
 0x14c   : > { %v3157_v13 = vadd.f32 %v3156_v14, %v3155_v34  ;;  %v3268_v26 = vpop.f32.mrf.mxu1 }
 0x14d   : > { %v3158_v44 = vpop.f32.mrf.mxu0  ;;  %3599 = vmatmul.mubr.bf16.gmra.mxu0 %v5172_v57  ;;  %v3269_v35 = vadd.f32 %v3268_v26, %v3267_v28 }
 0x14e   : > { %3602 = vmatprep.mubr.bf16.mxu0 %v5175_v39  ;;  %v3270_v42 = vpop.f32.mrf.mxu1 }
 0x14f   : > { %v3159_v17 = vpop.f32.mrf.mxu0  ;;  %3647 = vmatmul.mubr.bf16.gmra.mxu1 %v4465_v2  ;;  %v4878_v61 = vadd.f32 %v3269_v35, %v3157_v13 }
 0x150   : > { %v3160_v30 = vadd.f32 %v3159_v17, %v3158_v44  ;;  %3650 = vmatprep.mubr.bf16.mxu1 %v5171_v47  ;;  %v3271_v63 = vpop.f32.mrf.mxu1 }
 0x151   : > { %v3161_v16 = vpop.f32.mrf.mxu0  ;;  %v3272_v20 = vadd.f32 %v3271_v63, %v3270_v42 }
 0x152   : > { %v3273_v11 = vpop.f32.mrf.mxu1 }
 0x153   : > { %v3162_v1 = vpop.f32.mrf.mxu0  ;;  %v4881_v57 = vadd.f32 %v3272_v20, %v3160_v30 }
 0x154   : > { %v3163_v31 = vadd.f32 %v3162_v1, %v3161_v16  ;;  %v3274_v39 = vpop.f32.mrf.mxu1 }
 0x155   : > { %v3164_v6 = vpop.f32.mrf.mxu0  ;;  %3603 = vmatmul.mubr.bf16.gmra.mxu0 %v4618_v22  ;;  %v3275_v0 = vadd.f32 %v3274_v39, %v3273_v11 }
 0x156   : > { %3606 = vmatprep.mubr.bf16.mxu0 %v4645_v15  ;;  %v3276_v48 = vpop.f32.mrf.mxu1 }
 0x157   : > { %v3165_v2 = vpop.f32.mrf.mxu0  ;;  %3651 = vmatmul.mubr.bf16.gmra.mxu1 %v5174_v46  ;;  %v4886_v47 = vadd.f32 %v3275_v0, %v3163_v31 }
 0x158   : > { %v3166_v4 = vadd.f32 %v3165_v2, %v3164_v6  ;;  %3654 = vmatprep.mubr.bf16.mxu1 %v5177_v62  ;;  %v3277_v43 = vpop.f32.mrf.mxu1 }
 0x159   : > { %v3167_v23 = vpop.f32.mrf.mxu0  ;;  %v3278_v37 = vadd.f32 %v3277_v43, %v3276_v48 }
 0x15a   : > { %v3279_v50 = vpop.f32.mrf.mxu1 }
 0x15b   : > { %v3168_v3 = vpop.f32.mrf.mxu0  ;;  %v4889_v22 = vadd.f32 %v3278_v37, %v3166_v4 }
 0x15c   : > { %v3169_v34 = vadd.f32 %v3168_v3, %v3167_v23  ;;  %v3280_v15 = vpop.f32.mrf.mxu1 }
 0x15d   : > { %v3170_v21 = vpop.f32.mrf.mxu0  ;;  %3607 = vmatmul.mubr.bf16.gmra.mxu0 %v4663_v53  ;;  %v3281_v7 = vadd.f32 %v3280_v15, %v3279_v50 }
 0x15e   : > { %3610 = vmatprep.mubr.bf16.mxu0 %v4670_v58  ;;  %v3282_v14 = vpop.f32.mrf.mxu1  ;;  %v5180_v58 = vld [vmem:[#allocation3_spill] sm:$0xff] }
 0x15f   : > { %v3171_v46 = vpop.f32.mrf.mxu0  ;;  %3655 = vmatmul.mubr.bf16.gmra.mxu1 %v4616_v27  ;;  %v4894_v62 = vadd.f32 %v3281_v7, %v3169_v34 }
 0x160   : > { %v3172_v28 = vadd.f32 %v3171_v46, %v3170_v21  ;;  %3658 = vmatprep.mubr.bf16.mxu1 %v4639_v38  ;;  %v3283_v44 = vpop.f32.mrf.mxu1 }
 0x161   : > { %v3173_v13 = vpop.f32.mrf.mxu0  ;;  %v3284_v26 = vadd.f32 %v3283_v44, %v3282_v14 }
 0x162   : > { %v3285_v17 = vpop.f32.mrf.mxu1 }
 0x163   : > { %v3174_v35 = vpop.f32.mrf.mxu0  ;;  %v4897_v53 = vadd.f32 %v3284_v26, %v3172_v28 }
 0x164   : > { %v3175_v42 = vadd.f32 %v3174_v35, %v3173_v13  ;;  %v3286_v16 = vpop.f32.mrf.mxu1 }
 0x165   : > { %v3176_v30 = vpop.f32.mrf.mxu0  ;;  %3611 = vmatmul.mubr.bf16.gmra.mxu0 %v5180_v58  ;;  %v3287_v63 = vadd.f32 %v3286_v16, %v3285_v17 }
 0x166   : > { %v3288_v1 = vpop.f32.mrf.mxu1 }
 0x167   : > { %v3177_v20 = vpop.f32.mrf.mxu0  ;;  %3659 = vmatmul.mubr.bf16.gmra.mxu1 %v4655_v36  ;;  %v4901_v11 = vadd.f32 %v3287_v63, %v3175_v42 }
 0x168   : > { %v3178_v27 = vadd.f32 %v3177_v20, %v3176_v30  ;;  %v3289_v31 = vpop.f32.mrf.mxu1 }
 0x169   : > { %v3179_v38 = vpop.f32.mrf.mxu0  ;;  %v3290_v6 = vadd.f32 %v3289_v31, %v3288_v1 }
 0x16a   : > { %v3291_v0 = vpop.f32.mrf.mxu1 }
 0x16b   : > { %v3180_v39 = vpop.f32.mrf.mxu0  ;;  %v4903_v48 = vadd.f32 %v3290_v6, %v3178_v27 }
 0x16c   : > { %v3181_v2 = vadd.f32 %v3180_v39, %v3179_v38  ;;  %v3292_v23 = vpop.f32.mrf.mxu1 }
 0x16d   : > { %v3310_v4 = vpop.f32.mrf.mxu0  ;;  %v3293_v43 = vadd.f32 %v3292_v23, %v3291_v0 }
 0x16f   : > { %v3311_v37 = vpop.f32.mrf.mxu0  ;;  %v3422_v50 = vpop.f32.mrf.mxu1  ;;  %v4905_v34 = vadd.f32 %v3293_v43, %v3181_v2 }
 0x170   : > { %v3312_v3 = vadd.f32 %v3311_v37, %v3310_v4 }
 0x171   : > { %v3313_v21 = vpop.f32.mrf.mxu0  ;;  %v3423_v15 = vpop.f32.mrf.mxu1 }
 0x172   : > { %v1872_v36 = vadd.f32 %v3312_v3, %v4773_v56  ;;  %v3424_v7 = vadd.f32 %v3423_v15, %v3422_v50 }
 0x173   : > { %v3314_v46 = vpop.f32.mrf.mxu0  ;;  %v3425_v28 = vpop.f32.mrf.mxu1 }
 0x174   : > { %v3315_v14 = vadd.f32 %v3314_v46, %v3313_v21  ;;  %v4908_v44 = vadd.f32 %v3424_v7, %v1872_v36 }
 0x175   : > { %v3316_v13 = vpop.f32.mrf.mxu0  ;;  %v3426_v35 = vpop.f32.mrf.mxu1 }
 0x176   : > { %v1875_v26 = vadd.f32 %v3315_v14, %v4780_v49  ;;  %v3427_v17 = vadd.f32 %v3426_v35, %v3425_v28 }
 0x177   : > { %v3317_v42 = vpop.f32.mrf.mxu0  ;;  %v3428_v58 = vpop.f32.mrf.mxu1 }
 0x178   : > { %v3318_v30 = vadd.f32 %v3317_v42, %v3316_v13  ;;  %v4911_v63 = vadd.f32 %v3427_v17, %v1875_v26 }
 0x179   : > { %v3319_v16 = vpop.f32.mrf.mxu0  ;;  %v3429_v20 = vpop.f32.mrf.mxu1 }
 0x17a   : > { %v1880_v56 = vadd.f32 %v3318_v30, %v4783_v8  ;;  %v3430_v1 = vadd.f32 %v3429_v20, %v3428_v58 }
 0x17b   : > { %v3320_v27 = vpop.f32.mrf.mxu0  ;;  %v3431_v31 = vpop.f32.mrf.mxu1 }
 0x17c   : > { %v3321_v38 = vadd.f32 %v3320_v27, %v3319_v16  ;;  %v4914_v39 = vadd.f32 %v3430_v1, %v1880_v56 }
 0x17d   : > { %v3322_v6 = vpop.f32.mrf.mxu0  ;;  %v3432_v0 = vpop.f32.mrf.mxu1 }
 0x17e   : > { %v1883_v49 = vadd.f32 %v3321_v38, %v4790_v52  ;;  %v3433_v2 = vadd.f32 %v3432_v0, %v3431_v31 }
 0x17f   : > { %v3323_v4 = vpop.f32.mrf.mxu0  ;;  %v3434_v43 = vpop.f32.mrf.mxu1 }
 0x180   : > { %v3324_v23 = vadd.f32 %v3323_v4, %v3322_v6  ;;  %v4917_v3 = vadd.f32 %v3433_v2, %v1883_v49 }
 0x181   : > { %v3325_v37 = vpop.f32.mrf.mxu0  ;;  %v3435_v50 = vpop.f32.mrf.mxu1 }
 0x182   : > { %v1888_v8 = vadd.f32 %v3324_v23, %v4793_v60  ;;  %v3436_v21 = vadd.f32 %v3435_v50, %v3434_v43 }
 0x183   : > { %v3326_v36 = vpop.f32.mrf.mxu0  ;;  %v3437_v7 = vpop.f32.mrf.mxu1 }
 0x184   : > { %v3327_v15 = vadd.f32 %v3326_v36, %v3325_v37  ;;  %v4920_v14 = vadd.f32 %v3436_v21, %v1888_v8 }
 0x185   : > { %v3328_v46 = vpop.f32.mrf.mxu0  ;;  %v3438_v28 = vpop.f32.mrf.mxu1 }
 0x186   : > { %v1891_v52 = vadd.f32 %v3327_v15, %v4800_v5  ;;  %v3439_v13 = vadd.f32 %v3438_v28, %v3437_v7 }
 0x187   : > { %v3329_v26 = vpop.f32.mrf.mxu0  ;;  %v3440_v17 = vpop.f32.mrf.mxu1 }
 0x188   : > { %v3330_v35 = vadd.f32 %v3329_v26, %v3328_v46  ;;  %v4923_v30 = vadd.f32 %v3439_v13, %v1891_v52 }
 0x189   : > { %v3331_v42 = vpop.f32.mrf.mxu0  ;;  %v3441_v58 = vpop.f32.mrf.mxu1 }
 0x18a   : > { %v1896_v60 = vadd.f32 %v3330_v35, %v4803_v10  ;;  %v3442_v16 = vadd.f32 %v3441_v58, %v3440_v17 }
 0x18b   : > { %v3332_v56 = vpop.f32.mrf.mxu0  ;;  %v3443_v1 = vpop.f32.mrf.mxu1 }
 0x18c   : > { %v3333_v20 = vadd.f32 %v3332_v56, %v3331_v42  ;;  %v4926_v38 = vadd.f32 %v3442_v16, %v1896_v60 }
 0x18d   : > { %v3334_v27 = vpop.f32.mrf.mxu0  ;;  %v3444_v31 = vpop.f32.mrf.mxu1 }
 0x18e   : > { %v1899_v5 = vadd.f32 %v3333_v20, %v4810_v40  ;;  %v3445_v6 = vadd.f32 %v3444_v31, %v3443_v1 }
 0x18f   : > { %v3335_v49 = vpop.f32.mrf.mxu0  ;;  %v3446_v2 = vpop.f32.mrf.mxu1 }
 0x190   : > { %v3336_v0 = vadd.f32 %v3335_v49, %v3334_v27  ;;  %v4929_v23 = vadd.f32 %v3445_v6, %v1899_v5 }
 0x191   : > { %v3337_v4 = vpop.f32.mrf.mxu0  ;;  %v3447_v43 = vpop.f32.mrf.mxu1 }
 0x192   : > { %v1904_v10 = vadd.f32 %v3336_v0, %v4813_v18  ;;  %v3448_v37 = vadd.f32 %v3447_v43, %v3446_v2 }
 0x193   : > { %v3338_v8 = vpop.f32.mrf.mxu0  ;;  %v3449_v21 = vpop.f32.mrf.mxu1 }
 0x194   : > { %v3339_v50 = vadd.f32 %v3338_v8, %v3337_v4  ;;  %v4932_v15 = vadd.f32 %v3448_v37, %v1904_v10 }
 0x195   : > { %v3340_v36 = vpop.f32.mrf.mxu0  ;;  %v3450_v7 = vpop.f32.mrf.mxu1 }
 0x196   : > { %v1907_v40 = vadd.f32 %v3339_v50, %v4820_v45  ;;  %v3451_v46 = vadd.f32 %v3450_v7, %v3449_v21 }
 0x197   : > { %v3341_v52 = vpop.f32.mrf.mxu0  ;;  %v3452_v13 = vpop.f32.mrf.mxu1 }
 0x198   : > { %v3342_v28 = vadd.f32 %v3341_v52, %v3340_v36  ;;  %v4935_v35 = vadd.f32 %v3451_v46, %v1907_v40 }
 0x199   : > { %v3343_v26 = vpop.f32.mrf.mxu0  ;;  %v3453_v17 = vpop.f32.mrf.mxu1 }
 0x19a   : > { %v1912_v18 = vadd.f32 %v3342_v28, %v4823_v9  ;;  %v3454_v42 = vadd.f32 %v3453_v17, %v3452_v13 }
 0x19b   : > { %v3344_v60 = vpop.f32.mrf.mxu0  ;;  %v3455_v16 = vpop.f32.mrf.mxu1 }
 0x19c   : > { %v3345_v58 = vadd.f32 %v3344_v60, %v3343_v26  ;;  %v4938_v20 = vadd.f32 %v3454_v42, %v1912_v18 }
 0x19d   : > { %v3346_v56 = vpop.f32.mrf.mxu0  ;;  %v3456_v1 = vpop.f32.mrf.mxu1 }
 0x19e   : > { %v1915_v45 = vadd.f32 %v3345_v58, %v4830_v51  ;;  %v3457_v27 = vadd.f32 %v3456_v1, %v3455_v16 }
 0x19f   : > { %v3347_v5 = vpop.f32.mrf.mxu0  ;;  %v3458_v6 = vpop.f32.mrf.mxu1 }
 0x1a0   : > { %v3348_v31 = vadd.f32 %v3347_v5, %v3346_v56  ;;  %v4941_v0 = vadd.f32 %v3457_v27, %v1915_v45 }
 0x1a1   : > { %v3349_v49 = vpop.f32.mrf.mxu0  ;;  %v3459_v2 = vpop.f32.mrf.mxu1 }
 0x1a2   : > { %v1920_v9 = vadd.f32 %v3348_v31, %v4833_v12  ;;  %v3460_v4 = vadd.f32 %v3459_v2, %v3458_v6 }
 0x1a3   : > { %v3350_v10 = vpop.f32.mrf.mxu0  ;;  %v3461_v37 = vpop.f32.mrf.mxu1 }
 0x1a4   : > { %v3351_v43 = vadd.f32 %v3350_v10, %v3349_v49  ;;  %v4944_v50 = vadd.f32 %v3460_v4, %v1920_v9 }
 0x1a5   : > { %v3352_v8 = vpop.f32.mrf.mxu0  ;;  %v3462_v21 = vpop.f32.mrf.mxu1 }
 0x1a6   : > { %v1923_v51 = vadd.f32 %v3351_v43, %v4838_v29  ;;  %v3463_v36 = vadd.f32 %v3462_v21, %v3461_v37 }
 0x1a7   : > { %v3353_v40 = vpop.f32.mrf.mxu0  ;;  %v3464_v46 = vpop.f32.mrf.mxu1 }
 0x1a8   : > { %v3354_v7 = vadd.f32 %v3353_v40, %v3352_v8  ;;  %v4947_v28 = vadd.f32 %v3463_v36, %v1923_v51 }
 0x1a9   : > { %v3355_v52 = vpop.f32.mrf.mxu0  ;;  %v3465_v13 = vpop.f32.mrf.mxu1 }
 0x1aa   : > { %v1928_v12 = vadd.f32 %v3354_v7, %v4841_v33  ;;  %v3466_v26 = vadd.f32 %v3465_v13, %v3464_v46 }
 0x1ab   : > { %v3356_v18 = vpop.f32.mrf.mxu0  ;;  %v3467_v42 = vpop.f32.mrf.mxu1 }
 0x1ac   : > { %v3357_v17 = vadd.f32 %v3356_v18, %v3355_v52  ;;  %v4950_v58 = vadd.f32 %v3466_v26, %v1928_v12 }
 0x1ad   : > { %v3358_v60 = vpop.f32.mrf.mxu0  ;;  %v3468_v16 = vpop.f32.mrf.mxu1 }
 0x1ae   : > { %v1931_v29 = vadd.f32 %v3357_v17, %v4846_v41  ;;  %v3469_v56 = vadd.f32 %v3468_v16, %v3467_v42 }
 0x1af   : > { %v3359_v45 = vpop.f32.mrf.mxu0  ;;  %v3470_v27 = vpop.f32.mrf.mxu1 }
 0x1b0   : > { %v3360_v1 = vadd.f32 %v3359_v45, %v3358_v60  ;;  %v4953_v31 = vadd.f32 %v3469_v56, %v1931_v29 }
 0x1b1   : > { %v3361_v5 = vpop.f32.mrf.mxu0  ;;  %v3471_v6 = vpop.f32.mrf.mxu1 }
 0x1b2   : > { %v1936_v33 = vadd.f32 %v3360_v1, %v4849_v19  ;;  %v3472_v49 = vadd.f32 %v3471_v6, %v3470_v27 }
 0x1b3   : > { %v3362_v9 = vpop.f32.mrf.mxu0  ;;  %v3473_v4 = vpop.f32.mrf.mxu1 }
 0x1b4   : > { %v3363_v2 = vadd.f32 %v3362_v9, %v3361_v5  ;;  %v4956_v43 = vadd.f32 %v3472_v49, %v1936_v33 }
 0x1b5   : > { %v3364_v10 = vpop.f32.mrf.mxu0  ;;  %v3474_v37 = vpop.f32.mrf.mxu1 }
 0x1b6   : > { %v1939_v41 = vadd.f32 %v3363_v2, %v4854_v55  ;;  %v3475_v8 = vadd.f32 %v3474_v37, %v3473_v4 }
 0x1b7   : > { %v3365_v51 = vpop.f32.mrf.mxu0  ;;  %v3476_v36 = vpop.f32.mrf.mxu1 }
 0x1b8   : > { %v3366_v21 = vadd.f32 %v3365_v51, %v3364_v10  ;;  %v4959_v7 = vadd.f32 %v3475_v8, %v1939_v41 }
 0x1b9   : > { %v3367_v40 = vpop.f32.mrf.mxu0  ;;  %v3477_v46 = vpop.f32.mrf.mxu1 }
 0x1ba   : > { %v1944_v19 = vadd.f32 %v3366_v21, %v4857_v59  ;;  %v3478_v52 = vadd.f32 %v3477_v46, %v3476_v36 }
 0x1bb   : > { %v3368_v12 = vpop.f32.mrf.mxu0  ;;  %v3479_v26 = vpop.f32.mrf.mxu1 }
 0x1bc   : > { %v3369_v13 = vadd.f32 %v3368_v12, %v3367_v40  ;;  %v4962_v17 = vadd.f32 %v3478_v52, %v1944_v19 }
 0x1bd   : > { %v3370_v18 = vpop.f32.mrf.mxu0  ;;  %v3480_v42 = vpop.f32.mrf.mxu1 }
 0x1be   : > { %v1947_v55 = vadd.f32 %v3369_v13, %v4862_v54  ;;  %v3481_v60 = vadd.f32 %v3480_v42, %v3479_v26 }
 0x1bf   : > { %v3371_v29 = vpop.f32.mrf.mxu0  ;;  %v3482_v56 = vpop.f32.mrf.mxu1 }
 0x1c0   : > { %v3372_v16 = vadd.f32 %v3371_v29, %v3370_v18  ;;  %v4965_v1 = vadd.f32 %v3481_v60, %v1947_v55 }
 0x1c1   : > { %v3373_v45 = vpop.f32.mrf.mxu0  ;;  %v3483_v27 = vpop.f32.mrf.mxu1 }
 0x1c2   : > { %v1952_v59 = vadd.f32 %v3372_v16, %v4865_v24  ;;  %v3484_v5 = vadd.f32 %v3483_v27, %v3482_v56 }
 0x1c3   : > { %v3374_v33 = vpop.f32.mrf.mxu0  ;;  %v3485_v49 = vpop.f32.mrf.mxu1 }
 0x1c4   : > { %v3375_v6 = vadd.f32 %v3374_v33, %v3373_v45  ;;  %v4968_v2 = vadd.f32 %v3484_v5, %v1952_v59 }
 0x1c5   : > { %v3376_v9 = vpop.f32.mrf.mxu0  ;;  %v3486_v4 = vpop.f32.mrf.mxu1 }
 0x1c6   : > { %v1955_v54 = vadd.f32 %v3375_v6, %v4870_v32  ;;  %v3487_v10 = vadd.f32 %v3486_v4, %v3485_v49 }
 0x1c7   : > { %v3377_v41 = vpop.f32.mrf.mxu0  ;;  %v3488_v8 = vpop.f32.mrf.mxu1 }
 0x1c8   : > { %v3378_v37 = vadd.f32 %v3377_v41, %v3376_v9  ;;  %v4971_v21 = vadd.f32 %v3487_v10, %v1955_v54 }
 0x1c9   : > { %v3379_v51 = vpop.f32.mrf.mxu0  ;;  %v3489_v36 = vpop.f32.mrf.mxu1 }
 0x1ca   : > { %v1960_v24 = vadd.f32 %v3378_v37, %v4873_v25  ;;  %v3490_v40 = vadd.f32 %v3489_v36, %v3488_v8 }
 0x1cb   : > { %v3380_v19 = vpop.f32.mrf.mxu0  ;;  %v3491_v52 = vpop.f32.mrf.mxu1 }
 0x1cc   : > { %v3381_v46 = vadd.f32 %v3380_v19, %v3379_v51  ;;  %v4974_v13 = vadd.f32 %v3490_v40, %v1960_v24 }
 0x1cd   : > { %v3382_v12 = vpop.f32.mrf.mxu0  ;;  %v3492_v26 = vpop.f32.mrf.mxu1 }
 0x1ce   : > { %v1963_v32 = vadd.f32 %v3381_v46, %v4878_v61  ;;  %v3493_v18 = vadd.f32 %v3492_v26, %v3491_v52 }
 0x1cf   : > { %v3383_v55 = vpop.f32.mrf.mxu0  ;;  %v3494_v60 = vpop.f32.mrf.mxu1 }
 0x1d0   : > { %v3384_v42 = vadd.f32 %v3383_v55, %v3382_v12  ;;  %v4977_v16 = vadd.f32 %v3493_v18, %v1963_v32 }
 0x1d1   : > { %v3385_v29 = vpop.f32.mrf.mxu0  ;;  %v3495_v56 = vpop.f32.mrf.mxu1 }
 0x1d2   : > { %v1968_v25 = vadd.f32 %v3384_v42, %v4881_v57  ;;  %v3496_v45 = vadd.f32 %v3495_v56, %v3494_v60 }
 0x1d3   : > { %v3386_v59 = vpop.f32.mrf.mxu0  ;;  %v3497_v5 = vpop.f32.mrf.mxu1 }
 0x1d4   : > { %v3387_v27 = vadd.f32 %v3386_v59, %v3385_v29  ;;  %v4980_v6 = vadd.f32 %v3496_v45, %v1968_v25 }
 0x1d5   : > { %v3388_v33 = vpop.f32.mrf.mxu0  ;;  %v3498_v49 = vpop.f32.mrf.mxu1 }
 0x1d6   : > { %v1971_v61 = vadd.f32 %v3387_v27, %v4886_v47  ;;  %v3499_v9 = vadd.f32 %v3498_v49, %v3497_v5 }
 0x1d7   : > { %v3389_v54 = vpop.f32.mrf.mxu0  ;;  %v3500_v10 = vpop.f32.mrf.mxu1 }
 0x1d8   : > { %v3390_v4 = vadd.f32 %v3389_v54, %v3388_v33  ;;  %v4983_v37 = vadd.f32 %v3499_v9, %v1971_v61 }
 0x1d9   : > { %v3391_v41 = vpop.f32.mrf.mxu0  ;;  %v3501_v8 = vpop.f32.mrf.mxu1 }
 0x1da   : > { %v1976_v57 = vadd.f32 %v3390_v4, %v4889_v22  ;;  %v3502_v51 = vadd.f32 %v3501_v8, %v3500_v10 }
 0x1db   : > { %v3392_v24 = vpop.f32.mrf.mxu0  ;;  %v3503_v40 = vpop.f32.mrf.mxu1 }
 0x1dc   : > { %v3393_v36 = vadd.f32 %v3392_v24, %v3391_v41  ;;  %v4986_v46 = vadd.f32 %v3502_v51, %v1976_v57 }
 0x1dd   : > { %v3394_v19 = vpop.f32.mrf.mxu0  ;;  %v3504_v52 = vpop.f32.mrf.mxu1 }
 0x1de   : > { %v1979_v47 = vadd.f32 %v3393_v36, %v4894_v62  ;;  %v3505_v12 = vadd.f32 %v3504_v52, %v3503_v40 }
 0x1df   : > { %v3395_v32 = vpop.f32.mrf.mxu0  ;;  %v3506_v18 = vpop.f32.mrf.mxu1 }
 0x1e0   : > { %v3396_v26 = vadd.f32 %v3395_v32, %v3394_v19  ;;  %v4989_v42 = vadd.f32 %v3505_v12, %v1979_v47 }
 0x1e1   : > { %v3397_v55 = vpop.f32.mrf.mxu0  ;;  %v3507_v60 = vpop.f32.mrf.mxu1 }
 0x1e2   : > { %v1984_v22 = vadd.f32 %v3396_v26, %v4897_v53  ;;  %v3508_v29 = vadd.f32 %v3507_v60, %v3506_v18 }
 0x1e3   : > { %v3398_v25 = vpop.f32.mrf.mxu0  ;;  %v3509_v45 = vpop.f32.mrf.mxu1 }
 0x1e4   : > { %v3399_v56 = vadd.f32 %v3398_v25, %v3397_v55  ;;  %v4994_v27 = vadd.f32 %v3508_v29, %v1984_v22 }
 0x1e5   : > { %v4992_v59 = vpop.f32.mrf.mxu0  ;;  %v3510_v5 = vpop.f32.mrf.mxu1 }
 0x1e6   : > { %v1987_v62 = vadd.f32 %v3399_v56, %v4901_v11  ;;  %v3511_v33 = vadd.f32 %v3510_v5, %v3509_v45 }
 0x1e7   : > { %v4997_v61 = vpop.f32.mrf.mxu0  ;;  %v4999_v49 = vpop.f32.mrf.mxu1 }
 0x1e8   : > { %v5003_v53 = vadd.f32 %v3511_v33, %v1987_v62 }
 0x1e9   : > { %v5001_v9 = vpop.f32.mrf.mxu0  ;;  %v5005_v54 = vpop.f32.mrf.mxu1 }
 0x1eb   : > { %v5008_v4 = vpop.f32.mrf.mxu0  ;;  %v5010_v10 = vpop.f32.mrf.mxu1 }
 0x1ed   : > { %v3584_v11 = vpop.f32.mrf.mxu0  ;;  %v5017_v41 = vpop.f32.mrf.mxu1 }
 0x1ee   : > { %v2202_v57 = vadd.f32 %v3584_v11, %v4914_v39 }
 0x1ef   : > { %v2193_v8 = vpop.f32.mrf.mxu0  ;;  %v3632_v24 = vpop.f32.mrf.mxu1 }
 0x1f0   : > { %2547 = vst [vmem:[%s5015_s16 + $0x10] sm:$0xff] %v2202_v57  ;;  %v2194_v51 = vadd.f32 %v2193_v8, %v4908_v44  ;;  %2579 = vst [vmem:[%s5023_s20 + $0x10] sm:$0xff] %v3632_v24  ;;  %v2648_v22 = vmul.f32 %v2202_v57, %v2202_v57 }
 0x1f1   : > { %v3585_v36 = vpop.f32.mrf.mxu0  ;;  %v2418_v39 = vpop.f32.mrf.mxu1 }
 0x1f2   : > { %2545 = vst [vmem:[%s5015_s16] sm:$0xff] %v2194_v51  ;;  %v2205_v40 = vadd.f32 %v3585_v36, %v4917_v3  ;;  %2577 = vst [vmem:[%s5023_s20] sm:$0xff] %v2418_v39  ;;  %v2646_v32 = vmul.f32 %v2194_v51, %v2194_v51 }
 0x1f3   : > { %v2196_v19 = vpop.f32.mrf.mxu0  ;;  %v3633_v52 = vpop.f32.mrf.mxu1 }
 0x1f4   : > { %2548 = vst [vmem:[%s5015_s16 + $0x18] sm:$0xff] %v2205_v40  ;;  %v2197_v47 = vadd.f32 %v2196_v19, %v4911_v63  ;;  %2580 = vst [vmem:[%s5023_s20 + $0x18] sm:$0xff] %v3633_v52  ;;  %v2649_v45 = vmul.f32 %v2205_v40, %v2205_v40 }
 0x1f5   : > { %v3588_v12 = vpop.f32.mrf.mxu0  ;;  %v2421_v3 = vpop.f32.mrf.mxu1 }
 0x1f6   : > { %2546 = vst [vmem:[%s5015_s16 + $0x8] sm:$0xff] %v2197_v47  ;;  %v2609_v44 = vadd.f32 %v2197_v47, %v2194_v51  ;;  %v2647_v26 = vmul.f32 %v2197_v47, %v2197_v47  ;;  %v2218_v18 = vadd.f32 %v3588_v12, %v4926_v38  ;;  %2578 = vst [vmem:[%s5023_s20 + $0x8] sm:$0xff] %v2421_v3 }
 0x1f7   : > { %v2209_v55 = vpop.f32.mrf.mxu0  ;;  %v3636_v25 = vpop.f32.mrf.mxu1 }
 0x1f8   : > { %v2610_v60 = vadd.f32 %v2609_v44, %v2202_v57  ;;  %v2678_v29 = vadd.f32 %v2647_v26, %v2646_v32  ;;  %2551 = vst [vmem:[%s5015_s16 + $0x30] sm:$0xff] %v2218_v18  ;;  %v2210_v63 = vadd.f32 %v2209_v55, %v4920_v14  ;;  %2583 = vst [vmem:[%s5023_s20 + $0x30] sm:$0xff] %v3636_v25 }
 0x1f9   : > { %v3589_v56 = vpop.f32.mrf.mxu0  ;;  %v2434_v33 = vpop.f32.mrf.mxu1  ;;  %v2652_v12 = vmul.f32 %v2218_v18, %v2218_v18 }
 0x1fa   : > { %v2679_v62 = vadd.f32 %v2678_v29, %v2648_v22  ;;  %2549 = vst [vmem:[%s5015_s16 + $0x20] sm:$0xff] %v2210_v63  ;;  %v2611_v38 = vadd.f32 %v2610_v60, %v2205_v40  ;;  %v2221_v5 = vadd.f32 %v3589_v56, %v4929_v23  ;;  %2581 = vst [vmem:[%s5023_s20 + $0x20] sm:$0xff] %v2434_v33 }
 0x1fb   : > { %v2212_v11 = vpop.f32.mrf.mxu0  ;;  %v2650_v8 = vmul.f32 %v2210_v63, %v2210_v63  ;;  %v3637_v24 = vpop.f32.mrf.mxu1 }
 0x1fc   : > { %v2612_v57 = vadd.f32 %v2611_v38, %v2210_v63  ;;  %v2680_v51 = vadd.f32 %v2679_v62, %v2649_v45  ;;  %2552 = vst [vmem:[%s5015_s16 + $0x38] sm:$0xff] %v2221_v5  ;;  %v2213_v14 = vadd.f32 %v2212_v11, %v4923_v30  ;;  %2584 = vst [vmem:[%s5023_s20 + $0x38] sm:$0xff] %v3637_v24 }
 0x1fd   : > { %v3592_v36 = vpop.f32.mrf.mxu0  ;;  %v2437_v47 = vpop.f32.mrf.mxu1  ;;  %v2653_v55 = vmul.f32 %v2221_v5, %v2221_v5 }
 0x1fe   : > { %v2681_v39 = vadd.f32 %v2680_v51, %v2650_v8  ;;  %2550 = vst [vmem:[%s5015_s16 + $0x28] sm:$0xff] %v2213_v14  ;;  %v2613_v40 = vadd.f32 %v2612_v57, %v2213_v14  ;;  %v2651_v23 = vmul.f32 %v2213_v14, %v2213_v14  ;;  %v2234_v19 = vadd.f32 %v3592_v36, %v4938_v20 }
 0x1ff   : > { %v2225_v52 = vpop.f32.mrf.mxu0  ;;  %2582 = vst [vmem:[%s5023_s20 + $0x28] sm:$0xff] %v2437_v47  ;;  %v3640_v26 = vpop.f32.mrf.mxu1 }
 0x200   : > { %v2614_v32 = vadd.f32 %v2613_v40, %v2218_v18  ;;  %v2682_v44 = vadd.f32 %v2681_v39, %v2651_v23  ;;  %2555 = vst [vmem:[%s5015_s16 + $0x50] sm:$0xff] %v2234_v19  ;;  %v2226_v30 = vadd.f32 %v2225_v52, %v4932_v15  ;;  %2587 = vst [vmem:[%s5023_s20 + $0x50] sm:$0xff] %v3640_v26 }
 0x201   : > { %v3593_v3 = vpop.f32.mrf.mxu0  ;;  %v2450_v29 = vpop.f32.mrf.mxu1  ;;  %v2656_v8 = vmul.f32 %v2234_v19, %v2234_v19 }
 0x202   : > { %v2683_v22 = vadd.f32 %v2682_v44, %v2652_v12  ;;  %2553 = vst [vmem:[%s5015_s16 + $0x40] sm:$0xff] %v2226_v30  ;;  %v2615_v20 = vadd.f32 %v2614_v32, %v2221_v5  ;;  %v2237_v60 = vadd.f32 %v3593_v3, %v4941_v0  ;;  %2585 = vst [vmem:[%s5023_s20 + $0x40] sm:$0xff] %v2450_v29 }
 0x203   : > { %v2228_v63 = vpop.f32.mrf.mxu0  ;;  %v2654_v25 = vmul.f32 %v2226_v30, %v2226_v30  ;;  %v3641_v45 = vpop.f32.mrf.mxu1 }
 0x204   : > { %v2616_v18 = vadd.f32 %v2615_v20, %v2226_v30  ;;  %v2684_v56 = vadd.f32 %v2683_v22, %v2653_v55  ;;  %2556 = vst [vmem:[%s5015_s16 + $0x58] sm:$0xff] %v2237_v60  ;;  %v2229_v15 = vadd.f32 %v2228_v63, %v4935_v35  ;;  %2588 = vst [vmem:[%s5023_s20 + $0x58] sm:$0xff] %v3641_v45 }
 0x205   : > { %v3596_v62 = vpop.f32.mrf.mxu0  ;;  %v2453_v11 = vpop.f32.mrf.mxu1  ;;  %v2657_v39 = vmul.f32 %v2237_v60, %v2237_v60 }
 0x206   : > { %v2685_v38 = vadd.f32 %v2684_v56, %v2654_v25  ;;  %2554 = vst [vmem:[%s5015_s16 + $0x48] sm:$0xff] %v2229_v15  ;;  %v2617_v5 = vadd.f32 %v2616_v18, %v2229_v15  ;;  %v2655_v0 = vmul.f32 %v2229_v15, %v2229_v15  ;;  %v2250_v33 = vadd.f32 %v3596_v62, %v4950_v58 }
 0x207   : > { %v2241_v57 = vpop.f32.mrf.mxu0  ;;  %2586 = vst [vmem:[%s5023_s20 + $0x48] sm:$0xff] %v2453_v11  ;;  %v3644_v24 = vpop.f32.mrf.mxu1 }
 0x208   : > { %v2618_v51 = vadd.f32 %v2617_v5, %v2234_v19  ;;  %v2686_v14 = vadd.f32 %v2685_v38, %v2655_v0  ;;  %2559 = vst [vmem:[%s5015_s16 + $0x70] sm:$0xff] %v2250_v33  ;;  %v2242_v35 = vadd.f32 %v2241_v57, %v4944_v50  ;;  %2591 = vst [vmem:[%s5023_s20 + $0x70] sm:$0xff] %v3644_v24 }
 0x209   : > { %v3597_v36 = vpop.f32.mrf.mxu0  ;;  %v2466_v47 = vpop.f32.mrf.mxu1 }
 0x20a   : > { %v2687_v40 = vadd.f32 %v2686_v14, %v2656_v8  ;;  %2557 = vst [vmem:[%s5015_s16 + $0x60] sm:$0xff] %v2242_v35  ;;  %v2619_v58 = vadd.f32 %v2618_v51, %v2237_v60  ;;  %v2253_v23 = vadd.f32 %v3597_v36, %v4953_v31  ;;  %2589 = vst [vmem:[%s5023_s20 + $0x60] sm:$0xff] %v2466_v47 }
 0x20b   : > { %v2244_v52 = vpop.f32.mrf.mxu0  ;;  %v2658_v12 = vmul.f32 %v2242_v35, %v2242_v35  ;;  %v3645_v44 = vpop.f32.mrf.mxu1  ;;  %v2660_v60 = vmul.f32 %v2250_v33, %v2250_v33 }
 0x20c   : > { %v2620_v19 = vadd.f32 %v2619_v58, %v2242_v35  ;;  %v2688_v32 = vadd.f32 %v2687_v40, %v2657_v39  ;;  %2560 = vst [vmem:[%s5015_s16 + $0x78] sm:$0xff] %v2253_v23  ;;  %v2245_v50 = vadd.f32 %v2244_v52, %v4947_v28  ;;  %2592 = vst [vmem:[%s5023_s20 + $0x78] sm:$0xff] %v3645_v44 }
 0x20d   : > { %v3600_v30 = vpop.f32.mrf.mxu0  ;;  %v2469_v22 = vpop.f32.mrf.mxu1  ;;  %v2661_v56 = vmul.f32 %v2253_v23, %v2253_v23 }
 0x20e   : > { %v2689_v26 = vadd.f32 %v2688_v32, %v2658_v12  ;;  %2558 = vst [vmem:[%s5015_s16 + $0x68] sm:$0xff] %v2245_v50  ;;  %v2621_v3 = vadd.f32 %v2620_v19, %v2245_v50  ;;  %v2659_v31 = vmul.f32 %v2245_v50, %v2245_v50  ;;  %v2266_v55 = vadd.f32 %v3600_v30, %v4962_v17 }
 0x20f   : > { %v2257_v20 = vpop.f32.mrf.mxu0  ;;  %2590 = vst [vmem:[%s5023_s20 + $0x68] sm:$0xff] %v2469_v22  ;;  %v3648_v18 = vpop.f32.mrf.mxu1  ;;  %v3402_v32 = vadd.f32 %v4997_v61, %v4992_v59 }
 0x210   : > { %v2622_v29 = vadd.f32 %v2621_v3, %v2250_v33  ;;  %v2690_v63 = vadd.f32 %v2689_v26, %v2659_v31  ;;  %2563 = vst [vmem:[%s5015_s16 + $0x90] sm:$0xff] %v2266_v55  ;;  %v2258_v28 = vadd.f32 %v2257_v20, %v4956_v43  ;;  %2595 = vst [vmem:[%s5023_s20 + $0x90] sm:$0xff] %v3648_v18 }
 0x211   : > { %v3601_v25 = vpop.f32.mrf.mxu0  ;;  %v2482_v62 = vpop.f32.mrf.mxu1  ;;  %v2664_v36 = vmul.f32 %v2266_v55, %v2266_v55  ;;  %v1992_v20 = vadd.f32 %v3402_v32, %v4903_v48 }
 0x212   : > { %v2691_v15 = vadd.f32 %v2690_v63, %v2660_v60  ;;  %2561 = vst [vmem:[%s5015_s16 + $0x80] sm:$0xff] %v2258_v28  ;;  %v2623_v17 = vadd.f32 %v2622_v29, %v2253_v23  ;;  %v2269_v45 = vadd.f32 %v3601_v25, %v4965_v1  ;;  %2593 = vst [vmem:[%s5023_s20 + $0x80] sm:$0xff] %v2482_v62 }
 0x213   : > { %v2260_v38 = vpop.f32.mrf.mxu0  ;;  %v2662_v0 = vmul.f32 %v2258_v28, %v2258_v28  ;;  %v3649_v11 = vpop.f32.mrf.mxu1  ;;  %v3514_v60 = vadd.f32 %v5005_v54, %v4999_v49 }
 0x214   : > { %v2624_v5 = vadd.f32 %v2623_v17, %v2258_v28  ;;  %v2692_v33 = vadd.f32 %v2691_v15, %v2661_v56  ;;  %2564 = vst [vmem:[%s5015_s16 + $0x98] sm:$0xff] %v2269_v45  ;;  %v2261_v43 = vadd.f32 %v2260_v38, %v4959_v7  ;;  %2596 = vst [vmem:[%s5023_s20 + $0x98] sm:$0xff] %v3649_v11 }
 0x215   : > { %v3604_v57 = vpop.f32.mrf.mxu0  ;;  %v2485_v35 = vpop.f32.mrf.mxu1  ;;  %v2665_v47 = vmul.f32 %v2269_v45, %v2269_v45  ;;  %v3517_v17 = vadd.f32 %v5017_v41, %v5010_v10 }
 0x216   : > { %v2693_v8 = vadd.f32 %v2692_v33, %v2662_v0  ;;  %2562 = vst [vmem:[%s5015_s16 + $0x88] sm:$0xff] %v2261_v43  ;;  %v2625_v51 = vadd.f32 %v2624_v5, %v2261_v43  ;;  %v2663_v1 = vmul.f32 %v2261_v43, %v2261_v43  ;;  %v2282_v14 = vadd.f32 %v3604_v57, %v4974_v13 }
 0x217   : > { %v2273_v24 = vpop.f32.mrf.mxu0  ;;  %2594 = vst [vmem:[%s5023_s20 + $0x88] sm:$0xff] %v2485_v35  ;;  %v3652_v58 = vpop.f32.mrf.mxu1 }
 0x218   : > { %v2626_v39 = vadd.f32 %v2625_v51, %v2266_v55  ;;  %v2694_v40 = vadd.f32 %v2693_v8, %v2663_v1  ;;  %2567 = vst [vmem:[%s5015_s16 + $0xb0] sm:$0xff] %v2282_v14  ;;  %v2274_v7 = vadd.f32 %v2273_v24, %v4968_v2  ;;  %2599 = vst [vmem:[%s5023_s20 + $0xb0] sm:$0xff] %v3652_v58 }
 0x219   : > { %v3605_v23 = vpop.f32.mrf.mxu0  ;;  %v2498_v12 = vpop.f32.mrf.mxu1  ;;  %v2668_v63 = vmul.f32 %v2282_v14, %v2282_v14 }
 0x21a   : > { %v2695_v52 = vadd.f32 %v2694_v40, %v2664_v36  ;;  %2565 = vst [vmem:[%s5015_s16 + $0xa0] sm:$0xff] %v2274_v7  ;;  %v2627_v13 = vadd.f32 %v2626_v39, %v2269_v45  ;;  %v2285_v19 = vadd.f32 %v3605_v23, %v4977_v16  ;;  %2597 = vst [vmem:[%s5023_s20 + $0xa0] sm:$0xff] %v2498_v12 }
 0x21b   : > { %v2276_v50 = vpop.f32.mrf.mxu0  ;;  %v2666_v2 = vmul.f32 %v2274_v7, %v2274_v7  ;;  %v3653_v3 = vpop.f32.mrf.mxu1 }
 0x21c   : > { %v2628_v44 = vadd.f32 %v2627_v13, %v2274_v7  ;;  %v2696_v30 = vadd.f32 %v2695_v52, %v2665_v47  ;;  %2568 = vst [vmem:[%s5015_s16 + $0xb8] sm:$0xff] %v2285_v19  ;;  %v2277_v26 = vadd.f32 %v2276_v50, %v4971_v21  ;;  %2600 = vst [vmem:[%s5023_s20 + $0xb8] sm:$0xff] %v3653_v3 }
 0x21d   : > { %v3608_v31 = vpop.f32.mrf.mxu0  ;;  %v2501_v61 = vpop.f32.mrf.mxu1  ;;  %v3405_v21 = vadd.f32 %v5008_v4, %v5001_v9  ;;  %v2669_v48 = vmul.f32 %v2285_v19, %v2285_v19 }
 0x21e   : > { %v2697_v55 = vadd.f32 %v2696_v30, %v2666_v2  ;;  %2566 = vst [vmem:[%s5015_s16 + $0xa8] sm:$0xff] %v2277_v26  ;;  %v2629_v16 = vadd.f32 %v2628_v44, %v2277_v26  ;;  %v2667_v22 = vmul.f32 %v2277_v26, %v2277_v26  ;;  %v2298_v59 = vadd.f32 %v3608_v31, %v4986_v46 }
 0x21f   : > { %v2289_v29 = vpop.f32.mrf.mxu0  ;;  %2598 = vst [vmem:[%s5023_s20 + $0xa8] sm:$0xff] %v2501_v61  ;;  %v3656_v46 = vpop.f32.mrf.mxu1  ;;  %v1995_v4 = vadd.f32 %v3405_v21, %v4905_v34 }
 0x220   : > { %v2630_v28 = vadd.f32 %v2629_v16, %v2282_v14  ;;  %v2698_v18 = vadd.f32 %v2697_v55, %v2667_v22  ;;  %2571 = vst [vmem:[%s5015_s16 + $0xd0] sm:$0xff] %v2298_v59  ;;  %v2290_v25 = vadd.f32 %v2289_v29, %v4980_v6  ;;  %2603 = vst [vmem:[%s5023_s20 + $0xd0] sm:$0xff] %v3656_v46 }
 0x221   : > { %v3609_v56 = vpop.f32.mrf.mxu0  ;;  %v2514_v54 = vpop.f32.mrf.mxu1  ;;  %v2153_v6 = vadd.f32 %v3514_v60, %v1992_v20  ;;  %v2156_v8 = vadd.f32 %v3517_v17, %v1995_v4  ;;  %v2672_v51 = vmul.f32 %v2298_v59, %v2298_v59 }
 0x222   : > { %v2699_v15 = vadd.f32 %v2698_v18, %v2668_v63  ;;  %2569 = vst [vmem:[%s5015_s16 + $0xc0] sm:$0xff] %v2290_v25  ;;  %v2631_v49 = vadd.f32 %v2630_v28, %v2285_v19  ;;  %v2301_v9 = vadd.f32 %v3609_v56, %v4989_v42  ;;  %2601 = vst [vmem:[%s5023_s20 + $0xc0] sm:$0xff] %v2514_v54 }
 0x223   : > { %v2292_v45 = vpop.f32.mrf.mxu0  ;;  %v2670_v38 = vmul.f32 %v2290_v25, %v2290_v25  ;;  %v3657_v33 = vpop.f32.mrf.mxu1 }
 0x224   : > { %v2632_v62 = vadd.f32 %v2631_v49, %v2290_v25  ;;  %v2700_v5 = vadd.f32 %v2699_v15, %v2669_v48  ;;  %2572 = vst [vmem:[%s5015_s16 + $0xd8] sm:$0xff] %v2301_v9  ;;  %v2293_v0 = vadd.f32 %v2292_v45, %v4983_v37  ;;  %2604 = vst [vmem:[%s5023_s20 + $0xd8] sm:$0xff] %v3657_v33 }
 0x225   : > { %v3612_v42 = vpop.f32.mrf.mxu0  ;;  %v2517_v41 = vpop.f32.mrf.mxu1  ;;  %v2673_v36 = vmul.f32 %v2301_v9, %v2301_v9 }
 0x226   : > { %v2701_v43 = vadd.f32 %v2700_v5, %v2670_v38  ;;  %2570 = vst [vmem:[%s5015_s16 + $0xc8] sm:$0xff] %v2293_v0  ;;  %v2633_v34 = vadd.f32 %v2632_v62, %v2293_v0  ;;  %v2671_v11 = vmul.f32 %v2293_v0, %v2293_v0  ;;  %v2314_v10 = vadd.f32 %v3612_v42, %v2153_v6 }
 0x227   : > { %v2305_v57 = vpop.f32.mrf.mxu0  ;;  %2602 = vst [vmem:[%s5023_s20 + $0xc8] sm:$0xff] %v2517_v41  ;;  %v3660_v35 = vpop.f32.mrf.mxu1 }
 0x228   : > { %v2634_v1 = vadd.f32 %v2633_v34, %v2298_v59  ;;  %v2702_v14 = vadd.f32 %v2701_v43, %v2671_v11  ;;  %2575 = vst [vmem:[%s5015_s16 + $0xf0] sm:$0xff] %v2314_v10  ;;  %v2306_v37 = vadd.f32 %v2305_v57, %v4994_v27  ;;  %2607 = vst [vmem:[%s5023_s20 + $0xf0] sm:$0xff] %v3660_v35 }
 0x229   : > { %v3613_v24 = vpop.f32.mrf.mxu0  ;;  %v2530_v58 = vpop.f32.mrf.mxu1  ;;  %v2676_v2 = vmul.f32 %v2314_v10, %v2314_v10 }
 0x22a   : > { %v2703_v39 = vadd.f32 %v2702_v14, %v2672_v51  ;;  %2573 = vst [vmem:[%s5015_s16 + $0xe0] sm:$0xff] %v2306_v37  ;;  %v2635_v40 = vadd.f32 %v2634_v1, %v2301_v9  ;;  %v2317_v7 = vadd.f32 %v3613_v24, %v2156_v8  ;;  %2605 = vst [vmem:[%s5023_s20 + $0xe0] sm:$0xff] %v2530_v58 }
 0x22b   : > { %v2308_v23 = vpop.f32.mrf.mxu0  ;;  %v2674_v52 = vmul.f32 %v2306_v37, %v2306_v37  ;;  %v3661_v19 = vpop.f32.mrf.mxu1 }
 0x22c   : > { %v2636_v47 = vadd.f32 %v2635_v40, %v2306_v37  ;;  %v2704_v13 = vadd.f32 %v2703_v39, %v2673_v36  ;;  %2576 = vst [vmem:[%s5015_s16 + $0xf8] sm:$0xff] %v2317_v7  ;;  %v2309_v27 = vadd.f32 %v2308_v23, %v5003_v53  ;;  %2608 = vst [vmem:[%s5023_s20 + $0xf8] sm:$0xff] %v3661_v19 }
 0x22d   : > { %v2533_v44 = vpop.f32.mrf.mxu1  ;;  %v2677_v3 = vmul.f32 %v2317_v7, %v2317_v7 }
 0x22e   : > { %v2705_v12 = vadd.f32 %v2704_v13, %v2674_v52  ;;  %2574 = vst [vmem:[%s5015_s16 + $0xe8] sm:$0xff] %v2309_v27  ;;  %v2637_v32 = vadd.f32 %v2636_v47, %v2309_v27  ;;  %v2675_v50 = vmul.f32 %v2309_v27, %v2309_v27  ;;  %2606 = vst [vmem:[%s5023_s20 + $0xe8] sm:$0xff] %v2533_v44 }
 0x230   : > { %v2638_v30 = vadd.f32 %v2637_v32, %v2314_v10  ;;  %v2706_v26 = vadd.f32 %v2705_v12, %v2675_v50 }
 0x232   : > { %v2639_v31 = vadd.f32 %v2638_v30, %v2317_v7  ;;  %v2707_v55 = vadd.f32 %v2706_v26, %v2676_v2 }
 0x234   : > { %v2640_v16 = vrot.slane %v2639_v31, 4  ;;  %v2708_v22 = vadd.f32 %v2707_v55, %v2677_v3 }
 0x236   : > { %v2641_v59 = vadd.f32 %v2640_v16, %v2639_v31  ;;  %v2709_v61 = vrot.slane %v2708_v22, 4 }
 0x238   : > { %v2642_v53 = vrot.slane %v2641_v59, 2  ;;  %v2710_v20 = vadd.f32 %v2709_v61, %v2708_v22 }
 0x23a   : > { %v2643_v60 = vadd.f32 %v2642_v53, %v2641_v59  ;;  %v2711_v21 = vrot.slane %v2710_v20, 2 }
 0x23c   : > { %v2644_v29 = vrot.slane %v2643_v60, 1  ;;  %v2712_v63 = vadd.f32 %v2711_v21, %v2710_v20 }
 0x23e   : > { %v2713_v28 = vrot.slane %v2712_v63, 1  ;;  %v2645_v18 = vadd.f32 %v2644_v29, %v2643_v60 }
 0x240   : > { %v2714_v25 = vadd.f32 %v2713_v28, %v2712_v63 }
 0x242   : > { %v2716_v46 = vsel %vm2715_vm6, %v2645_v18, %v2714_v25 }
 0x243   : > { %2717 = vst [vmem:[%s274_s26] sm:$0x3] %v2716_v46 }
 0x244 PF: > { %s17_s21 = sadd.s32 1, %s3760_s21  }
 0x245   : > { %p14_p4 = scmp.ge.s32.totalorder %s17_s21, 4  }
 0x247   :  { %16 = sbr.rel (!%p14_p4) target bundleno = 1 (0x1), region = 90 }

</bundles_post_ra>
